<compile_context>
chip_gen: v7x
topology: tpu7x:2x2x1
jax: 0.10.0
libtpu: 0.0.40
codegen_flags: <defaults>
</compile_context>

<pallas_src>
import math
from functools import partial

import jax
import jax.numpy as jnp
from jax import lax
from jax.experimental import pallas as pl
from jax.experimental.pallas import tpu as pltpu


_SQRT_HALF = 1.0 / math.sqrt(2.0)


def _gelu_exact(x):
    # nn.GELU() default = exact erf-based GELU (keep module semantics).
    # TODO(synk): tanh-approx GELU would route to the EUP and shorten the VPU
    # chain between the two matmuls, but changes numerics vs nn.GELU() default.
    return 0.5 * x * (1.0 + lax.erf(x * _SQRT_HALF))


def _make_ffn_kernel(out_is_f32):
    """Build the fused FFN kernel. Reduction (ff) axis is grid axis 1."""
    if out_is_f32:
        # f32 output: accumulate directly into the resident output block
        # (saves a full tm*E*4-byte scratch copy of the output tile).
        def kernel(x_ref, w1_ref, b1_ref, w2_ref, b2_ref, o_ref):
            j = pl.program_id(1)

            h = jnp.dot(x_ref[...].astype(w1_ref.dtype), w1_ref[...],
                        preferred_element_type=jnp.float32)
            h = _gelu_exact(h + b1_ref[...])
            part = jnp.dot(h.astype(w2_ref.dtype), w2_ref[...],
                           preferred_element_type=jnp.float32)

            @pl.when(j == 0)
            def _():
                o_ref[...] = part + b2_ref[...]

            @pl.when(j > 0)
            def _():
                o_ref[...] += part

        return kernel

    # Narrow (e.g. bf16) output: keep a f32 accumulator scratch for precision.
    def kernel(x_ref, w1_ref, b1_ref, w2_ref, b2_ref, o_ref, acc_ref):
        j = pl.program_id(1)

        @pl.when(j == 0)
        def _():
            acc_ref[...] = jnp.zeros_like(acc_ref)

        h = jnp.dot(x_ref[...].astype(w1_ref.dtype), w1_ref[...],
                    preferred_element_type=jnp.float32)
        h = _gelu_exact(h + b1_ref[...])
        acc_ref[...] += jnp.dot(h.astype(w2_ref.dtype), w2_ref[...],
                                preferred_element_type=jnp.float32)

        @pl.when(j == pl.num_programs(1) - 1)
        def _():
            o_ref[...] = (acc_ref[...] + b2_ref[...]).astype(o_ref.dtype)

    return kernel


def _round_up(x, m):
    return ((x + m - 1) // m) * m


def _footprint_bytes(tm, tf, E, x_b, w_b, o_b, need_acc):
    """VMEM footprint of one grid step with default double-buffering."""
    fp = 2 * tm * E * x_b            # x tile
    fp += 2 * tm * E * o_b           # output tile
    fp += 2 * E * tf * w_b           # W1 ff-chunk
    fp += 2 * tf * E * w_b           # W2 ff-chunk
    fp += 2 * (tf + E) * 4           # biases (f32)
    if need_acc:
        fp += tm * E * 4             # f32 accumulator scratch
    return fp


_VMEM_TILE_BUDGET = 40 << 20         # stay well under v7x's 64 MiB physical VMEM


def _choose_tiles(M, E, F, x_b, w_b, o_b, need_acc, sub):
    """Pick (tm, tf): prefer a large ff chunk (amortizes grid-step overhead,
    matches the 256x256 MXU feed) and the largest row tile that still fits."""
    tf_cands = [t for t in (1024, 512, 256, 128) if F % t == 0] or [F]
    tm_top = min(_round_up(M, sub), 512)
    tm_cands = [tm_top] + [t for t in (512, 256, 128, 64, 32, 16) if t < tm_top]
    if sub <= 8 and 8 < tm_top:
        tm_cands.append(8)
    for tf in tf_cands:
        for tm in tm_cands:
            if _footprint_bytes(tm, tf, E, x_b, w_b, o_b, need_acc) <= _VMEM_TILE_BUDGET:
                return tm, tf
    return tm_cands[-1], tf_cands[-1]


@partial(jax.jit, static_argnames=("tm", "tf"))
def traditional_feed_forward(x, w1, b1, w2, b2, tm=None, tf=None):
    """x: (B, S, E); w1: (E, F); b1: (F,); w2: (F, E); b2: (E,).

    Weights may be f32 or bf16 (x / h are cast to the weight dtype before each
    matmul; accumulation is f32). Output dtype follows x.
    """
    B, S, E = x.shape
    F = w1.shape[1]
    M = B * S

    out_dtype = x.dtype
    out_is_f32 = out_dtype == jnp.float32

    x_b = jnp.dtype(x.dtype).itemsize
    w_b = jnp.dtype(w1.dtype).itemsize
    o_b = jnp.dtype(out_dtype).itemsize

    # Sublane granularity for the (tm, E) tiles: 16 rows for sub-32-bit x/out.
    sub = 8 if min(x_b, o_b) >= 4 else 16

    auto_tm, auto_tf = _choose_tiles(M, E, F, x_b, w_b, o_b, not out_is_f32, sub)
    tm = auto_tm if tm is None else tm
    tf = auto_tf if tf is None else tf
    assert F % tf == 0, "ff_dim must be divisible by the ff tile size"

    # Pad rows up to a multiple of tm (padded rows are computed then sliced off).
    M_pad = _round_up(M, tm)
    x2d = x.reshape(M, E)
    if M_pad != M:
        x2d = jnp.pad(x2d, ((0, M_pad - M), (0, 0)))

    b1_2d = b1.reshape(1, F).astype(jnp.float32)
    b2_2d = b2.reshape(1, E).astype(jnp.float32)

    kernel = _make_ffn_kernel(out_is_f32)
    scratch = [] if out_is_f32 else [pltpu.VMEM((tm, E), jnp.float32)]

    footprint = _footprint_bytes(tm, tf, E, x_b, w_b, o_b, not out_is_f32)
    vmem_limit = min(max(int(footprint * 3 // 2) + (2 << 20), 32 << 20), 96 << 20)

    out2d = pl.pallas_call(
        kernel,
        out_shape=jax.ShapeDtypeStruct((M_pad, E), out_dtype),
        grid_spec=pltpu.PrefetchScalarGridSpec(
            num_scalar_prefetch=0,
            grid=(M_pad // tm, F // tf),          # (rows, ff-reduction-last)
            in_specs=[
                pl.BlockSpec((tm, E), lambda i, j: (i, 0)),    # x row tile
                pl.BlockSpec((E, tf), lambda i, j: (0, j)),    # W1 ff-chunk
                pl.BlockSpec((1, tf), lambda i, j: (0, j)),    # b1 ff-chunk
                pl.BlockSpec((tf, E), lambda i, j: (j, 0)),    # W2 ff-chunk
                pl.BlockSpec((1, E), lambda i, j: (0, 0)),     # b2 (resident)
            ],
            out_specs=pl.BlockSpec((tm, E), lambda i, j: (i, 0)),
            scratch_shapes=scratch,
        ),
        compiler_params=pltpu.CompilerParams(
            dimension_semantics=("parallel", "arbitrary"),
            vmem_limit_bytes=vmem_limit,
        ),
    )(x2d, w1, b1_2d, w2, b2_2d)

    if M_pad != M:
        out2d = out2d[:M]
    return out2d.reshape(B, S, E)


def reference_ffn(x, w1, b1, w2, b2):
    h = _gelu_exact(jnp.dot(x, w1) + b1)
    return jnp.dot(h, w2) + b2


if __name__ == "__main__":
    # Small batch/seq, module-level embed_dim / ff_dim from the spec.
    batch, seq = 2, 8
    embed_dim, ff_dim = 768, 3072

    key = jax.random.PRNGKey(0)
    kx, k1, k2, k3, k4 = jax.random.split(key, 5)

    x = jax.random.normal(kx, (batch, seq, embed_dim), dtype=jnp.float32)

    # Deterministic synthetic parameters (nn.Linear init ranges, stored transposed
    # so the forward pass is x @ W + b).
    bound1 = 1.0 / math.sqrt(embed_dim)
    bound2 = 1.0 / math.sqrt(ff_dim)
    w1 = jax.random.uniform(k1, (embed_dim, ff_dim), jnp.float32, -bound1, bound1)
    b1 = jax.random.uniform(k2, (ff_dim,), jnp.float32, -bound1, bound1)
    w2 = jax.random.uniform(k3, (ff_dim, embed_dim), jnp.float32, -bound2, bound2)
    b2 = jax.random.uniform(k4, (embed_dim,), jnp.float32, -bound2, bound2)

    ref = reference_ffn(x, w1, b1, w2, b2)

    # f32 weights path.
    out = jax.block_until_ready(traditional_feed_forward(x, w1, b1, w2, b2))
    assert out.shape == (batch, seq, embed_dim)
    assert jnp.allclose(out, ref, atol=5e-3, rtol=5e-3), "f32 mismatch vs reference"

    # bf16-weight fast path (halves weight DMA bytes; f32 accumulation kept).
    out_bf16w = jax.block_until_ready(
        traditional_feed_forward(x, w1.astype(jnp.bfloat16), b1,
                                 w2.astype(jnp.bfloat16), b2))
    assert jnp.allclose(out_bf16w, ref, atol=3e-2, rtol=3e-2), "bf16-weight mismatch"

    print("KERNEL_OK")
</pallas_src>

<mosaic_0001>
module attributes {stable_mosaic.version = 11 : i64} {
  func.func @kernel(%arg0: i32, %arg1: i32, %arg2: memref<16x768xf32, #tpu.memory_space<vmem>>, %arg3: memref<768x1024xf32, #tpu.memory_space<vmem>>, %arg4: memref<1x1024xf32, #tpu.memory_space<vmem>>, %arg5: memref<1024x768xf32, #tpu.memory_space<vmem>>, %arg6: memref<1x768xf32, #tpu.memory_space<vmem>>, %arg7: memref<16x768xf32, #tpu.memory_space<vmem>>) attributes {dimension_semantics = [#tpu.dimension_semantics<parallel>, #tpu.dimension_semantics<arbitrary>], iteration_bounds = array<i64: 1, 3>, scalar_prefetch = 0 : i64, scratch_operands = 0 : i64, tpu.core_type = #tpu.core_type<tc>, window_params = [{transform_indices = @transform_0, window_bounds = array<i64: 16, 768>}, {transform_indices = @transform_1, window_bounds = array<i64: 768, 1024>}, {transform_indices = @transform_2, window_bounds = array<i64: 1, 1024>}, {transform_indices = @transform_3, window_bounds = array<i64: 1024, 768>}, {pipeline_mode = #tpu.pipeline_mode<synchronous>, transform_indices = @transform_4, window_bounds = array<i64: 1, 768>}, {transform_indices = @transform_5, window_bounds = array<i64: 16, 768>}]} {
    %c0 = arith.constant 0 : index
    %c0_0 = arith.constant 0 : index
    %0 = vector.load %arg2[%c0, %c0_0] : memref<16x768xf32, #tpu.memory_space<vmem>>, vector<16x768xf32>
    %c0_1 = arith.constant 0 : index
    %c0_2 = arith.constant 0 : index
    %1 = vector.load %arg3[%c0_1, %c0_2] : memref<768x1024xf32, #tpu.memory_space<vmem>>, vector<768x1024xf32>
    %cst = arith.constant dense<0.000000e+00> : vector<16x1024xf32>
    %2 = tpu.matmul %0, %1, %cst {dimension_numbers = #tpu.dot_dimension_numbers<[1], [0], [0], [1], [0, 0, 1, 1], [], []>} : vector<16x768xf32>, vector<768x1024xf32>, vector<16x1024xf32> -> vector<16x1024xf32>
    %c0_3 = arith.constant 0 : index
    %c0_4 = arith.constant 0 : index
    %3 = vector.load %arg4[%c0_3, %c0_4] : memref<1x1024xf32, #tpu.memory_space<vmem>>, vector<1x1024xf32>
    %4 = vector.broadcast %3 : vector<1x1024xf32> to vector<16x1024xf32>
    %5 = arith.addf %2, %4 : vector<16x1024xf32>
    %cst_5 = arith.constant 5.000000e-01 : f32
    %6 = vector.broadcast %cst_5 : f32 to vector<16x1024xf32>
    %7 = arith.mulf %6, %5 : vector<16x1024xf32>
    %cst_6 = arith.constant 0.707106769 : f32
    %8 = vector.broadcast %cst_6 : f32 to vector<16x1024xf32>
    %9 = arith.mulf %5, %8 : vector<16x1024xf32>
    %10 = math.erf %9 : vector<16x1024xf32>
    %cst_7 = arith.constant 1.000000e+00 : f32
    %11 = vector.broadcast %cst_7 : f32 to vector<16x1024xf32>
    %12 = arith.addf %11, %10 : vector<16x1024xf32>
    %13 = arith.mulf %7, %12 : vector<16x1024xf32>
    %c0_8 = arith.constant 0 : index
    %c0_9 = arith.constant 0 : index
    %14 = vector.load %arg5[%c0_8, %c0_9] : memref<1024x768xf32, #tpu.memory_space<vmem>>, vector<1024x768xf32>
    %cst_10 = arith.constant dense<0.000000e+00> : vector<16x768xf32>
    %15 = tpu.matmul %13, %14, %cst_10 {dimension_numbers = #tpu.dot_dimension_numbers<[1], [0], [0], [1], [0, 0, 1, 1], [], []>} : vector<16x1024xf32>, vector<1024x768xf32>, vector<16x768xf32> -> vector<16x768xf32>
    %c0_i32 = arith.constant 0 : i32
    %16 = arith.cmpi eq, %arg1, %c0_i32 : i32
    %17 = arith.extui %16 : i1 to i32
    %c0_i32_11 = arith.constant 0 : i32
    %18 = arith.cmpi ne, %17, %c0_i32_11 : i32
    scf.if %18 {
      %c0_14 = arith.constant 0 : index
      %c0_15 = arith.constant 0 : index
      %22 = vector.load %arg6[%c0_14, %c0_15] : memref<1x768xf32, #tpu.memory_space<vmem>>, vector<1x768xf32>
      %23 = vector.broadcast %22 : vector<1x768xf32> to vector<16x768xf32>
      %24 = arith.addf %15, %23 : vector<16x768xf32>
      %c0_16 = arith.constant 0 : index
      %c0_17 = arith.constant 0 : index
      %25 = vector.load %arg7[%c0_16, %c0_17] : memref<16x768xf32, #tpu.memory_space<vmem>>, vector<16x768xf32>
      tpu.vector_store %arg7[%c0_16, %c0_17], %24 {strides = array<i32>} : memref<16x768xf32, #tpu.memory_space<vmem>>, vector<16x768xf32>,
    } else {
    }
    %c0_i32_12 = arith.constant 0 : i32
    %19 = arith.cmpi sgt, %arg1, %c0_i32_12 : i32
    %20 = arith.extui %19 : i1 to i32
    %c0_i32_13 = arith.constant 0 : i32
    %21 = arith.cmpi ne, %20, %c0_i32_13 : i32
    scf.if %21 {
      %c0_14 = arith.constant 0 : index
      %c0_15 = arith.constant 0 : index
      %22 = vector.load %arg7[%c0_14, %c0_15] : memref<16x768xf32, #tpu.memory_space<vmem>>, vector<16x768xf32>
      %23 = arith.addf %22, %15 : vector<16x768xf32>
      %c0_16 = arith.constant 0 : index
      %c0_17 = arith.constant 0 : index
      %24 = vector.load %arg7[%c0_16, %c0_17] : memref<16x768xf32, #tpu.memory_space<vmem>>, vector<16x768xf32>
      tpu.vector_store %arg7[%c0_16, %c0_17], %23 {strides = array<i32>} : memref<16x768xf32, #tpu.memory_space<vmem>>, vector<16x768xf32>,
    } else {
    }
    return
  }
  func.func @transform_0(%arg0: i32, %arg1: i32) -> (i32, i32) {
    %c0_i32 = arith.constant 0 : i32
    %c0_i32_0 = arith.constant 0 : i32
    return %arg0, %c0_i32 : i32, i32
  }
  func.func @transform_1(%arg0: i32, %arg1: i32) -> (i32, i32) {
    %c0_i32 = arith.constant 0 : i32
    %c0_i32_0 = arith.constant 0 : i32
    return %c0_i32, %arg1 : i32, i32
  }
  func.func @transform_2(%arg0: i32, %arg1: i32) -> (i32, i32) {
    %c0_i32 = arith.constant 0 : i32
    %c0_i32_0 = arith.constant 0 : i32
    return %c0_i32, %arg1 : i32, i32
  }
  func.func @transform_3(%arg0: i32, %arg1: i32) -> (i32, i32) {
    %c0_i32 = arith.constant 0 : i32
    %c0_i32_0 = arith.constant 0 : i32
    return %arg1, %c0_i32 : i32, i32
  }
  func.func @transform_4(%arg0: i32, %arg1: i32) -> (i32, i32) {
    %c0_i32 = arith.constant 0 : i32
    %c0_i32_0 = arith.constant 0 : i32
    %c0_i32_1 = arith.constant 0 : i32
    return %c0_i32, %c0_i32_0 : i32, i32
  }
  func.func @transform_5(%arg0: i32, %arg1: i32) -> (i32, i32) {
    %c0_i32 = arith.constant 0 : i32
    %c0_i32_0 = arith.constant 0 : i32
    return %arg0, %c0_i32 : i32, i32
  }
}

</mosaic_0001>

<bundles_post_ra>
// kernel: traditional_feed_forward.1
= control target key start
LH: loop header
LB: loop body
LE: loop exit
PB: predicated region body
PF: predicated region fallthrough
CT: control target
= control target key end

     0   :  { %s8230_s0 = inlined_call_operand.hbm [shape: f32[16,768], index: 0, kind: input, shape index: {}]   ;;  %s8231_s1 = inlined_call_operand.hbm [shape: f32[768,3072], index: 1, kind: input, shape index: {}]   ;;  %s8232_s2 = inlined_call_operand.hbm [shape: f32[1,3072], index: 2, kind: input, shape index: {}]   ;;  %s8233_s3 = inlined_call_operand.hbm [shape: f32[3072,768], index: 3, kind: input, shape index: {}]   ;;  %s8234_s4 = inlined_call_operand.vmem [shape: f32[1,768], index: 4, kind: input, shape index: {}]   ;;  %s8235_s5 = inlined_call_operand.hbm [shape: f32[16,768], index: 5, kind: output, shape index: {}]  }
   0x1   :  { %8245 = sst [smem:[#allocation17_spill]] %s8231_s1 }
   0x2   :  { %10 = vsyncpa [#allocation3], 0 }
   0x3   :  { %11 = vsyncpa [#allocation6], 0 }
   0x4   :  { %13 = vsyncpa [#allocation6 + $0x1], 0 }
   0x5   :  { %14 = vsyncpa [#allocation9], 0 }
   0x6   :  { %16 = vsyncpa [#allocation9 + $0x1], 0 }
   0x7   :  { %17 = vsyncpa [#allocation4], 0  ;;  %s6146_s18 = smov 0   ;;  %s6148_s19 = smov 0  }
   0x8   :  { %s6150_s20 = smov 0   ;;  %s6152_s21 = smov 0  }
   0x9   :  { %s6154_s22 = smov 0   ;;  %s6156_s23 = smov 0  }
   0xa LB: > { %s32_s24 = sadd.s32 1, %s6098_s22  ;;  %s68_s25 = sadd.s32 1, %s6090_s20  ;;  %s6102_s23 = sphi %s6156_s23, %s23_s23   ;;  %s6098_s22 = sphi %s6154_s22, %s8267_s22   ;;  %s6094_s21 = sphi %s6152_s21, %s8266_s21   ;;  %s6090_s20 = sphi %s6150_s20, %s8265_s20   ;;  %s6086_s19 = sphi %s6148_s19, %s8264_s19   ;;  %s6082_s18 = sphi %s6146_s18, %s8263_s18  }
   0xb   : > { %p33_p0 = scmp.ge.s32.totalorder %s32_s24, 3  ;;  %p75_p1 = scmp.ne.s32.totalorder %s6090_s20, %s6086_s19 }
   0xc   : > { %p76_p2 = scmp.eq.s32.totalorder %s6102_s23, 0  ;;  %p5778_p4 = scmp.lt.s32.totalorder %s6102_s23, 3 }
   0xd   : > { %s8269_s24 = smov (%p33_p0, %s32_s24), 0  ;;  %s224_s27 = sand.u32 1, %s6102_s23  }
   0xe   : > { %8246 = sst [smem:[#allocation15_spill]] %s8269_s24  ;;  %p77_p3 = por %p76_p2, %p75_p1 }
   0xf   : > { %s65_s26 = ssub.s32 %s6098_s22, %s8269_s24  ;;  %s6188_s28 = sand.u32 1, %s6090_s20  }
  0x10   : > { %p66_p5 = scmp.eq.s32.totalorder %s65_s26, 0  ;;  %s4123_s29 = sshll.u32 %s6098_s22, 10 }
  0x11   : > { %s8236_s6 = smul.u32 6144, %s6188_s28  ;;  %s8248_s1 = sld [smem:[#allocation17_spill]] }
  0x12   : > { %s6192_s30 = scalar_select %p66_p5, %s6090_s20, %s68_s25  }
  0x13   : > { %p6200_p6 = pnand %p5778_p4, %p77_p3  ;;  %s228_s11 = scalar_lea.vmem [#allocation5], %s8236_s6 }
  0x14   : > { %8247 = sst [smem:[#allocation16_spill]] %s6192_s30  ;;  %s235_s12 = sshll.u32 %s228_s11, 4  ;;  %s6206_s12 = int_to_ptr.vmem [resolvable:$true] %s235_s12 }
  0x15   : > { %s8249_s10 = scalar_select %p6200_p6, 1, 0 }
  0x16   : > { %s6208_s13 = scalar_lea.sflag [#allocation6], %s224_s27  ;;  %p6214_p8 = pneg %p6200_p6 }
  0x17   : > { %s6198_s9 = scalar_lea.hbm %s8248_s1, %s4123_s29  ;;  %s5901_s25 = scalar_lea.hbm %s8248_s1, 294912 }
  0x18   : > { %s5896_s14 = scalar_lea.hbm %s6198_s9, 98304  ;;  %p5902_p11 = scmp.lt.u32.totalorder %s6198_s9, %s8248_s1 }
  0x19   : > { %p5897_p7 = scmp.ne.s32.totalorder %s6198_s9, %s5896_s14  ;;  %p5903_p12 = scmp.lt.u32.totalorder %s5901_s25, %s5896_s14 }
  0x1a   : > { %s8250_s15 = scalar_select %p6214_p8, 1, 0 }
  0x1b   : > { %p5899_p9 = pnand %p6214_p8, %p5897_p7  ;;  %p5904_p13 = por %p5903_p12, %p5902_p11 }
  0x1c   : > { %p5905_p0 = scmp.lt.u32.totalorder %s5896_s14, %s6198_s9 }
  0x1d   : > { %p5900_p10 = pneg %p5899_p9 }
  0x1e   : > { %p5906_p1 = por %p5905_p0, %p5904_p13 }
  0x20   : > { %p5907_p2 = pnand %p5906_p1, %p5900_p10 }
  0x22   : > { %5910 = shalt.err (!%p5907_p2)
}
  0x23   : > { %s5911_s27 = scalar_lea.vmem %s6206_s12, 98304  ;;  %s6104_s7 = smov [#allocation5]  }
  0x24   : > { %p5912_p3 = scmp.ne.s32.totalorder %s6206_s12, %s5911_s27  ;;  %s5916_s8 = sshll.u32 %s6104_s7, 4  ;;  %s5917_s8 = int_to_ptr.vmem [resolvable:$false] %s5916_s8 }
  0x25   : > { %s5918_s11 = scalar_lea.vmem %s5917_s8, 196608  ;;  %p5919_p7 = scmp.lt.s32.totalorder %s6206_s12, %s5917_s8 }
  0x26   : > { %p5914_p4 = pnand %p5912_p3, %p6214_p8  ;;  %p5920_p9 = scmp.lt.s32.totalorder %s5918_s11, %s5911_s27 }
  0x28   : > { %p5915_p5 = pneg %p5914_p4  ;;  %p5921_p11 = por %p5920_p9, %p5919_p7 }
  0x2a   : > { %p5922_p12 = pnand %p5921_p11, %p5915_p5 }
  0x2c   : > { %5925 = shalt.err (!%p5922_p12)
}
  0x2d   : > { %s6105_s14 = smov 3072   ;;  %s6106_s16 = smov 1024  }
  0x2e   : > { %s6107_s17 = smov 64   ;;  %s6239_s25 = sadd.s32 4294967295, %s6102_s23  }
  0x2f   : > { %5770 = dma.hbm_to_vmem [thread:$0]  (!%p6200_p6), %s6198_s9, 98304, %s6206_s12, %s6208_s13, %s6105_s14, %s6106_s16, %s6107_s17  }
  0x30   : > { %p81_p10 = scmp.ne.s32.totalorder %s6086_s19, %s6082_s18  ;;  %p8238_p13 = scmp.eq.s32.totalorder %s6239_s25, 0 }
  0x31   : > { %p4103_p0 = scmp.ge.s32.totalorder %s6102_s23, 1  ;;  %p191_p1 = scmp.lt.s32.totalorder %s6102_s23, 4 }
  0x32   : > { %p6248_p2 = por %p8238_p13, %p81_p10  ;;  %s6108_s9 = smov [#allocation2]  }
  0x33   : > { %p6252_p3 = pnand %p4103_p0, %p191_p1  ;;  %s207_s12 = sshll.u32 %s6108_s9, 4  ;;  %s6256_s12 = int_to_ptr.vmem [resolvable:$true] %s207_s12 }
  0x34   : > { %s8251_s26 = scalar_select %p6248_p2, 1, 0 }
  0x35   : > { %s8252_s29 = scalar_select %p6252_p3, 1, 0 }
  0x36   : > { %p5763_p4 = pneg %p6252_p3  ;;  %s4108_s18 = sshll.u32 %s6188_s28, 3 }
  0x37   : > { %s4124_s27 = sshll.u32 %s6098_s22, 7  ;;  %s249_s16 = scalar_lea.vmem [#allocation7], %s4108_s18 }
  0x38   : > { %p6264_p5 = pnand %p5763_p4, %p8238_p13  ;;  %s6271_s14 = scalar_lea.hbm %s8232_s2, %s4124_s27 }
  0x39   : > { %s257_s17 = sshll.u32 %s249_s16, 4  ;;  %s5926_s1 = scalar_lea.hbm %s8230_s0, 1536  ;;  %s6273_s17 = int_to_ptr.vmem [resolvable:$true] %s257_s17 }
  0x3a   : > { %p5927_p7 = scmp.ne.s32.totalorder %s8230_s0, %s5926_s1  ;;  %p5928_p9 = pneg %p6264_p5 }
  0x3b   : > { %p5933_p10 = scmp.lt.u32.totalorder %s5926_s1, %s8230_s0 }
  0x3c   : > { %p5929_p11 = pnand %p5928_p9, %p5927_p7 }
  0x3e   : > { %p5930_p12 = pneg %p5929_p11 }
  0x40   : > { %p5935_p0 = pnand %p5933_p10, %p5930_p12 }
  0x42   : > { %5938 = shalt.err (!%p5935_p0)
}
  0x43   : > { %s5939_s18 = scalar_lea.vmem %s6256_s12, 1536  ;;  %p5947_p2 = scmp.lt.s32.totalorder %s6256_s12, %s6256_s12 }
  0x44   : > { %p5940_p1 = scmp.ne.s32.totalorder %s6256_s12, %s5939_s18  ;;  %p5948_p3 = scmp.lt.s32.totalorder %s5939_s18, %s5939_s18 }
  0x46   : > { %p5942_p4 = pnand %p5940_p1, %p5928_p9  ;;  %p5949_p6 = por %p5948_p3, %p5947_p2 }
  0x48   : > { %p5943_p13 = pneg %p5942_p4 }
  0x4a   : > { %p5950_p8 = pnand %p5949_p6, %p5943_p13 }
  0x4c   : > { %5953 = shalt.err (!%p5950_p8)
}
  0x4d   : > { %s6109_s24 = smov 768   ;;  %s6110_s1 = smov 48  }
  0x4e   : > { %5766 = dma.hbm_to_vmem [thread:$0]  (!%p6264_p5), %s8230_s0, 1536, %s6256_s12, [#allocation3], %s6109_s24, %s6109_s24, %s6110_s1  }
  0x4f   : > { %s5954_s27 = scalar_lea.hbm %s6271_s14, 128  ;;  %p8254_p8 = scmp.ne.s32.totalorder %s8250_s15, 0 }
  0x50   : > { %p5955_p6 = scmp.ne.s32.totalorder %s6271_s14, %s5954_s27  ;;  %s5959_s8 = scalar_lea.hbm %s8232_s2, 384 }
  0x51   : > { %p5960_p3 = scmp.lt.u32.totalorder %s6271_s14, %s8232_s2  ;;  %p5961_p7 = scmp.lt.u32.totalorder %s5959_s8, %s5954_s27 }
  0x52   : > { %p5957_p13 = pnand %p5955_p6, %p8254_p8  ;;  %p5963_p11 = scmp.lt.u32.totalorder %s5954_s27, %s6271_s14 }
  0x53   : > { %p5962_p9 = por %p5961_p7, %p5960_p3 }
  0x54   : > { %p5958_p2 = pneg %p5957_p13 }
  0x55   : > { %p5964_p12 = por %p5963_p11, %p5962_p9 }
  0x57   : > { %p5965_p10 = pnand %p5964_p12, %p5958_p2 }
  0x59   : > { %5968 = shalt.err (!%p5965_p10)
}
  0x5a   : > { %s5969_s12 = scalar_lea.vmem %s6273_s17, 128  ;;  %s6111_s7 = smov [#allocation7]  }
  0x5b   : > { %p5970_p5 = scmp.ne.s32.totalorder %s6273_s17, %s5969_s12  ;;  %s5974_s30 = sshll.u32 %s6111_s7, 4  ;;  %s5975_s30 = int_to_ptr.vmem [resolvable:$false] %s5974_s30 }
  0x5c   : > { %s5976_s6 = scalar_lea.vmem %s5975_s30, 256  ;;  %p5977_p4 = scmp.lt.s32.totalorder %s6273_s17, %s5975_s30 }
  0x5d   : > { %p5972_p0 = pnand %p5970_p5, %p8254_p8  ;;  %p5978_p6 = scmp.lt.s32.totalorder %s5976_s6, %s5969_s12 }
  0x5f   : > { %p5973_p1 = pneg %p5972_p0  ;;  %p5979_p13 = por %p5978_p6, %p5977_p4 }
  0x61   : > { %p5980_p3 = pnand %p5979_p13, %p5973_p1 }
  0x63   : > { %5983 = shalt.err (!%p5980_p3)
}
  0x64   : > { %p8255_p2 = scmp.ne.s32.totalorder %s8249_s10, 0  ;;  %s5747_s27 = smul.u32 98304, %s6098_s22 }
  0x65   : > { %s8256_s16 = smul.u32 6144, %s6188_s28  ;;  %s265_s7 = scalar_lea.sflag [#allocation9], %s6188_s28 }
  0x66   : > { %5773 = dma.hbm_to_vmem [thread:$0]  (!%p8255_p2), %s6271_s14, 128, %s6273_s17, %s6208_s13  }
  0x67   : > { %s268_s9 = scalar_lea.vmem [#allocation8], %s8256_s16  ;;  %s6329_s12 = scalar_lea.hbm %s8233_s3, %s5747_s27 }
  0x68   : > { %s276_s8 = sshll.u32 %s268_s9, 4  ;;  %s5984_s30 = scalar_lea.hbm %s6329_s12, 98304  ;;  %s6324_s8 = int_to_ptr.vmem [resolvable:$true] %s276_s8 }
  0x69   : > { %p5985_p7 = scmp.ne.s32.totalorder %s6329_s12, %s5984_s30  ;;  %s5989_s17 = scalar_lea.hbm %s8233_s3, 294912 }
  0x6a   : > { %p5990_p12 = scmp.lt.u32.totalorder %s6329_s12, %s8233_s3  ;;  %p5991_p10 = scmp.lt.u32.totalorder %s5989_s17, %s5984_s30 }
  0x6b   : > { %p5987_p9 = pnand %p5985_p7, %p8254_p8  ;;  %p5993_p0 = scmp.lt.u32.totalorder %s5984_s30, %s6329_s12 }
  0x6c   : > { %p5992_p5 = por %p5991_p10, %p5990_p12 }
  0x6d   : > { %p5988_p11 = pneg %p5987_p9 }
  0x6e   : > { %p5994_p1 = por %p5993_p0, %p5992_p5 }
  0x70   : > { %p5995_p4 = pnand %p5994_p1, %p5988_p11 }
  0x72   : > { %5998 = shalt.err (!%p5995_p4)
}
  0x73   : > { %s5999_s27 = scalar_lea.vmem %s6324_s8, 98304  ;;  %s6112_s9 = smov [#allocation8]  }
  0x74   : > { %p6000_p6 = scmp.ne.s32.totalorder %s6324_s8, %s5999_s27  ;;  %s6004_s11 = sshll.u32 %s6112_s9, 4  ;;  %s6005_s11 = int_to_ptr.vmem [resolvable:$false] %s6004_s11 }
  0x75   : > { %s6006_s18 = scalar_lea.vmem %s6005_s11, 196608  ;;  %p6007_p7 = scmp.lt.s32.totalorder %s6324_s8, %s6005_s11 }
  0x76   : > { %p6002_p13 = pnand %p6000_p6, %p8254_p8  ;;  %p6008_p9 = scmp.lt.s32.totalorder %s6006_s18, %s5999_s27 }
  0x78   : > { %p6003_p3 = pneg %p6002_p13  ;;  %p6009_p12 = por %p6008_p9, %p6007_p7 }
  0x7a   : > { %p6010_p10 = pnand %p6009_p12, %p6003_p3 }
  0x7c   : > { %6013 = shalt.err (!%p6010_p10)
}
  0x7d   : > { %5776 = dma.hbm_to_vmem [thread:$0]  (!%p8255_p2), %s6329_s12, 98304, %s6324_s8, %s265_s7, %s6109_s24, %s6109_s24, %s6110_s1  }
  0x7e   : > { %p8257_p8 = scmp.ne.s32.totalorder %s8252_s29, 0 }
  0x7f   : > { %p8258_p11 = scmp.eq.s32.totalorder (!%p8257_p8), %s6239_s25, 0 }
  0x80   : > { %288 = sbr.rel (%p8257_p8) target bundleno = 1405 (0x57d), region = 40 }
  0x87   : > { %6065 = dma.done.wait (%p8258_p11), [#allocation3], 1536   ;;  %p8259_p5 = pmov %p8258_p11 }
  0x88   : > { %s294_s10 = sand.u32 1, %s6239_s25   ;;  %s296_s15 = sand.u32 1, %s6086_s19  }
  0x89   : > { %6067 = vsyncadd (%p8259_p5), [#allocation3], 4294965760  ;;  %s5748_s30 = smul.u32 6144, %s296_s15  ;;  %s295_s13 = scalar_lea.sflag [#allocation6], %s294_s10 }
  0x8a   : > { %p8260_p0 = scmp.ne.s32.totalorder %s8251_s26, 0 }
  0x8b   : > { %s6366_s28 = scalar_lea.vmem [#allocation5], %s5748_s30 }
  0x8c   : > { %6069 = dma.done.wait (%p8260_p0), %s295_s13, 98432  }
  0x8d   : > { %6071 = vsyncadd (%p8260_p0), %s295_s13, 4294868864  ;;  %s4116_s29 = sshll.u32 %s296_s15, 3  ;;  %s313_s1 = scalar_lea.sflag [#allocation9], %s296_s15 }
  0x8e   : > { %s6372_s24 = scalar_lea.vmem [#allocation7], %s4116_s29  ;;  %s6374_s8 = scalar_lea.vmem [#allocation8], %s5748_s30 }
  0x8f   : > { %6073 = dma.done.wait (%p8260_p0), %s313_s1, 98304  }
  0x90   : > { %6075 = vsyncadd (%p8260_p0), %s313_s1, 4294868992  ;;  %v366_v0 = vld [vmem:[%s6366_s28 + $0x8] sm:$0xff]  ;;  %v365_v2 = vld [vmem:[%s6366_s28] sm:$0xff]  ;;  %p4117_p2 = scmp.ne.s32.totalorder %s6094_s21, 0 }
  0x91   : > { %v374_v1 = vld [vmem:[%s6366_s28 + $0x48] sm:$0xff]  ;;  %v373_v4 = vld [vmem:[%s6366_s28 + $0x40] sm:$0xff] }
  0x92   : > { %v4125_v3 = vpack.c.bf16 %v374_v1, %v366_v0  ;;  %v382_v5 = vld [vmem:[%s6366_s28 + $0x88] sm:$0xff]  ;;  %v4127_v7 = vpack.c.bf16 %v373_v4, %v365_v2  ;;  %v381_v9 = vld [vmem:[%s6366_s28 + $0x80] sm:$0xff] }
  0x93   : > { %v390_v6 = vld [vmem:[%s6366_s28 + $0xc8] sm:$0xff]  ;;  %v389_v10 = vld [vmem:[%s6366_s28 + $0xc0] sm:$0xff] }
  0x94   : > { %v4129_v8 = vpack.c.bf16 %v390_v6, %v382_v5  ;;  %v398_v11 = vld [vmem:[%s6366_s28 + $0x108] sm:$0xff]  ;;  %4126 = vmatprep.subr.bf16.mxu1 %v4125_v3  ;;  %v4131_v13 = vpack.c.bf16 %v389_v10, %v381_v9  ;;  %v397_v15 = vld [vmem:[%s6366_s28 + $0x100] sm:$0xff] }
  0x95   : > { %v406_v12 = vld [vmem:[%s6366_s28 + $0x148] sm:$0xff]  ;;  %4128 = vmatpush1.bf16.msra.mxu1 %v4127_v7  ;;  %v405_v16 = vld [vmem:[%s6366_s28 + $0x140] sm:$0xff] }
  0x96   : > { %4130 = vmatprep.subr.bf16.mxu1 %v4129_v8  ;;  %v4133_v14 = vpack.c.bf16 %v406_v12, %v398_v11  ;;  %v414_v17 = vld [vmem:[%s6366_s28 + $0x188] sm:$0xff]  ;;  %v4135_v19 = vpack.c.bf16 %v405_v16, %v397_v15  ;;  %v413_v21 = vld [vmem:[%s6366_s28 + $0x180] sm:$0xff] }
  0x97   : > { %v422_v18 = vld [vmem:[%s6366_s28 + $0x1c8] sm:$0xff]  ;;  %v421_v22 = vld [vmem:[%s6366_s28 + $0x1c0] sm:$0xff] }
  0x98   : > { %v4137_v20 = vpack.c.bf16 %v422_v18, %v414_v17  ;;  %v430_v23 = vld [vmem:[%s6366_s28 + $0x208] sm:$0xff]  ;;  %v4139_v25 = vpack.c.bf16 %v421_v22, %v413_v21  ;;  %v429_v27 = vld [vmem:[%s6366_s28 + $0x200] sm:$0xff] }
  0x99   : > { %4132 = vmatpush1.bf16.msra.mxu1 %v4131_v13  ;;  %v438_v24 = vld [vmem:[%s6366_s28 + $0x248] sm:$0xff]  ;;  %v437_v28 = vld [vmem:[%s6366_s28 + $0x240] sm:$0xff] }
  0x9a   : > { %4134 = vmatprep.subr.bf16.mxu1 %v4133_v14  ;;  %v4141_v26 = vpack.c.bf16 %v438_v24, %v430_v23  ;;  %v446_v29 = vld [vmem:[%s6366_s28 + $0x288] sm:$0xff]  ;;  %v4143_v33 = vpack.c.bf16 %v437_v28, %v429_v27  ;;  %v445_v34 = vld [vmem:[%s6366_s28 + $0x280] sm:$0xff] }
  0x9b   : > { %v454_v30 = vld [vmem:[%s6366_s28 + $0x2c8] sm:$0xff]  ;;  %v877_v36 = vld [vmem:[%s6366_s28 + $0x1000] sm:$0xff] }
  0x9c   : > { %v878_v31 = vld [vmem:[%s6366_s28 + $0x1008] sm:$0xff]  ;;  %v885_v37 = vld [vmem:[%s6366_s28 + $0x1040] sm:$0xff]  ;;  %v4145_v38 = vpack.c.bf16 %v454_v30, %v446_v29 }
  0x9d   : > { %4136 = vmatpush1.bf16.msra.mxu1 %v4135_v19  ;;  %v886_v32 = vld [vmem:[%s6366_s28 + $0x1048] sm:$0xff]  ;;  %v453_v39 = vld [vmem:[%s6366_s28 + $0x2c0] sm:$0xff]  ;;  %v4255_v40 = vpack.c.bf16 %v885_v37, %v877_v36 }
  0x9e   : > { %4138 = vmatprep.subr.bf16.mxu1 %v4137_v20  ;;  %v4253_v35 = vpack.c.bf16 %v886_v32, %v878_v31  ;;  %v894_v41 = vld [vmem:[%s6366_s28 + $0x1088] sm:$0xff]  ;;  %v893_v46 = vld [vmem:[%s6366_s28 + $0x1080] sm:$0xff]  ;;  %v4147_v48 = vpack.c.bf16 %v453_v39, %v445_v34 }
  0x9f   : > { %v902_v42 = vld [vmem:[%s6366_s28 + $0x10c8] sm:$0xff]  ;;  %v901_v47 = vld [vmem:[%s6366_s28 + $0x10c0] sm:$0xff] }
  0xa0   : > { %v462_v43 = vld [vmem:[%s6366_s28 + $0x308] sm:$0xff]  ;;  %4254 = vmatprep.subr.bf16.mxu0 %v4253_v35  ;;  %v4257_v45 = vpack.c.bf16 %v902_v42, %v894_v41  ;;  %v461_v49 = vld [vmem:[%s6366_s28 + $0x300] sm:$0xff]  ;;  %v4259_v50 = vpack.c.bf16 %v901_v47, %v893_v46 }
  0xa1   : > { %4140 = vmatpush1.bf16.msra.mxu1 %v4139_v25  ;;  %v470_v44 = vld [vmem:[%s6366_s28 + $0x348] sm:$0xff]  ;;  %4256 = vmatpush1.bf16.msra.mxu0 %v4255_v40  ;;  %v469_v54 = vld [vmem:[%s6366_s28 + $0x340] sm:$0xff] }
  0xa2   : > { %4142 = vmatprep.subr.bf16.mxu1 %v4141_v26  ;;  %4258 = vmatprep.subr.bf16.mxu0 %v4257_v45  ;;  %v910_v51 = vld [vmem:[%s6366_s28 + $0x1108] sm:$0xff]  ;;  %v4149_v53 = vpack.c.bf16 %v470_v44, %v462_v43  ;;  %v909_v56 = vld [vmem:[%s6366_s28 + $0x1100] sm:$0xff]  ;;  %v4151_v63 = vpack.c.bf16 %v469_v54, %v461_v49 }
  0xa3   : > { %v918_v52 = vld [vmem:[%s6366_s28 + $0x1148] sm:$0xff]  ;;  %v917_v57 = vld [vmem:[%s6366_s28 + $0x1140] sm:$0xff] }
  0xa4   : > { %v4261_v55 = vpack.c.bf16 %v918_v52, %v910_v51  ;;  %v478_v58 = vld [vmem:[%s6366_s28 + $0x388] sm:$0xff]  ;;  %v4263_v61 = vpack.c.bf16 %v917_v57, %v909_v56  ;;  %v477_v0 = vld [vmem:[%s6366_s28 + $0x380] sm:$0xff] }
  0xa5   : > { %4144 = vmatpush1.bf16.msra.mxu1 %v4143_v33  ;;  %v486_v59 = vld [vmem:[%s6366_s28 + $0x3c8] sm:$0xff]  ;;  %4260 = vmatpush1.bf16.msra.mxu0 %v4259_v50  ;;  %v925_v2 = vld [vmem:[%s6366_s28 + $0x1180] sm:$0xff] }
  0xa6   : > { %4146 = vmatprep.subr.bf16.mxu1 %v4145_v38  ;;  %v926_v60 = vld [vmem:[%s6366_s28 + $0x1188] sm:$0xff]  ;;  %4262 = vmatprep.subr.bf16.mxu0 %v4261_v55  ;;  %v933_v3 = vld [vmem:[%s6366_s28 + $0x11c0] sm:$0xff]  ;;  %v4153_v4 = vpack.c.bf16 %v486_v59, %v478_v58 }
  0xa7   : > { %v934_v62 = vld [vmem:[%s6366_s28 + $0x11c8] sm:$0xff]  ;;  %v485_v5 = vld [vmem:[%s6366_s28 + $0x3c0] sm:$0xff]  ;;  %v4267_v11 = vpack.c.bf16 %v933_v3, %v925_v2 }
  0xa8   : > { %v4265_v1 = vpack.c.bf16 %v934_v62, %v926_v60  ;;  %v942_v6 = vld [vmem:[%s6366_s28 + $0x1208] sm:$0xff]  ;;  %v493_v10 = vld [vmem:[%s6366_s28 + $0x400] sm:$0xff]  ;;  %v4155_v12 = vpack.c.bf16 %v485_v5, %v477_v0 }
  0xa9   : > { %4148 = vmatpush1.bf16.msra.mxu1 %v4147_v48  ;;  %v950_v7 = vld [vmem:[%s6366_s28 + $0x1248] sm:$0xff]  ;;  %4264 = vmatpush1.bf16.msra.mxu0 %v4263_v61  ;;  %v941_v14 = vld [vmem:[%s6366_s28 + $0x1200] sm:$0xff] }
  0xaa   : > { %4150 = vmatprep.subr.bf16.mxu1 %v4149_v53  ;;  %v494_v8 = vld [vmem:[%s6366_s28 + $0x408] sm:$0xff]  ;;  %4266 = vmatprep.subr.bf16.mxu0 %v4265_v1  ;;  %v4269_v13 = vpack.c.bf16 %v950_v7, %v942_v6  ;;  %v949_v15 = vld [vmem:[%s6366_s28 + $0x1240] sm:$0xff] }
  0xab   : > { %v502_v9 = vld [vmem:[%s6366_s28 + $0x448] sm:$0xff]  ;;  %v501_v18 = vld [vmem:[%s6366_s28 + $0x440] sm:$0xff]  ;;  %v4271_v23 = vpack.c.bf16 %v949_v15, %v941_v14 }
  0xac   : > { %v6435_v16 = vld [vmem:[#allocation2 + $0x8] sm:$0xff]  ;;  %v4157_v17 = vpack.c.bf16 %v502_v9, %v494_v8  ;;  %v4159_v24 = vpack.c.bf16 %v501_v18, %v493_v10  ;;  %v509_v25 = vld [vmem:[%s6366_s28 + $0x480] sm:$0xff] }
  0xad   : > { %4152 = vmatpush1.bf16.msra.mxu1 %v4151_v63  ;;  %v958_v19 = vld [vmem:[%s6366_s28 + $0x1288] sm:$0xff]  ;;  %1239 = vmatprep.mubr.f32.mxu1 %v6435_v16  ;;  %v957_v27 = vld [vmem:[%s6366_s28 + $0x1280] sm:$0xff] }
  0xae   : > { %4154 = vmatprep.subr.bf16.mxu1 %v4153_v4  ;;  %v966_v20 = vld [vmem:[%s6366_s28 + $0x12c8] sm:$0xff]  ;;  %4268 = vmatpush1.bf16.msra.mxu0 %v4267_v11  ;;  %v965_v28 = vld [vmem:[%s6366_s28 + $0x12c0] sm:$0xff] }
  0xaf   : > { %v510_v21 = vld [vmem:[%s6366_s28 + $0x488] sm:$0xff]  ;;  %4270 = vmatprep.subr.bf16.mxu0 %v4269_v13  ;;  %v4273_v26 = vpack.c.bf16 %v966_v20, %v958_v19  ;;  %v517_v30 = vld [vmem:[%s6366_s28 + $0x4c0] sm:$0xff]  ;;  %v4275_v35 = vpack.c.bf16 %v965_v28, %v957_v27 }
  0xb0   : > { %v518_v22 = vld [vmem:[%s6366_s28 + $0x4c8] sm:$0xff]  ;;  %v4163_v36 = vpack.c.bf16 %v517_v30, %v509_v25  ;;  %v525_v37 = vld [vmem:[%s6366_s28 + $0x500] sm:$0xff] }
  0xb1   : > { %4156 = vmatpush1.bf16.msra.mxu1 %v4155_v12  ;;  %v4161_v29 = vpack.c.bf16 %v518_v22, %v510_v21  ;;  %v974_v31 = vld [vmem:[%s6366_s28 + $0x1308] sm:$0xff]  ;;  %v973_v39 = vld [vmem:[%s6366_s28 + $0x1300] sm:$0xff] }
  0xb2   : > { %4158 = vmatprep.subr.bf16.mxu1 %v4157_v17  ;;  %v982_v32 = vld [vmem:[%s6366_s28 + $0x1348] sm:$0xff]  ;;  %4272 = vmatpush1.bf16.msra.mxu0 %v4271_v23  ;;  %v981_v40 = vld [vmem:[%s6366_s28 + $0x1340] sm:$0xff] }
  0xb3   : > { %v526_v33 = vld [vmem:[%s6366_s28 + $0x508] sm:$0xff]  ;;  %4274 = vmatprep.subr.bf16.mxu0 %v4273_v26  ;;  %v4277_v38 = vpack.c.bf16 %v982_v32, %v974_v31  ;;  %v533_v42 = vld [vmem:[%s6366_s28 + $0x540] sm:$0xff]  ;;  %v4279_v47 = vpack.c.bf16 %v981_v40, %v973_v39 }
  0xb4   : > { %v534_v34 = vld [vmem:[%s6366_s28 + $0x548] sm:$0xff]  ;;  %v4167_v48 = vpack.c.bf16 %v533_v42, %v525_v37  ;;  %v541_v49 = vld [vmem:[%s6366_s28 + $0x580] sm:$0xff] }
  0xb5   : > { %4160 = vmatpush1.bf16.msra.mxu1 %v4159_v24  ;;  %v4165_v41 = vpack.c.bf16 %v534_v34, %v526_v33  ;;  %v990_v43 = vld [vmem:[%s6366_s28 + $0x1388] sm:$0xff]  ;;  %v989_v51 = vld [vmem:[%s6366_s28 + $0x1380] sm:$0xff] }
  0xb6   : > { %4162 = vmatprep.subr.bf16.mxu1 %v4161_v29  ;;  %v998_v44 = vld [vmem:[%s6366_s28 + $0x13c8] sm:$0xff]  ;;  %4276 = vmatpush1.bf16.msra.mxu0 %v4275_v35  ;;  %v997_v52 = vld [vmem:[%s6366_s28 + $0x13c0] sm:$0xff] }
  0xb7   : > { %v542_v45 = vld [vmem:[%s6366_s28 + $0x588] sm:$0xff]  ;;  %4278 = vmatprep.subr.bf16.mxu0 %v4277_v38  ;;  %v4281_v50 = vpack.c.bf16 %v998_v44, %v990_v43  ;;  %v549_v54 = vld [vmem:[%s6366_s28 + $0x5c0] sm:$0xff]  ;;  %v4283_v59 = vpack.c.bf16 %v997_v52, %v989_v51 }
  0xb8   : > { %v550_v46 = vld [vmem:[%s6366_s28 + $0x5c8] sm:$0xff]  ;;  %v4171_v60 = vpack.c.bf16 %v549_v54, %v541_v49  ;;  %v557_v61 = vld [vmem:[%s6366_s28 + $0x600] sm:$0xff] }
  0xb9   : > { %4164 = vmatpush1.bf16.msra.mxu1 %v4163_v36  ;;  %v4169_v53 = vpack.c.bf16 %v550_v46, %v542_v45  ;;  %v1006_v55 = vld [vmem:[%s6366_s28 + $0x1408] sm:$0xff]  ;;  %v1005_v63 = vld [vmem:[%s6366_s28 + $0x1400] sm:$0xff] }
  0xba   : > { %4166 = vmatprep.subr.bf16.mxu1 %v4165_v41  ;;  %v1014_v56 = vld [vmem:[%s6366_s28 + $0x1448] sm:$0xff]  ;;  %4280 = vmatpush1.bf16.msra.mxu0 %v4279_v47  ;;  %v1013_v0 = vld [vmem:[%s6366_s28 + $0x1440] sm:$0xff] }
  0xbb   : > { %v558_v57 = vld [vmem:[%s6366_s28 + $0x608] sm:$0xff]  ;;  %4282 = vmatprep.subr.bf16.mxu0 %v4281_v50  ;;  %v4285_v62 = vpack.c.bf16 %v1014_v56, %v1006_v55  ;;  %v565_v2 = vld [vmem:[%s6366_s28 + $0x640] sm:$0xff]  ;;  %v4287_v7 = vpack.c.bf16 %v1013_v0, %v1005_v63 }
  0xbc   : > { %v566_v58 = vld [vmem:[%s6366_s28 + $0x648] sm:$0xff]  ;;  %v4175_v8 = vpack.c.bf16 %v565_v2, %v557_v61  ;;  %v573_v9 = vld [vmem:[%s6366_s28 + $0x680] sm:$0xff] }
  0xbd   : > { %4168 = vmatpush1.bf16.msra.mxu1 %v4167_v48  ;;  %v4173_v1 = vpack.c.bf16 %v566_v58, %v558_v57  ;;  %v1022_v3 = vld [vmem:[%s6366_s28 + $0x1488] sm:$0xff]  ;;  %v1021_v11 = vld [vmem:[%s6366_s28 + $0x1480] sm:$0xff] }
  0xbe   : > { %4170 = vmatprep.subr.bf16.mxu1 %v4169_v53  ;;  %v1030_v4 = vld [vmem:[%s6366_s28 + $0x14c8] sm:$0xff]  ;;  %4284 = vmatpush1.bf16.msra.mxu0 %v4283_v59  ;;  %v1029_v12 = vld [vmem:[%s6366_s28 + $0x14c0] sm:$0xff] }
  0xbf   : > { %v574_v5 = vld [vmem:[%s6366_s28 + $0x688] sm:$0xff]  ;;  %4286 = vmatprep.subr.bf16.mxu0 %v4285_v62  ;;  %v4289_v10 = vpack.c.bf16 %v1030_v4, %v1022_v3  ;;  %v581_v14 = vld [vmem:[%s6366_s28 + $0x6c0] sm:$0xff]  ;;  %v4291_v20 = vpack.c.bf16 %v1029_v12, %v1021_v11 }
  0xc0   : > { %v582_v6 = vld [vmem:[%s6366_s28 + $0x6c8] sm:$0xff]  ;;  %v4179_v21 = vpack.c.bf16 %v581_v14, %v573_v9  ;;  %v589_v22 = vld [vmem:[%s6366_s28 + $0x700] sm:$0xff] }
  0xc1   : > { %4172 = vmatpush1.bf16.msra.mxu1 %v4171_v60  ;;  %v4177_v13 = vpack.c.bf16 %v582_v6, %v574_v5  ;;  %v1038_v15 = vld [vmem:[%s6366_s28 + $0x1508] sm:$0xff]  ;;  %v1037_v24 = vld [vmem:[%s6366_s28 + $0x1500] sm:$0xff] }
  0xc2   : > { %4174 = vmatprep.subr.bf16.mxu1 %v4173_v1  ;;  %v1046_v17 = vld [vmem:[%s6366_s28 + $0x1548] sm:$0xff]  ;;  %4288 = vmatpush1.bf16.msra.mxu0 %v4287_v7  ;;  %v1045_v25 = vld [vmem:[%s6366_s28 + $0x1540] sm:$0xff] }
  0xc3   : > { %v590_v18 = vld [vmem:[%s6366_s28 + $0x708] sm:$0xff]  ;;  %4290 = vmatprep.subr.bf16.mxu0 %v4289_v10  ;;  %v4293_v23 = vpack.c.bf16 %v1046_v17, %v1038_v15  ;;  %v597_v27 = vld [vmem:[%s6366_s28 + $0x740] sm:$0xff]  ;;  %v4295_v32 = vpack.c.bf16 %v1045_v25, %v1037_v24  ;;  %v6524_v17 = vld [vmem:[#allocation2 + $0x38] sm:$0xff] }
  0xc4   : > { %v598_v19 = vld [vmem:[%s6366_s28 + $0x748] sm:$0xff]  ;;  %v4183_v33 = vpack.c.bf16 %v597_v27, %v589_v22  ;;  %v605_v34 = vld [vmem:[%s6366_s28 + $0x780] sm:$0xff]  ;;  %v6535_v27 = vld [vmem:[#allocation2 + $0x18] sm:$0xff] }
  0xc5   : > { %4176 = vmatpush1.bf16.msra.mxu1 %v4175_v8  ;;  %v4181_v26 = vpack.c.bf16 %v598_v19, %v590_v18  ;;  %v1054_v28 = vld [vmem:[%s6366_s28 + $0x1588] sm:$0xff]  ;;  %v1053_v36 = vld [vmem:[%s6366_s28 + $0x1580] sm:$0xff] }
  0xc6   : > { %4178 = vmatprep.subr.bf16.mxu1 %v4177_v13  ;;  %v1062_v29 = vld [vmem:[%s6366_s28 + $0x15c8] sm:$0xff]  ;;  %4292 = vmatpush1.bf16.msra.mxu0 %v4291_v20  ;;  %v1061_v37 = vld [vmem:[%s6366_s28 + $0x15c0] sm:$0xff]  ;;  %v6529_v20 = vld [vmem:[#allocation2 + $0x30] sm:$0xff] }
  0xc7   : > { %v606_v30 = vld [vmem:[%s6366_s28 + $0x788] sm:$0xff]  ;;  %4294 = vmatprep.subr.bf16.mxu0 %v4293_v23  ;;  %v4297_v35 = vpack.c.bf16 %v1062_v29, %v1054_v28  ;;  %v613_v39 = vld [vmem:[%s6366_s28 + $0x7c0] sm:$0xff]  ;;  %v4299_v45 = vpack.c.bf16 %v1061_v37, %v1053_v36 }
  0xc8   : > { %v614_v31 = vld [vmem:[%s6366_s28 + $0x7c8] sm:$0xff]  ;;  %v4187_v46 = vpack.c.bf16 %v613_v39, %v605_v34  ;;  %v621_v47 = vld [vmem:[%s6366_s28 + $0x800] sm:$0xff] }
  0xc9   : > { %4180 = vmatpush1.bf16.msra.mxu1 %v4179_v21  ;;  %v4185_v38 = vpack.c.bf16 %v614_v31, %v606_v30  ;;  %v1070_v40 = vld [vmem:[%s6366_s28 + $0x1608] sm:$0xff]  ;;  %v1069_v49 = vld [vmem:[%s6366_s28 + $0x1600] sm:$0xff] }
  0xca   : > { %4182 = vmatprep.subr.bf16.mxu1 %v4181_v26  ;;  %v1078_v41 = vld [vmem:[%s6366_s28 + $0x1648] sm:$0xff]  ;;  %4296 = vmatpush1.bf16.msra.mxu0 %v4295_v32  ;;  %v1077_v50 = vld [vmem:[%s6366_s28 + $0x1640] sm:$0xff] }
  0xcb   : > { %v622_v42 = vld [vmem:[%s6366_s28 + $0x808] sm:$0xff]  ;;  %4298 = vmatprep.subr.bf16.mxu0 %v4297_v35  ;;  %v4301_v48 = vpack.c.bf16 %v1078_v41, %v1070_v40  ;;  %v629_v52 = vld [vmem:[%s6366_s28 + $0x840] sm:$0xff]  ;;  %v4303_v58 = vpack.c.bf16 %v1077_v50, %v1069_v49 }
  0xcc   : > { %v630_v43 = vld [vmem:[%s6366_s28 + $0x848] sm:$0xff]  ;;  %v6507_v57 = vld [vmem:[#allocation2] sm:$0xff]  ;;  %v4191_v59 = vpack.c.bf16 %v629_v52, %v621_v47 }
  0xcd   : > { %v358_v44 = vld [vmem:[#allocation2 + $0x28] sm:$0xff]  ;;  %4184 = vmatpush1.bf16.msra.mxu1 %v4183_v33  ;;  %v4189_v51 = vpack.c.bf16 %v630_v43, %v622_v42  ;;  %v637_v60 = vld [vmem:[%s6366_s28 + $0x880] sm:$0xff] }
  0xce   : > { %1393 = vmatprep.mubr.f32.mxu0 %v358_v44  ;;  %4186 = vmatprep.subr.bf16.mxu1 %v4185_v38  ;;  %v1086_v53 = vld [vmem:[%s6366_s28 + $0x1688] sm:$0xff]  ;;  %v1085_v62 = vld [vmem:[%s6366_s28 + $0x1680] sm:$0xff] }
  0xcf   : > { %v1094_v54 = vld [vmem:[%s6366_s28 + $0x16c8] sm:$0xff]  ;;  %4300 = vmatpush1.bf16.msra.mxu0 %v4299_v45  ;;  %v1093_v63 = vld [vmem:[%s6366_s28 + $0x16c0] sm:$0xff] }
  0xd0   : > { %v638_v55 = vld [vmem:[%s6366_s28 + $0x888] sm:$0xff]  ;;  %4302 = vmatprep.subr.bf16.mxu0 %v4301_v48  ;;  %v4305_v61 = vpack.c.bf16 %v1094_v54, %v1086_v53  ;;  %v645_v1 = vld [vmem:[%s6366_s28 + $0x8c0] sm:$0xff]  ;;  %v4307_v7 = vpack.c.bf16 %v1093_v63, %v1085_v62  ;;  %v364_v53 = vld [vmem:[#allocation2 + $0x58] sm:$0xff] }
  0xd1   : > { %v646_v56 = vld [vmem:[%s6366_s28 + $0x8c8] sm:$0xff]  ;;  %4188 = vmatpush1.bf16.msra.mxu1 %v4187_v46  ;;  %v653_v6 = vld [vmem:[%s6366_s28 + $0x900] sm:$0xff]  ;;  %v4195_v8 = vpack.c.bf16 %v645_v1, %v637_v60  ;;  %v363_v62 = vld [vmem:[#allocation2 + $0x50] sm:$0xff] }
  0xd2   : > { %4190 = vmatprep.subr.bf16.mxu1 %v4189_v51  ;;  %v4193_v0 = vpack.c.bf16 %v646_v56, %v638_v55  ;;  %v1102_v2 = vld [vmem:[%s6366_s28 + $0x1708] sm:$0xff]  ;;  %v661_v9 = vld [vmem:[%s6366_s28 + $0x940] sm:$0xff] }
  0xd3   : > { %v1110_v3 = vld [vmem:[%s6366_s28 + $0x1748] sm:$0xff]  ;;  %4304 = vmatpush1.bf16.msra.mxu0 %v4303_v58  ;;  %v1101_v11 = vld [vmem:[%s6366_s28 + $0x1700] sm:$0xff]  ;;  %v4199_v23 = vpack.c.bf16 %v661_v9, %v653_v6 }
  0xd4   : > { %v654_v4 = vld [vmem:[%s6366_s28 + $0x908] sm:$0xff]  ;;  %1240 = vmatmul.mubr.f32.vlgmr.msra.gmra.mrb[0].mxu1 %v6507_v57  ;;  %4306 = vmatprep.subr.bf16.mxu0 %v4305_v61  ;;  %v4309_v10 = vpack.c.bf16 %v1110_v3, %v1102_v2  ;;  %v1109_v12 = vld [vmem:[%s6366_s28 + $0x1740] sm:$0xff] }
  0xd5   : > { %v662_v5 = vld [vmem:[%s6366_s28 + $0x948] sm:$0xff]  ;;  %4192 = vmatpush1.bf16.msra.mxu1 %v4191_v59  ;;  %1245 = vmatprep.mubr.f32.mxu1 %v6524_v17  ;;  %v669_v21 = vld [vmem:[%s6366_s28 + $0x980] sm:$0xff]  ;;  %v4311_v22 = vpack.c.bf16 %v1109_v12, %v1101_v11 }
  0xd6   : > { %4194 = vmatprep.subr.bf16.mxu1 %v4193_v0  ;;  %v4197_v13 = vpack.c.bf16 %v662_v5, %v654_v4  ;;  %v1118_v14 = vld [vmem:[%s6366_s28 + $0x1788] sm:$0xff]  ;;  %v1117_v25 = vld [vmem:[%s6366_s28 + $0x1780] sm:$0xff] }
  0xd7   : > { %v1126_v15 = vld [vmem:[%s6366_s28 + $0x17c8] sm:$0xff]  ;;  %4308 = vmatpush1.bf16.msra.mxu0 %v4307_v7  ;;  %v1125_v26 = vld [vmem:[%s6366_s28 + $0x17c0] sm:$0xff] }
  0xd8   : > { %v670_v18 = vld [vmem:[%s6366_s28 + $0x988] sm:$0xff]  ;;  %1246 = vmatmul.mubr.f32.gmra.mrb[2].mxu1 %v6529_v20  ;;  %4310 = vmatprep.subr.bf16.mxu0 %v4309_v10  ;;  %v4313_v24 = vpack.c.bf16 %v1126_v15, %v1118_v14  ;;  %v677_v29 = vld [vmem:[%s6366_s28 + $0x9c0] sm:$0xff]  ;;  %v4315_v34 = vpack.c.bf16 %v1125_v26, %v1117_v25 }
  0xd9   : > { %v678_v19 = vld [vmem:[%s6366_s28 + $0x9c8] sm:$0xff]  ;;  %4196 = vmatpush1.bf16.msra.mxu1 %v4195_v8  ;;  %1316 = vmatprep.mubr.f32.mxu1 %v6535_v27  ;;  %v4203_v35 = vpack.c.bf16 %v677_v29, %v669_v21  ;;  %v685_v36 = vld [vmem:[%s6366_s28 + $0xa00] sm:$0xff] }
  0xda   : > { %4198 = vmatprep.subr.bf16.mxu1 %v4197_v13  ;;  %v4201_v28 = vpack.c.bf16 %v678_v19, %v670_v18  ;;  %v370_v30 = vld [vmem:[%s6366_s28 + $0x28] sm:$0xff]  ;;  %v369_v38 = vld [vmem:[%s6366_s28 + $0x20] sm:$0xff] }
  0xdb   : > { %v378_v31 = vld [vmem:[%s6366_s28 + $0x68] sm:$0xff]  ;;  %4312 = vmatpush1.bf16.msra.mxu0 %v4311_v22  ;;  %v377_v39 = vld [vmem:[%s6366_s28 + $0x60] sm:$0xff] }
  0xdc   : > { %v686_v32 = vld [vmem:[%s6366_s28 + $0xa08] sm:$0xff]  ;;  %4314 = vmatprep.subr.bf16.mxu0 %v4313_v24  ;;  %v4509_v37 = vpack.c.bf16 %v378_v31, %v370_v30  ;;  %v693_v41 = vld [vmem:[%s6366_s28 + $0xa40] sm:$0xff]  ;;  %v4511_v48 = vpack.c.bf16 %v377_v39, %v369_v38 }
  0xdd   : > { %v694_v33 = vld [vmem:[%s6366_s28 + $0xa48] sm:$0xff]  ;;  %4200 = vmatpush1.bf16.msra.mxu1 %v4199_v23  ;;  %v701_v46 = vld [vmem:[%s6366_s28 + $0xa80] sm:$0xff]  ;;  %v4207_v49 = vpack.c.bf16 %v693_v41, %v685_v36 }
  0xde   : > { %4202 = vmatprep.subr.bf16.mxu1 %v4201_v28  ;;  %v4205_v40 = vpack.c.bf16 %v694_v33, %v686_v32  ;;  %v386_v42 = vld [vmem:[%s6366_s28 + $0xa8] sm:$0xff]  ;;  %v357_v47 = vld [vmem:[#allocation2 + $0x20] sm:$0xff] }
  0xdf   : > { %v394_v43 = vld [vmem:[%s6366_s28 + $0xe8] sm:$0xff]  ;;  %4316 = vmatpush1.bf16.msra.mxu0 %v4315_v34  ;;  %v385_v51 = vld [vmem:[%s6366_s28 + $0xa0] sm:$0xff] }
  0xe0   : > { %v702_v44 = vld [vmem:[%s6366_s28 + $0xa88] sm:$0xff]  ;;  %4510 = vmatprep.subr.bf16.mxu0 %v4509_v37  ;;  %v4513_v50 = vpack.c.bf16 %v394_v43, %v386_v42  ;;  %v393_v52 = vld [vmem:[%s6366_s28 + $0xe0] sm:$0xff] }
  0xe1   : > { %v710_v45 = vld [vmem:[%s6366_s28 + $0xac8] sm:$0xff]  ;;  %4204 = vmatpush1.bf16.msra.mxu1 %v4203_v35  ;;  %v709_v55 = vld [vmem:[%s6366_s28 + $0xac0] sm:$0xff]  ;;  %v4515_v61 = vpack.c.bf16 %v393_v52, %v385_v51 }
  0xe2   : > { %4206 = vmatprep.subr.bf16.mxu1 %v4205_v40  ;;  %v4209_v54 = vpack.c.bf16 %v710_v45, %v702_v44  ;;  %v402_v56 = vld [vmem:[%s6366_s28 + $0x128] sm:$0xff]  ;;  %1394 = vmatmul.mubr.f32.vlgmr.msra.gmra.mrb[0].mxu0 %v357_v47  ;;  %v4211_v63 = vpack.c.bf16 %v709_v55, %v701_v46  ;;  %v717_v0 = vld [vmem:[%s6366_s28 + $0xb00] sm:$0xff] }
  0xe3   : > { %v410_v58 = vld [vmem:[%s6366_s28 + $0x168] sm:$0xff]  ;;  %4512 = vmatpush1.bf16.msra.mxu0 %v4511_v48  ;;  %1399 = vmatprep.mubr.f32.mxu0 %v364_v53  ;;  %v401_v2 = vld [vmem:[%s6366_s28 + $0x120] sm:$0xff] }
  0xe4   : > { %v718_v59 = vld [vmem:[%s6366_s28 + $0xb08] sm:$0xff]  ;;  %4514 = vmatprep.subr.bf16.mxu0 %v4513_v50  ;;  %v4517_v1 = vpack.c.bf16 %v410_v58, %v402_v56  ;;  %v409_v3 = vld [vmem:[%s6366_s28 + $0x160] sm:$0xff] }
  0xe5   : > { %v726_v60 = vld [vmem:[%s6366_s28 + $0xb48] sm:$0xff]  ;;  %4208 = vmatpush1.bf16.msra.mxu1 %v4207_v49  ;;  %v725_v5 = vld [vmem:[%s6366_s28 + $0xb40] sm:$0xff]  ;;  %v4519_v10 = vpack.c.bf16 %v409_v3, %v401_v2 }
  0xe6   : > { %4210 = vmatprep.subr.bf16.mxu1 %v4209_v54  ;;  %v4213_v4 = vpack.c.bf16 %v726_v60, %v718_v59  ;;  %v418_v6 = vld [vmem:[%s6366_s28 + $0x1a8] sm:$0xff]  ;;  %1400 = vmatmul.mubr.f32.gmra.mrb[2].mxu0 %v363_v62  ;;  %v4215_v11 = vpack.c.bf16 %v725_v5, %v717_v0  ;;  %v733_v12 = vld [vmem:[%s6366_s28 + $0xb80] sm:$0xff] }
  0xe7   : > { %v426_v7 = vld [vmem:[%s6366_s28 + $0x1e8] sm:$0xff]  ;;  %4516 = vmatpush1.bf16.msra.mxu0 %v4515_v61  ;;  %1701 = vmatprep.mubr.f32.mxu0 %v6435_v16  ;;  %v417_v14 = vld [vmem:[%s6366_s28 + $0x1a0] sm:$0xff] }
  0xe8   : > { %v734_v8 = vld [vmem:[%s6366_s28 + $0xb88] sm:$0xff]  ;;  %4518 = vmatprep.subr.bf16.mxu0 %v4517_v1  ;;  %v4521_v13 = vpack.c.bf16 %v426_v7, %v418_v6  ;;  %v425_v15 = vld [vmem:[%s6366_s28 + $0x1e0] sm:$0xff] }
  0xe9   : > { %v742_v9 = vld [vmem:[%s6366_s28 + $0xbc8] sm:$0xff]  ;;  %4212 = vmatpush1.bf16.msra.mxu1 %v4211_v63  ;;  %v741_v19 = vld [vmem:[%s6366_s28 + $0xbc0] sm:$0xff]  ;;  %v4523_v25 = vpack.c.bf16 %v425_v15, %v417_v14 }
  0xea   : > { %4214 = vmatprep.subr.bf16.mxu1 %v4213_v4  ;;  %v4217_v18 = vpack.c.bf16 %v742_v9, %v734_v8  ;;  %v434_v21 = vld [vmem:[%s6366_s28 + $0x228] sm:$0xff]  ;;  %v4219_v26 = vpack.c.bf16 %v741_v19, %v733_v12  ;;  %v749_v28 = vld [vmem:[%s6366_s28 + $0xc00] sm:$0xff] }
  0xeb   : > { %v442_v22 = vld [vmem:[%s6366_s28 + $0x268] sm:$0xff]  ;;  %4520 = vmatpush1.bf16.msra.mxu0 %v4519_v10  ;;  %v433_v30 = vld [vmem:[%s6366_s28 + $0x220] sm:$0xff] }
  0xec   : > { %v750_v23 = vld [vmem:[%s6366_s28 + $0xc08] sm:$0xff]  ;;  %4522 = vmatprep.subr.bf16.mxu0 %v4521_v13  ;;  %v4525_v29 = vpack.c.bf16 %v442_v22, %v434_v21  ;;  %v441_v31 = vld [vmem:[%s6366_s28 + $0x260] sm:$0xff] }
  0xed   : > { %v758_v24 = vld [vmem:[%s6366_s28 + $0xc48] sm:$0xff]  ;;  %4216 = vmatpush1.bf16.msra.mxu1 %v4215_v11  ;;  %v757_v33 = vld [vmem:[%s6366_s28 + $0xc40] sm:$0xff]  ;;  %v4527_v38 = vpack.c.bf16 %v441_v31, %v433_v30 }
  0xee   : > { %4218 = vmatprep.subr.bf16.mxu1 %v4217_v18  ;;  %v4221_v32 = vpack.c.bf16 %v758_v24, %v750_v23  ;;  %v450_v34 = vld [vmem:[%s6366_s28 + $0x2a8] sm:$0xff]  ;;  %v4223_v39 = vpack.c.bf16 %v757_v33, %v749_v28  ;;  %v765_v40 = vld [vmem:[%s6366_s28 + $0xc80] sm:$0xff] }
  0xef   : > { %v458_v35 = vld [vmem:[%s6366_s28 + $0x2e8] sm:$0xff]  ;;  %4524 = vmatpush1.bf16.msra.mxu0 %v4523_v25  ;;  %v449_v42 = vld [vmem:[%s6366_s28 + $0x2a0] sm:$0xff] }
  0xf0   : > { %v766_v36 = vld [vmem:[%s6366_s28 + $0xc88] sm:$0xff]  ;;  %4526 = vmatprep.subr.bf16.mxu0 %v4525_v29  ;;  %v4529_v41 = vpack.c.bf16 %v458_v35, %v450_v34  ;;  %v457_v43 = vld [vmem:[%s6366_s28 + $0x2e0] sm:$0xff] }
  0xf1   : > { %v774_v37 = vld [vmem:[%s6366_s28 + $0xcc8] sm:$0xff]  ;;  %4220 = vmatpush1.bf16.msra.mxu1 %v4219_v26  ;;  %v773_v45 = vld [vmem:[%s6366_s28 + $0xcc0] sm:$0xff]  ;;  %v4531_v50 = vpack.c.bf16 %v457_v43, %v449_v42 }
  0xf2   : > { %4222 = vmatprep.subr.bf16.mxu1 %v4221_v32  ;;  %v4225_v44 = vpack.c.bf16 %v774_v37, %v766_v36  ;;  %v466_v46 = vld [vmem:[%s6366_s28 + $0x328] sm:$0xff]  ;;  %v4227_v51 = vpack.c.bf16 %v773_v45, %v765_v40  ;;  %v781_v52 = vld [vmem:[%s6366_s28 + $0xd00] sm:$0xff] }
  0xf3   : > { %v474_v47 = vld [vmem:[%s6366_s28 + $0x368] sm:$0xff]  ;;  %4528 = vmatpush1.bf16.msra.mxu0 %v4527_v38  ;;  %v465_v54 = vld [vmem:[%s6366_s28 + $0x320] sm:$0xff] }
  0xf4   : > { %v782_v48 = vld [vmem:[%s6366_s28 + $0xd08] sm:$0xff]  ;;  %4530 = vmatprep.subr.bf16.mxu0 %v4529_v41  ;;  %v4533_v53 = vpack.c.bf16 %v474_v47, %v466_v46  ;;  %v473_v55 = vld [vmem:[%s6366_s28 + $0x360] sm:$0xff] }
  0xf5   : > { %v790_v49 = vld [vmem:[%s6366_s28 + $0xd48] sm:$0xff]  ;;  %4224 = vmatpush1.bf16.msra.mxu1 %v4223_v39  ;;  %v789_v58 = vld [vmem:[%s6366_s28 + $0xd40] sm:$0xff]  ;;  %v4535_v63 = vpack.c.bf16 %v473_v55, %v465_v54 }
  0xf6   : > { %4226 = vmatprep.subr.bf16.mxu1 %v4225_v44  ;;  %v4229_v56 = vpack.c.bf16 %v790_v49, %v782_v48  ;;  %v482_v59 = vld [vmem:[%s6366_s28 + $0x3a8] sm:$0xff]  ;;  %v4231_v0 = vpack.c.bf16 %v789_v58, %v781_v52  ;;  %v797_v1 = vld [vmem:[%s6366_s28 + $0xd80] sm:$0xff] }
  0xf7   : > { %v490_v60 = vld [vmem:[%s6366_s28 + $0x3e8] sm:$0xff]  ;;  %4532 = vmatpush1.bf16.msra.mxu0 %v4531_v50  ;;  %v481_v3 = vld [vmem:[%s6366_s28 + $0x3a0] sm:$0xff] }
  0xf8   : > { %v798_v61 = vld [vmem:[%s6366_s28 + $0xd88] sm:$0xff]  ;;  %4534 = vmatprep.subr.bf16.mxu0 %v4533_v53  ;;  %v4537_v2 = vpack.c.bf16 %v490_v60, %v482_v59  ;;  %v489_v4 = vld [vmem:[%s6366_s28 + $0x3e0] sm:$0xff] }
  0xf9   : > { %v806_v62 = vld [vmem:[%s6366_s28 + $0xdc8] sm:$0xff]  ;;  %4228 = vmatpush1.bf16.msra.mxu1 %v4227_v51  ;;  %v805_v6 = vld [vmem:[%s6366_s28 + $0xdc0] sm:$0xff]  ;;  %v4539_v11 = vpack.c.bf16 %v489_v4, %v481_v3 }
  0xfa   : > { %4230 = vmatprep.subr.bf16.mxu1 %v4229_v56  ;;  %v4233_v5 = vpack.c.bf16 %v806_v62, %v798_v61  ;;  %v498_v7 = vld [vmem:[%s6366_s28 + $0x428] sm:$0xff]  ;;  %v4235_v12 = vpack.c.bf16 %v805_v6, %v797_v1  ;;  %v813_v13 = vld [vmem:[%s6366_s28 + $0xe00] sm:$0xff]  ;;  %v368_v62 = vld [vmem:[%s6366_s28 + $0x18] sm:$0xff] }
  0xfb   : > { %v506_v8 = vld [vmem:[%s6366_s28 + $0x468] sm:$0xff]  ;;  %4536 = vmatpush1.bf16.msra.mxu0 %v4535_v63  ;;  %v497_v15 = vld [vmem:[%s6366_s28 + $0x420] sm:$0xff]  ;;  %v376_v63 = vld [vmem:[%s6366_s28 + $0x58] sm:$0xff] }
  0xfc   : > { %v814_v9 = vld [vmem:[%s6366_s28 + $0xe08] sm:$0xff]  ;;  %4538 = vmatprep.subr.bf16.mxu0 %v4537_v2  ;;  %v4541_v14 = vpack.c.bf16 %v506_v8, %v498_v7  ;;  %v505_v18 = vld [vmem:[%s6366_s28 + $0x460] sm:$0xff]  ;;  %v367_v6 = vld [vmem:[%s6366_s28 + $0x10] sm:$0xff] }
  0xfd   : > { %v822_v10 = vld [vmem:[%s6366_s28 + $0xe48] sm:$0xff]  ;;  %4232 = vmatpush1.bf16.msra.mxu1 %v4231_v0  ;;  %v821_v21 = vld [vmem:[%s6366_s28 + $0xe40] sm:$0xff]  ;;  %v4543_v26 = vpack.c.bf16 %v505_v18, %v497_v15  ;;  %v375_v7 = vld [vmem:[%s6366_s28 + $0x50] sm:$0xff] }
  0xfe   : > { %4234 = vmatprep.subr.bf16.mxu1 %v4233_v5  ;;  %v4237_v19 = vpack.c.bf16 %v822_v10, %v814_v9  ;;  %v514_v22 = vld [vmem:[%s6366_s28 + $0x4a8] sm:$0xff]  ;;  %v4239_v28 = vpack.c.bf16 %v821_v21, %v813_v13  ;;  %v829_v29 = vld [vmem:[%s6366_s28 + $0xe80] sm:$0xff]  ;;  %v4317_v5 = vpack.c.bf16 %v376_v63, %v368_v62  ;;  %v384_v8 = vld [vmem:[%s6366_s28 + $0x98] sm:$0xff]  ;;  %v4319_v15 = vpack.c.bf16 %v375_v7, %v367_v6 }
  0xff   : > { %v522_v23 = vld [vmem:[%s6366_s28 + $0x4e8] sm:$0xff]  ;;  %4540 = vmatpush1.bf16.msra.mxu0 %v4539_v11  ;;  %v513_v31 = vld [vmem:[%s6366_s28 + $0x4a0] sm:$0xff]  ;;  %v392_v9 = vld [vmem:[%s6366_s28 + $0xd8] sm:$0xff] }
 0x100   : > { %v830_v24 = vld [vmem:[%s6366_s28 + $0xe88] sm:$0xff]  ;;  %4542 = vmatprep.subr.bf16.mxu0 %v4541_v14  ;;  %v4545_v30 = vpack.c.bf16 %v522_v23, %v514_v22  ;;  %v521_v32 = vld [vmem:[%s6366_s28 + $0x4e0] sm:$0xff]  ;;  %v383_v18 = vld [vmem:[%s6366_s28 + $0x90] sm:$0xff]  ;;  %v4321_v22 = vpack.c.bf16 %v392_v9, %v384_v8 }
 0x101   : > { %v838_v25 = vld [vmem:[%s6366_s28 + $0xec8] sm:$0xff]  ;;  %4236 = vmatpush1.bf16.msra.mxu1 %v4235_v12  ;;  %v837_v34 = vld [vmem:[%s6366_s28 + $0xec0] sm:$0xff]  ;;  %v4547_v39 = vpack.c.bf16 %v521_v32, %v513_v31  ;;  %v6648_v12 = vld [vmem:[#allocation2 + $0x10] sm:$0xff] }
 0x102   : > { %4238 = vmatprep.subr.bf16.mxu1 %v4237_v19  ;;  %v4241_v33 = vpack.c.bf16 %v838_v25, %v830_v24  ;;  %v530_v35 = vld [vmem:[%s6366_s28 + $0x528] sm:$0xff]  ;;  %v4243_v40 = vpack.c.bf16 %v837_v34, %v829_v29  ;;  %v845_v41 = vld [vmem:[%s6366_s28 + $0xf00] sm:$0xff]  ;;  %v391_v23 = vld [vmem:[%s6366_s28 + $0xd0] sm:$0xff] }
 0x103   : > { %v538_v36 = vld [vmem:[%s6366_s28 + $0x568] sm:$0xff]  ;;  %4544 = vmatpush1.bf16.msra.mxu0 %v4543_v26  ;;  %v529_v43 = vld [vmem:[%s6366_s28 + $0x520] sm:$0xff]  ;;  %v408_v29 = vld [vmem:[%s6366_s28 + $0x158] sm:$0xff]  ;;  %v4323_v32 = vpack.c.bf16 %v391_v23, %v383_v18 }
 0x104   : > { %v846_v37 = vld [vmem:[%s6366_s28 + $0xf08] sm:$0xff]  ;;  %4546 = vmatprep.subr.bf16.mxu0 %v4545_v30  ;;  %v4549_v42 = vpack.c.bf16 %v538_v36, %v530_v35  ;;  %v537_v44 = vld [vmem:[%s6366_s28 + $0x560] sm:$0xff]  ;;  %v472_v18 = vld [vmem:[%s6366_s28 + $0x358] sm:$0xff] }
 0x105   : > { %v854_v38 = vld [vmem:[%s6366_s28 + $0xf48] sm:$0xff]  ;;  %4240 = vmatpush1.bf16.msra.mxu1 %v4239_v28  ;;  %v853_v46 = vld [vmem:[%s6366_s28 + $0xf40] sm:$0xff]  ;;  %v4551_v51 = vpack.c.bf16 %v537_v44, %v529_v43  ;;  %v400_v28 = vld [vmem:[%s6366_s28 + $0x118] sm:$0xff] }
 0x106   : > { %4242 = vmatprep.subr.bf16.mxu1 %v4241_v33  ;;  %v4245_v45 = vpack.c.bf16 %v854_v38, %v846_v37  ;;  %v546_v47 = vld [vmem:[%s6366_s28 + $0x5a8] sm:$0xff]  ;;  %v4247_v52 = vpack.c.bf16 %v853_v46, %v845_v41  ;;  %v861_v53 = vld [vmem:[%s6366_s28 + $0xf80] sm:$0xff]  ;;  %v399_v33 = vld [vmem:[%s6366_s28 + $0x110] sm:$0xff]  ;;  %v4325_v37 = vpack.c.bf16 %v408_v29, %v400_v28 }
 0x107   : > { %v554_v48 = vld [vmem:[%s6366_s28 + $0x5e8] sm:$0xff]  ;;  %4548 = vmatpush1.bf16.msra.mxu0 %v4547_v39  ;;  %v545_v55 = vld [vmem:[%s6366_s28 + $0x5a0] sm:$0xff]  ;;  %v407_v38 = vld [vmem:[%s6366_s28 + $0x150] sm:$0xff] }
 0x108   : > { %v862_v49 = vld [vmem:[%s6366_s28 + $0xf88] sm:$0xff]  ;;  %4550 = vmatprep.subr.bf16.mxu0 %v4549_v42  ;;  %v4553_v54 = vpack.c.bf16 %v554_v48, %v546_v47  ;;  %v553_v56 = vld [vmem:[%s6366_s28 + $0x5e0] sm:$0xff]  ;;  %v416_v41 = vld [vmem:[%s6366_s28 + $0x198] sm:$0xff]  ;;  %v4327_v44 = vpack.c.bf16 %v407_v38, %v399_v33 }
 0x109   : > { %v870_v50 = vld [vmem:[%s6366_s28 + $0xfc8] sm:$0xff]  ;;  %4244 = vmatpush1.bf16.msra.mxu1 %v4243_v40  ;;  %v869_v59 = vld [vmem:[%s6366_s28 + $0xfc0] sm:$0xff]  ;;  %v4555_v0 = vpack.c.bf16 %v553_v56, %v545_v55  ;;  %v424_v42 = vld [vmem:[%s6366_s28 + $0x1d8] sm:$0xff] }
 0x10a   : > { %4246 = vmatprep.subr.bf16.mxu1 %v4245_v45  ;;  %v4249_v58 = vpack.c.bf16 %v870_v50, %v862_v49  ;;  %v562_v60 = vld [vmem:[%s6366_s28 + $0x628] sm:$0xff]  ;;  %v4251_v1 = vpack.c.bf16 %v869_v59, %v861_v53  ;;  %v561_v3 = vld [vmem:[%s6366_s28 + $0x620] sm:$0xff]  ;;  %v415_v45 = vld [vmem:[%s6366_s28 + $0x190] sm:$0xff]  ;;  %v4329_v49 = vpack.c.bf16 %v424_v42, %v416_v41 }
 0x10b   : > { %v570_v61 = vld [vmem:[%s6366_s28 + $0x668] sm:$0xff]  ;;  %4552 = vmatpush1.bf16.msra.mxu0 %v4551_v51  ;;  %v569_v4 = vld [vmem:[%s6366_s28 + $0x660] sm:$0xff]  ;;  %v423_v50 = vld [vmem:[%s6366_s28 + $0x1d0] sm:$0xff] }
 0x10c   : > { %4554 = vmatprep.subr.bf16.mxu0 %v4553_v54  ;;  %v4557_v2 = vpack.c.bf16 %v570_v61, %v562_v60  ;;  %v578_v10 = vld [vmem:[%s6366_s28 + $0x6a8] sm:$0xff]  ;;  %v4559_v14 = vpack.c.bf16 %v569_v4, %v561_v3  ;;  %v577_v19 = vld [vmem:[%s6366_s28 + $0x6a0] sm:$0xff]  ;;  %v432_v53 = vld [vmem:[%s6366_s28 + $0x218] sm:$0xff]  ;;  %v4331_v56 = vpack.c.bf16 %v423_v50, %v415_v45 }
 0x10d   : > { %4248 = vmatpush1.bf16.msra.mxu1 %v4247_v52  ;;  %v586_v11 = vld [vmem:[%s6366_s28 + $0x6e8] sm:$0xff]  ;;  %v585_v21 = vld [vmem:[%s6366_s28 + $0x6e0] sm:$0xff]  ;;  %v440_v54 = vld [vmem:[%s6366_s28 + $0x258] sm:$0xff] }
 0x10e   : > { %4250 = vmatprep.subr.bf16.mxu1 %v4249_v58  ;;  %v6650_v13 = vld [vmem:[#allocation2 + $0x48] sm:$0xff]  ;;  %v4561_v24 = vpack.c.bf16 %v586_v11, %v578_v10  ;;  %v6661_v30 = vld [vmem:[#allocation2 + $0x40] sm:$0xff]  ;;  %v4563_v31 = vpack.c.bf16 %v585_v21, %v577_v19  ;;  %v431_v58 = vld [vmem:[%s6366_s28 + $0x210] sm:$0xff]  ;;  %v4333_v62 = vpack.c.bf16 %v440_v54, %v432_v53 }
 0x10f   : > { %4556 = vmatpush1.bf16.msra.mxu0 %v4555_v0  ;;  %v594_v25 = vld [vmem:[%s6366_s28 + $0x728] sm:$0xff]  ;;  %v593_v35 = vld [vmem:[%s6366_s28 + $0x720] sm:$0xff]  ;;  %v455_v10 = vld [vmem:[%s6366_s28 + $0x2d0] sm:$0xff] }
 0x110   : > { %4558 = vmatprep.subr.bf16.mxu0 %v4557_v2  ;;  %v602_v26 = vld [vmem:[%s6366_s28 + $0x768] sm:$0xff]  ;;  %v601_v36 = vld [vmem:[%s6366_s28 + $0x760] sm:$0xff]  ;;  %v456_v2 = vld [vmem:[%s6366_s28 + $0x2d8] sm:$0xff] }
 0x111   : > { %4252 = vmatpush1.bf16.msra.mxu1 %v4251_v1  ;;  %v4565_v34 = vpack.c.bf16 %v602_v26, %v594_v25  ;;  %v610_v39 = vld [vmem:[%s6366_s28 + $0x7a8] sm:$0xff]  ;;  %v4567_v43 = vpack.c.bf16 %v601_v36, %v593_v35  ;;  %v609_v47 = vld [vmem:[%s6366_s28 + $0x7a0] sm:$0xff]  ;;  %v448_v1 = vld [vmem:[%s6366_s28 + $0x298] sm:$0xff] }
 0x112   : > { %4318 = vmatprep.subr.bf16.mxu1 %v4317_v5  ;;  %v618_v40 = vld [vmem:[%s6366_s28 + $0x7e8] sm:$0xff]  ;;  %v617_v48 = vld [vmem:[%s6366_s28 + $0x7e0] sm:$0xff]  ;;  %v447_v5 = vld [vmem:[%s6366_s28 + $0x290] sm:$0xff]  ;;  %v4337_v9 = vpack.c.bf16 %v456_v2, %v448_v1 }
 0x113   : > { %4560 = vmatpush1.bf16.msra.mxu0 %v4559_v14  ;;  %v4569_v46 = vpack.c.bf16 %v618_v40, %v610_v39  ;;  %v626_v51 = vld [vmem:[%s6366_s28 + $0x828] sm:$0xff]  ;;  %v4571_v55 = vpack.c.bf16 %v617_v48, %v609_v47  ;;  %v625_v60 = vld [vmem:[%s6366_s28 + $0x820] sm:$0xff]  ;;  %v4339_v21 = vpack.c.bf16 %v455_v10, %v447_v5  ;;  %v471_v28 = vld [vmem:[%s6366_s28 + $0x350] sm:$0xff] }
 0x114   : > { %1317 = vmatmul.mubr.f32.vlgmr.msra.gmra.mrb[0].mxu1 %v6648_v12  ;;  %4562 = vmatprep.subr.bf16.mxu0 %v4561_v24  ;;  %v634_v52 = vld [vmem:[%s6366_s28 + $0x868] sm:$0xff]  ;;  %v633_v61 = vld [vmem:[%s6366_s28 + $0x860] sm:$0xff]  ;;  %v487_v39 = vld [vmem:[%s6366_s28 + $0x3d0] sm:$0xff] }
 0x115   : > { %4320 = vmatpush1.bf16.msra.mxu1 %v4319_v15  ;;  %1322 = vmatprep.mubr.f32.mxu1 %v6650_v13  ;;  %v4573_v59 = vpack.c.bf16 %v634_v52, %v626_v51  ;;  %v642_v63 = vld [vmem:[%s6366_s28 + $0x8a8] sm:$0xff]  ;;  %v4575_v3 = vpack.c.bf16 %v633_v61, %v625_v60  ;;  %v641_v7 = vld [vmem:[%s6366_s28 + $0x8a0] sm:$0xff]  ;;  %v464_v15 = vld [vmem:[%s6366_s28 + $0x318] sm:$0xff] }
 0x116   : > { %4322 = vmatprep.subr.bf16.mxu1 %v4321_v22  ;;  %v650_v0 = vld [vmem:[%s6366_s28 + $0x8e8] sm:$0xff]  ;;  %v649_v8 = vld [vmem:[%s6366_s28 + $0x8e0] sm:$0xff]  ;;  %v463_v22 = vld [vmem:[%s6366_s28 + $0x310] sm:$0xff]  ;;  %v4341_v26 = vpack.c.bf16 %v472_v18, %v464_v15 }
 0x117   : > { %4564 = vmatpush1.bf16.msra.mxu0 %v4563_v31  ;;  %v4577_v6 = vpack.c.bf16 %v650_v0, %v642_v63  ;;  %v658_v11 = vld [vmem:[%s6366_s28 + $0x928] sm:$0xff]  ;;  %v4579_v19 = vpack.c.bf16 %v649_v8, %v641_v7  ;;  %v657_v24 = vld [vmem:[%s6366_s28 + $0x920] sm:$0xff]  ;;  %v480_v31 = vld [vmem:[%s6366_s28 + $0x398] sm:$0xff]  ;;  %v4343_v33 = vpack.c.bf16 %v471_v28, %v463_v22 }
 0x118   : > { %1323 = vmatmul.mubr.f32.gmra.mrb[2].mxu1 %v6661_v30  ;;  %4566 = vmatprep.subr.bf16.mxu0 %v4565_v34  ;;  %v666_v14 = vld [vmem:[%s6366_s28 + $0x968] sm:$0xff]  ;;  %v665_v25 = vld [vmem:[%s6366_s28 + $0x960] sm:$0xff]  ;;  %v479_v34 = vld [vmem:[%s6366_s28 + $0x390] sm:$0xff] }
 0x119   : > { %4324 = vmatpush1.bf16.msra.mxu1 %v4323_v32  ;;  %1470 = vmatprep.mubr.f32.mxu1 %v6435_v16  ;;  %v439_v16 = vld [vmem:[%s6366_s28 + $0x250] sm:$0xff]  ;;  %v4581_v23 = vpack.c.bf16 %v666_v14, %v658_v11  ;;  %v682_v29 = vld [vmem:[%s6366_s28 + $0x9e8] sm:$0xff]  ;;  %v488_v32 = vld [vmem:[%s6366_s28 + $0x3d8] sm:$0xff] }
 0x11a   : > { %4326 = vmatprep.subr.bf16.mxu1 %v4325_v37  ;;  %v4335_v4 = vpack.c.bf16 %v439_v16, %v431_v58  ;;  %v673_v36 = vld [vmem:[%s6366_s28 + $0x9a0] sm:$0xff]  ;;  %v4345_v38 = vpack.c.bf16 %v488_v32, %v480_v31  ;;  %v698_v40 = vld [vmem:[%s6366_s28 + $0xa68] sm:$0xff]  ;;  %v496_v41 = vld [vmem:[%s6366_s28 + $0x418] sm:$0xff] }
 0x11b   : > { %4568 = vmatpush1.bf16.msra.mxu0 %v4567_v43  ;;  %v681_v37 = vld [vmem:[%s6366_s28 + $0x9e0] sm:$0xff]  ;;  %v4347_v43 = vpack.c.bf16 %v487_v39, %v479_v34  ;;  %v706_v50 = vld [vmem:[%s6366_s28 + $0xaa8] sm:$0xff]  ;;  %v512_v52 = vld [vmem:[%s6366_s28 + $0x498] sm:$0xff] }
 0x11c   : > { %4570 = vmatprep.subr.bf16.mxu0 %v4569_v46  ;;  %v4587_v42 = vpack.c.bf16 %v681_v37, %v673_v36  ;;  %v689_v46 = vld [vmem:[%s6366_s28 + $0xa20] sm:$0xff]  ;;  %v714_v51 = vld [vmem:[%s6366_s28 + $0xae8] sm:$0xff]  ;;  %v520_v53 = vld [vmem:[%s6366_s28 + $0x4d8] sm:$0xff] }
 0x11d   : > { %4328 = vmatpush1.bf16.msra.mxu1 %v4327_v44  ;;  %v495_v44 = vld [vmem:[%s6366_s28 + $0x410] sm:$0xff]  ;;  %v697_v47 = vld [vmem:[%s6366_s28 + $0xa60] sm:$0xff]  ;;  %v4593_v58 = vpack.c.bf16 %v714_v51, %v706_v50  ;;  %v4353_v61 = vpack.c.bf16 %v520_v53, %v512_v52  ;;  %v722_v16 = vld [vmem:[%s6366_s28 + $0xb28] sm:$0xff] }
 0x11e   : > { %4330 = vmatprep.subr.bf16.mxu1 %v4329_v49  ;;  %v503_v49 = vld [vmem:[%s6366_s28 + $0x450] sm:$0xff]  ;;  %v4591_v54 = vpack.c.bf16 %v697_v47, %v689_v46  ;;  %v713_v60 = vld [vmem:[%s6366_s28 + $0xae0] sm:$0xff]  ;;  %v730_v63 = vld [vmem:[%s6366_s28 + $0xb68] sm:$0xff] }
 0x11f   : > { %4572 = vmatpush1.bf16.msra.mxu0 %v4571_v55  ;;  %v4351_v55 = vpack.c.bf16 %v503_v49, %v495_v44  ;;  %v528_v0 = vld [vmem:[%s6366_s28 + $0x518] sm:$0xff]  ;;  %v4597_v5 = vpack.c.bf16 %v730_v63, %v722_v16  ;;  %v729_v7 = vld [vmem:[%s6366_s28 + $0xb60] sm:$0xff]  ;;  %v738_v10 = vld [vmem:[%s6366_s28 + $0xba8] sm:$0xff] }
 0x120   : > { %4574 = vmatprep.subr.bf16.mxu0 %v4573_v59  ;;  %v705_v59 = vld [vmem:[%s6366_s28 + $0xaa0] sm:$0xff]  ;;  %v536_v1 = vld [vmem:[%s6366_s28 + $0x558] sm:$0xff]  ;;  %v746_v11 = vld [vmem:[%s6366_s28 + $0xbe8] sm:$0xff] }
 0x121   : > { %4332 = vmatpush1.bf16.msra.mxu1 %v4331_v56  ;;  %v511_v56 = vld [vmem:[%s6366_s28 + $0x490] sm:$0xff]  ;;  %v4595_v2 = vpack.c.bf16 %v713_v60, %v705_v59  ;;  %v4357_v8 = vpack.c.bf16 %v536_v1, %v528_v0  ;;  %v544_v14 = vld [vmem:[%s6366_s28 + $0x598] sm:$0xff]  ;;  %v4601_v22 = vpack.c.bf16 %v746_v11, %v738_v10  ;;  %v754_v28 = vld [vmem:[%s6366_s28 + $0xc28] sm:$0xff] }
 0x122   : > { %4334 = vmatprep.subr.bf16.mxu1 %v4333_v62  ;;  %1702 = vmatmul.mubr.f32.vlgmr.msra.gmra.mrb[4].mxu0 %v6507_v57  ;;  %v674_v57 = vld [vmem:[%s6366_s28 + $0x9a8] sm:$0xff]  ;;  %v519_v62 = vld [vmem:[%s6366_s28 + $0x4d0] sm:$0xff]  ;;  %v552_v15 = vld [vmem:[%s6366_s28 + $0x5d8] sm:$0xff] }
 0x123   : > { %4576 = vmatpush1.bf16.msra.mxu0 %v4575_v3  ;;  %1707 = vmatprep.mubr.f32.mxu0 %v6524_v17  ;;  %v4583_v17 = vpack.c.bf16 %v665_v25, %v657_v24  ;;  %v4585_v35 = vpack.c.bf16 %v682_v29, %v674_v57  ;;  %v4355_v3 = vpack.c.bf16 %v519_v62, %v511_v56  ;;  %v745_v24 = vld [vmem:[%s6366_s28 + $0xbe0] sm:$0xff]  ;;  %v762_v57 = vld [vmem:[%s6366_s28 + $0xc68] sm:$0xff]  ;;  %v560_v29 = vld [vmem:[%s6366_s28 + $0x618] sm:$0xff] }
 0x124   : > { %4578 = vmatprep.subr.bf16.mxu0 %v4577_v6  ;;  %v721_v6 = vld [vmem:[%s6366_s28 + $0xb20] sm:$0xff]  ;;  %v4361_v25 = vpack.c.bf16 %v552_v15, %v544_v14  ;;  %v568_v31 = vld [vmem:[%s6366_s28 + $0x658] sm:$0xff]  ;;  %v4605_v34 = vpack.c.bf16 %v762_v57, %v754_v28  ;;  %v770_v39 = vld [vmem:[%s6366_s28 + $0xca8] sm:$0xff] }
 0x125   : > { %4336 = vmatpush1.bf16.msra.mxu1 %v4335_v4  ;;  %v527_v4 = vld [vmem:[%s6366_s28 + $0x510] sm:$0xff]  ;;  %v4599_v18 = vpack.c.bf16 %v729_v7, %v721_v6  ;;  %v761_v36 = vld [vmem:[%s6366_s28 + $0xc60] sm:$0xff]  ;;  %v4365_v37 = vpack.c.bf16 %v568_v31, %v560_v29  ;;  %v786_v49 = vld [vmem:[%s6366_s28 + $0xd28] sm:$0xff] }
 0x126   : > { %4338 = vmatprep.subr.bf16.mxu1 %v4337_v9  ;;  %1708 = vmatmul.mubr.f32.gmra.mrb[6].mxu0 %v6529_v20  ;;  %v690_v20 = vld [vmem:[%s6366_s28 + $0xa28] sm:$0xff]  ;;  %v535_v9 = vld [vmem:[%s6366_s28 + $0x550] sm:$0xff]  ;;  %v777_v46 = vld [vmem:[%s6366_s28 + $0xce0] sm:$0xff] }
 0x127   : > { %4580 = vmatpush1.bf16.msra.mxu0 %v4579_v19  ;;  %1778 = vmatprep.mubr.f32.mxu0 %v6535_v27  ;;  %v504_v27 = vld [vmem:[%s6366_s28 + $0x458] sm:$0xff]  ;;  %v4589_v45 = vpack.c.bf16 %v698_v40, %v690_v20  ;;  %v4359_v19 = vpack.c.bf16 %v535_v9, %v527_v4  ;;  %v778_v20 = vld [vmem:[%s6366_s28 + $0xce8] sm:$0xff]  ;;  %v793_v59 = vld [vmem:[%s6366_s28 + $0xd60] sm:$0xff] }
 0x128   : > { %4582 = vmatprep.subr.bf16.mxu0 %v4581_v23  ;;  %v4349_v48 = vpack.c.bf16 %v504_v27, %v496_v41  ;;  %v737_v23 = vld [vmem:[%s6366_s28 + $0xba0] sm:$0xff]  ;;  %v576_v40 = vld [vmem:[%s6366_s28 + $0x698] sm:$0xff]  ;;  %v4609_v44 = vpack.c.bf16 %v778_v20, %v770_v39  ;;  %v794_v50 = vld [vmem:[%s6366_s28 + $0xd68] sm:$0xff] }
 0x129   : > { %4340 = vmatpush1.bf16.msra.mxu1 %v4339_v21  ;;  %v543_v21 = vld [vmem:[%s6366_s28 + $0x590] sm:$0xff]  ;;  %v4603_v32 = vpack.c.bf16 %v745_v24, %v737_v23  ;;  %v584_v41 = vld [vmem:[%s6366_s28 + $0x6d8] sm:$0xff]  ;;  %v4613_v56 = vpack.c.bf16 %v794_v50, %v786_v49  ;;  %v802_v62 = vld [vmem:[%s6366_s28 + $0xda8] sm:$0xff] }
 0x12a   : > { %4342 = vmatprep.subr.bf16.mxu1 %v4341_v26  ;;  %v551_v26 = vld [vmem:[%s6366_s28 + $0x5d0] sm:$0xff]  ;;  %v4369_v47 = vpack.c.bf16 %v584_v41, %v576_v40  ;;  %v592_v51 = vld [vmem:[%s6366_s28 + $0x718] sm:$0xff]  ;;  %v810_v16 = vld [vmem:[%s6366_s28 + $0xde8] sm:$0xff] }
 0x12b   : > { %4584 = vmatpush1.bf16.msra.mxu0 %v4583_v17  ;;  %v4363_v17 = vpack.c.bf16 %v551_v26, %v543_v21  ;;  %v600_v52 = vld [vmem:[%s6366_s28 + $0x758] sm:$0xff]  ;;  %v4617_v4 = vpack.c.bf16 %v810_v16, %v802_v62  ;;  %v809_v6 = vld [vmem:[%s6366_s28 + $0xde0] sm:$0xff]  ;;  %v818_v9 = vld [vmem:[%s6366_s28 + $0xe28] sm:$0xff] }
 0x12c   : > { %4586 = vmatprep.subr.bf16.mxu0 %v4585_v35  ;;  %v753_v35 = vld [vmem:[%s6366_s28 + $0xc20] sm:$0xff]  ;;  %v4373_v60 = vpack.c.bf16 %v600_v52, %v592_v51  ;;  %v608_v63 = vld [vmem:[%s6366_s28 + $0x798] sm:$0xff]  ;;  %v826_v10 = vld [vmem:[%s6366_s28 + $0xe68] sm:$0xff] }
 0x12d   : > { %4344 = vmatpush1.bf16.msra.mxu1 %v4343_v33  ;;  %v559_v33 = vld [vmem:[%s6366_s28 + $0x610] sm:$0xff]  ;;  %v4607_v27 = vpack.c.bf16 %v761_v36, %v753_v35  ;;  %v616_v0 = vld [vmem:[%s6366_s28 + $0x7d8] sm:$0xff]  ;;  %v4621_v21 = vpack.c.bf16 %v826_v10, %v818_v9  ;;  %v825_v23 = vld [vmem:[%s6366_s28 + $0xe60] sm:$0xff] }
 0x12e   : > { %4346 = vmatprep.subr.bf16.mxu1 %v4345_v38  ;;  %v567_v38 = vld [vmem:[%s6366_s28 + $0x650] sm:$0xff]  ;;  %v4377_v7 = vpack.c.bf16 %v616_v0, %v608_v63  ;;  %v624_v11 = vld [vmem:[%s6366_s28 + $0x818] sm:$0xff]  ;;  %v834_v26 = vld [vmem:[%s6366_s28 + $0xea8] sm:$0xff] }
 0x12f   : > { %4588 = vmatpush1.bf16.msra.mxu0 %v4587_v42  ;;  %v4367_v42 = vpack.c.bf16 %v567_v38, %v559_v33  ;;  %v632_v14 = vld [vmem:[%s6366_s28 + $0x858] sm:$0xff]  ;;  %v842_v28 = vld [vmem:[%s6366_s28 + $0xee8] sm:$0xff]  ;;  %v841_v35 = vld [vmem:[%s6366_s28 + $0xee0] sm:$0xff] }
 0x130   : > { %4590 = vmatprep.subr.bf16.mxu0 %v4589_v45  ;;  %v769_v45 = vld [vmem:[%s6366_s28 + $0xca0] sm:$0xff]  ;;  %v4381_v24 = vpack.c.bf16 %v632_v14, %v624_v11  ;;  %v640_v57 = vld [vmem:[%s6366_s28 + $0x898] sm:$0xff]  ;;  %v4625_v33 = vpack.c.bf16 %v842_v28, %v834_v26  ;;  %v850_v38 = vld [vmem:[%s6366_s28 + $0xf28] sm:$0xff] }
 0x131   : > { %4348 = vmatpush1.bf16.msra.mxu1 %v4347_v43  ;;  %v575_v43 = vld [vmem:[%s6366_s28 + $0x690] sm:$0xff]  ;;  %v4611_v53 = vpack.c.bf16 %v777_v46, %v769_v45  ;;  %v648_v29 = vld [vmem:[%s6366_s28 + $0x8d8] sm:$0xff]  ;;  %v858_v39 = vld [vmem:[%s6366_s28 + $0xf68] sm:$0xff] }
 0x132   : > { %4350 = vmatprep.subr.bf16.mxu1 %v4349_v48  ;;  %v583_v48 = vld [vmem:[%s6366_s28 + $0x6d0] sm:$0xff]  ;;  %v4385_v36 = vpack.c.bf16 %v648_v29, %v640_v57  ;;  %v656_v20 = vld [vmem:[%s6366_s28 + $0x918] sm:$0xff]  ;;  %v5871_v41 = vld [vmem:[#allocation2] sm:$0xff] }
 0x133   : > { %4592 = vmatpush1.bf16.msra.mxu0 %v4591_v54  ;;  %v4371_v54 = vpack.c.bf16 %v583_v48, %v575_v43  ;;  %v664_v40 = vld [vmem:[%s6366_s28 + $0x958] sm:$0xff]  ;;  %v655_v43 = vld [vmem:[%s6366_s28 + $0x910] sm:$0xff]  ;;  %v849_v45 = vld [vmem:[%s6366_s28 + $0xf20] sm:$0xff] }
 0x134   : > { %4594 = vmatprep.subr.bf16.mxu0 %v4593_v58  ;;  %v785_v58 = vld [vmem:[%s6366_s28 + $0xd20] sm:$0xff]  ;;  %v663_v48 = vld [vmem:[%s6366_s28 + $0x950] sm:$0xff]  ;;  %v866_v49 = vld [vmem:[%s6366_s28 + $0xfa8] sm:$0xff] }
 0x135   : > { %4352 = vmatpush1.bf16.msra.mxu1 %v4351_v55  ;;  %v591_v55 = vld [vmem:[%s6366_s28 + $0x710] sm:$0xff]  ;;  %v4615_v1 = vpack.c.bf16 %v793_v59, %v785_v58  ;;  %v857_v46 = vld [vmem:[%s6366_s28 + $0xf60] sm:$0xff]  ;;  %v874_v50 = vld [vmem:[%s6366_s28 + $0xfe8] sm:$0xff] }
 0x136   : > { %4354 = vmatprep.subr.bf16.mxu1 %v4353_v61  ;;  %v599_v61 = vld [vmem:[%s6366_s28 + $0x750] sm:$0xff]  ;;  %v5872_v51 = vld [vmem:[#allocation2 + $0x38] sm:$0xff]  ;;  %v4633_v59 = vpack.c.bf16 %v874_v50, %v866_v49  ;;  %v882_v63 = vld [vmem:[%s6366_s28 + $0x1028] sm:$0xff] }
 0x137   : > { %4596 = vmatpush1.bf16.msra.mxu0 %v4595_v2  ;;  %v4375_v2 = vpack.c.bf16 %v599_v61, %v591_v55  ;;  %v672_v52 = vld [vmem:[%s6366_s28 + $0x998] sm:$0xff]  ;;  %v5873_v55 = vld [vmem:[#allocation2 + $0x30] sm:$0xff]  ;;  %v873_v61 = vld [vmem:[%s6366_s28 + $0xfe0] sm:$0xff] }
 0x138   : > { %4598 = vmatprep.subr.bf16.mxu0 %v4597_v5  ;;  %v801_v5 = vld [vmem:[%s6366_s28 + $0xda0] sm:$0xff]  ;;  %v671_v58 = vld [vmem:[%s6366_s28 + $0x990] sm:$0xff]  ;;  %v890_v0 = vld [vmem:[%s6366_s28 + $0x1068] sm:$0xff] }
 0x139   : > { %4356 = vmatpush1.bf16.msra.mxu1 %v4355_v3  ;;  %v607_v3 = vld [vmem:[%s6366_s28 + $0x790] sm:$0xff]  ;;  %v4619_v15 = vpack.c.bf16 %v809_v6, %v801_v5  ;;  %v889_v9 = vld [vmem:[%s6366_s28 + $0x1060] sm:$0xff]  ;;  %v898_v14 = vld [vmem:[%s6366_s28 + $0x10a8] sm:$0xff] }
 0x13a   : > { %4358 = vmatprep.subr.bf16.mxu1 %v4357_v8  ;;  %v615_v8 = vld [vmem:[%s6366_s28 + $0x7d0] sm:$0xff]  ;;  %v905_v26 = vld [vmem:[%s6366_s28 + $0x10e0] sm:$0xff]  ;;  %v914_v29 = vld [vmem:[%s6366_s28 + $0x1128] sm:$0xff] }
 0x13b   : > { %4600 = vmatpush1.bf16.msra.mxu0 %v4599_v18  ;;  %v4379_v18 = vpack.c.bf16 %v615_v8, %v607_v3  ;;  %v679_v16 = vld [vmem:[%s6366_s28 + $0x9d0] sm:$0xff]  ;;  %v696_v3 = vld [vmem:[%s6366_s28 + $0xa58] sm:$0xff]  ;;  %v881_v8 = vld [vmem:[%s6366_s28 + $0x1020] sm:$0xff] }
 0x13c   : > { %4602 = vmatprep.subr.bf16.mxu0 %v4601_v22  ;;  %v817_v22 = vld [vmem:[%s6366_s28 + $0xe20] sm:$0xff]  ;;  %v4395_v5 = vpack.c.bf16 %v679_v16, %v671_v58  ;;  %v687_v6 = vld [vmem:[%s6366_s28 + $0xa10] sm:$0xff]  ;;  %v946_v49 = vld [vmem:[%s6366_s28 + $0x1228] sm:$0xff] }
 0x13d   : > { %4360 = vmatpush1.bf16.msra.mxu1 %v4359_v19  ;;  %v623_v19 = vld [vmem:[%s6366_s28 + $0x810] sm:$0xff]  ;;  %v4623_v31 = vpack.c.bf16 %v825_v23, %v817_v22  ;;  %v954_v50 = vld [vmem:[%s6366_s28 + $0x1268] sm:$0xff]  ;;  %v945_v58 = vld [vmem:[%s6366_s28 + $0x1220] sm:$0xff] }
 0x13e   : > { %4362 = vmatprep.subr.bf16.mxu1 %v4361_v25  ;;  %v631_v25 = vld [vmem:[%s6366_s28 + $0x850] sm:$0xff]  ;;  %v970_v16 = vld [vmem:[%s6366_s28 + $0x12e8] sm:$0xff] }
 0x13f   : > { %4604 = vmatpush1.bf16.msra.mxu0 %v4603_v32  ;;  %v4383_v32 = vpack.c.bf16 %v631_v25, %v623_v19  ;;  %v695_v11 = vld [vmem:[%s6366_s28 + $0xa50] sm:$0xff]  ;;  %v712_v19 = vld [vmem:[%s6366_s28 + $0xad8] sm:$0xff]  ;;  %v897_v25 = vld [vmem:[%s6366_s28 + $0x10a0] sm:$0xff] }
 0x140   : > { %4606 = vmatprep.subr.bf16.mxu0 %v4605_v34  ;;  %v833_v34 = vld [vmem:[%s6366_s28 + $0xea0] sm:$0xff]  ;;  %v4399_v22 = vpack.c.bf16 %v695_v11, %v687_v6  ;;  %v703_v23 = vld [vmem:[%s6366_s28 + $0xa90] sm:$0xff]  ;;  %v784_v11 = vld [vmem:[%s6366_s28 + $0xd18] sm:$0xff] }
 0x141   : > { %4364 = vmatpush1.bf16.msra.mxu1 %v4363_v17  ;;  %v639_v17 = vld [vmem:[%s6366_s28 + $0x890] sm:$0xff]  ;;  %v969_v6 = vld [vmem:[%s6366_s28 + $0x12e0] sm:$0xff] }
 0x142   : > { %4366 = vmatprep.subr.bf16.mxu1 %v4365_v37  ;;  %v647_v37 = vld [vmem:[%s6366_s28 + $0x8d0] sm:$0xff] }
 0x143   : > { %4608 = vmatpush1.bf16.msra.mxu0 %v4607_v27  ;;  %v4627_v27 = vpack.c.bf16 %v841_v35, %v833_v34  ;;  %v711_v57 = vld [vmem:[%s6366_s28 + $0xad0] sm:$0xff] }
 0x144   : > { %4610 = vmatprep.subr.bf16.mxu0 %v4609_v44  ;;  %v4629_v44 = vpack.c.bf16 %v858_v39, %v850_v38  ;;  %v4403_v34 = vpack.c.bf16 %v711_v57, %v703_v23  ;;  %v719_v35 = vld [vmem:[%s6366_s28 + $0xb10] sm:$0xff]  ;;  %v921_v38 = vld [vmem:[%s6366_s28 + $0x1160] sm:$0xff]  ;;  %v800_v57 = vld [vmem:[%s6366_s28 + $0xd98] sm:$0xff] }
 0x145   : > { %4368 = vmatpush1.bf16.msra.mxu1 %v4367_v42  ;;  %v4387_v42 = vpack.c.bf16 %v647_v37, %v639_v17  ;;  %v728_v17 = vld [vmem:[%s6366_s28 + $0xb58] sm:$0xff]  ;;  %v913_v37 = vld [vmem:[%s6366_s28 + $0x1120] sm:$0xff] }
 0x146   : > { %4370 = vmatprep.subr.bf16.mxu1 %v4369_v47  ;;  %v4389_v47 = vpack.c.bf16 %v664_v40, %v656_v20  ;;  %v727_v20 = vld [vmem:[%s6366_s28 + $0xb50] sm:$0xff]  ;;  %v938_v40 = vld [vmem:[%s6366_s28 + $0x11e8] sm:$0xff]  ;;  %v985_v23 = vld [vmem:[%s6366_s28 + $0x1360] sm:$0xff] }
 0x147   : > { %4612 = vmatpush1.bf16.msra.mxu0 %v4611_v53  ;;  %v680_v53 = vld [vmem:[%s6366_s28 + $0x9d8] sm:$0xff] }
 0x148   : > { %4614 = vmatprep.subr.bf16.mxu0 %v4613_v56  ;;  %v4391_v56 = vpack.c.bf16 %v663_v48, %v655_v43  ;;  %v4393_v62 = vpack.c.bf16 %v680_v53, %v672_v52  ;;  %v4407_v43 = vpack.c.bf16 %v727_v20, %v719_v35  ;;  %v743_v48 = vld [vmem:[%s6366_s28 + $0xbd0] sm:$0xff]  ;;  %v760_v52 = vld [vmem:[%s6366_s28 + $0xc58] sm:$0xff]  ;;  %v1001_v35 = vld [vmem:[%s6366_s28 + $0x13e0] sm:$0xff] }
 0x149   : > { %4372 = vmatpush1.bf16.msra.mxu1 %v4371_v54  ;;  %v4631_v54 = vpack.c.bf16 %v857_v46, %v849_v45  ;;  %v929_v46 = vld [vmem:[%s6366_s28 + $0x11a0] sm:$0xff]  ;;  %v816_v20 = vld [vmem:[%s6366_s28 + $0xe18] sm:$0xff] }
 0x14a   : > { %4374 = vmatprep.subr.bf16.mxu1 %v4373_v60  ;;  %v865_v60 = vld [vmem:[%s6366_s28 + $0xfa0] sm:$0xff] }
 0x14b   : > { %4616 = vmatpush1.bf16.msra.mxu0 %v4615_v1  ;;  %v5874_v1 = vld [vmem:[#allocation2 + $0x18] sm:$0xff] }
 0x14c   : > { %4618 = vmatprep.subr.bf16.mxu0 %v4617_v4  ;;  %v4635_v4 = vpack.c.bf16 %v873_v61, %v865_v60  ;;  %v759_v61 = vld [vmem:[%s6366_s28 + $0xc50] sm:$0xff] }
 0x14d   : > { %4376 = vmatpush1.bf16.msra.mxu1 %v4375_v2  ;;  %v688_v2 = vld [vmem:[%s6366_s28 + $0xa18] sm:$0xff] }
 0x14e   : > { %4378 = vmatprep.subr.bf16.mxu1 %v4377_v7  ;;  %v4637_v7 = vpack.c.bf16 %v890_v0, %v882_v63  ;;  %v4397_v10 = vpack.c.bf16 %v696_v3, %v688_v2  ;;  %v768_v63 = vld [vmem:[%s6366_s28 + $0xc98] sm:$0xff]  ;;  %v767_v3 = vld [vmem:[%s6366_s28 + $0xc90] sm:$0xff] }
 0x14f   : > { %4620 = vmatpush1.bf16.msra.mxu0 %v4619_v15  ;;  %v906_v15 = vld [vmem:[%s6366_s28 + $0x10e8] sm:$0xff]  ;;  %v776_v0 = vld [vmem:[%s6366_s28 + $0xcd8] sm:$0xff] }
 0x150   : > { %4622 = vmatprep.subr.bf16.mxu0 %v4621_v21  ;;  %v4639_v21 = vpack.c.bf16 %v889_v9, %v881_v8  ;;  %v775_v8 = vld [vmem:[%s6366_s28 + $0xcd0] sm:$0xff]  ;;  %v978_v9 = vld [vmem:[%s6366_s28 + $0x1328] sm:$0xff] }
 0x151   : > { %4380 = vmatpush1.bf16.msra.mxu1 %v4379_v18  ;;  %v704_v18 = vld [vmem:[%s6366_s28 + $0xa98] sm:$0xff] }
 0x152   : > { %4382 = vmatprep.subr.bf16.mxu1 %v4381_v24  ;;  %v4641_v24 = vpack.c.bf16 %v906_v15, %v898_v14  ;;  %v4401_v28 = vpack.c.bf16 %v712_v19, %v704_v18  ;;  %v792_v14 = vld [vmem:[%s6366_s28 + $0xd58] sm:$0xff]  ;;  %v4419_v18 = vpack.c.bf16 %v775_v8, %v767_v3  ;;  %v783_v19 = vld [vmem:[%s6366_s28 + $0xd10] sm:$0xff]  ;;  %v1049_v3 = vld [vmem:[%s6366_s28 + $0x1560] sm:$0xff] }
 0x153   : > { %4624 = vmatpush1.bf16.msra.mxu0 %v4623_v31  ;;  %v922_v31 = vld [vmem:[%s6366_s28 + $0x1168] sm:$0xff]  ;;  %v864_v8 = vld [vmem:[%s6366_s28 + $0xf98] sm:$0xff] }
 0x154   : > { %1471 = vmatmul.mubr.f32.vlgmr.msra.gmra.mrb[4].mxu1 %v5871_v41  ;;  %4626 = vmatprep.subr.bf16.mxu0 %v4625_v33  ;;  %v4643_v33 = vpack.c.bf16 %v905_v26, %v897_v25  ;;  %v736_v41 = vld [vmem:[%s6366_s28 + $0xb98] sm:$0xff]  ;;  %v791_v25 = vld [vmem:[%s6366_s28 + $0xd50] sm:$0xff]  ;;  %v994_v26 = vld [vmem:[%s6366_s28 + $0x13a8] sm:$0xff] }
 0x155   : > { %4384 = vmatpush1.bf16.msra.mxu1 %v4383_v32  ;;  %1476 = vmatprep.mubr.f32.mxu1 %v5872_v51  ;;  %v720_v32 = vld [vmem:[%s6366_s28 + $0xb18] sm:$0xff] }
 0x156   : > { %4386 = vmatprep.subr.bf16.mxu1 %v4385_v36  ;;  %v4645_v36 = vpack.c.bf16 %v922_v31, %v914_v29  ;;  %v4405_v39 = vpack.c.bf16 %v728_v17, %v720_v32  ;;  %v752_v51 = vld [vmem:[%s6366_s28 + $0xc18] sm:$0xff]  ;;  %v4423_v32 = vpack.c.bf16 %v791_v25, %v783_v19  ;;  %v799_v17 = vld [vmem:[%s6366_s28 + $0xd90] sm:$0xff]  ;;  %v1065_v19 = vld [vmem:[%s6366_s28 + $0x15e0] sm:$0xff] }
 0x157   : > { %4628 = vmatpush1.bf16.msra.mxu0 %v4627_v27  ;;  %v744_v27 = vld [vmem:[%s6366_s28 + $0xbd8] sm:$0xff]  ;;  %v4413_v60 = vpack.c.bf16 %v760_v52, %v752_v51  ;;  %v831_v52 = vld [vmem:[%s6366_s28 + $0xe90] sm:$0xff] }
 0x158   : > { %1477 = vmatmul.mubr.f32.gmra.mrb[6].mxu1 %v5873_v55  ;;  %4630 = vmatprep.subr.bf16.mxu0 %v4629_v44  ;;  %v735_v44 = vld [vmem:[%s6366_s28 + $0xb90] sm:$0xff]  ;;  %v808_v29 = vld [vmem:[%s6366_s28 + $0xdd8] sm:$0xff] }
 0x159   : > { %4388 = vmatpush1.bf16.msra.mxu1 %v4387_v42  ;;  %1547 = vmatprep.mubr.f32.mxu1 %v5874_v1  ;;  %v6841_v42 = vld [vmem:[#allocation2 + $0x28] sm:$0xff]  ;;  %v751_v55 = vld [vmem:[%s6366_s28 + $0xc10] sm:$0xff]  ;;  %v880_v25 = vld [vmem:[%s6366_s28 + $0x1018] sm:$0xff] }
 0x15a   : > { %4390 = vmatprep.subr.bf16.mxu1 %v4389_v47  ;;  %v937_v47 = vld [vmem:[%s6366_s28 + $0x11e0] sm:$0xff]  ;;  %v4415_v2 = vpack.c.bf16 %v759_v61, %v751_v55  ;;  %v848_v61 = vld [vmem:[%s6366_s28 + $0xf18] sm:$0xff] }
 0x15b   : > { %4632 = vmatpush1.bf16.msra.mxu0 %v4631_v54  ;;  %v4651_v53 = vpack.c.bf16 %v937_v47, %v929_v46  ;;  %v4411_v54 = vpack.c.bf16 %v743_v48, %v735_v44  ;;  %v1017_v44 = vld [vmem:[%s6366_s28 + $0x1460] sm:$0xff]  ;;  %v823_v46 = vld [vmem:[%s6366_s28 + $0xe50] sm:$0xff]  ;;  %v1026_v47 = vld [vmem:[%s6366_s28 + $0x14a8] sm:$0xff] }
 0x15c   : > { %4634 = vmatprep.subr.bf16.mxu0 %v4633_v59  ;;  %v953_v59 = vld [vmem:[%s6366_s28 + $0x1260] sm:$0xff]  ;;  %v832_v48 = vld [vmem:[%s6366_s28 + $0xe98] sm:$0xff] }
 0x15d   : > { %4392 = vmatpush1.bf16.msra.mxu1 %v4391_v56  ;;  %v4653_v56 = vpack.c.bf16 %v954_v50, %v946_v49  ;;  %v4655_v1 = vpack.c.bf16 %v953_v59, %v945_v58  ;;  %v840_v49 = vld [vmem:[%s6366_s28 + $0xed8] sm:$0xff]  ;;  %v1033_v55 = vld [vmem:[%s6366_s28 + $0x14e0] sm:$0xff]  ;;  %v839_v58 = vld [vmem:[%s6366_s28 + $0xed0] sm:$0xff] }
 0x15e   : > { %4394 = vmatprep.subr.bf16.mxu1 %v4393_v62  ;;  %v962_v62 = vld [vmem:[%s6366_s28 + $0x12a8] sm:$0xff] }
 0x15f   : > { %4636 = vmatpush1.bf16.msra.mxu0 %v4635_v4  ;;  %v4657_v4 = vpack.c.bf16 %v970_v16, %v962_v62  ;;  %v1042_v59 = vld [vmem:[%s6366_s28 + $0x1528] sm:$0xff]  ;;  %v856_v62 = vld [vmem:[%s6366_s28 + $0xf58] sm:$0xff] }
 0x160   : > { %4638 = vmatprep.subr.bf16.mxu0 %v4637_v7  ;;  %v4417_v7 = vpack.c.bf16 %v776_v0, %v768_v63  ;;  %v4435_v63 = vpack.c.bf16 %v839_v58, %v831_v52  ;;  %v847_v0 = vld [vmem:[%s6366_s28 + $0xf10] sm:$0xff]  ;;  %v1105_v52 = vld [vmem:[%s6366_s28 + $0x1720] sm:$0xff]  ;;  %v1130_v58 = vld [vmem:[%s6366_s28 + $0x17e8] sm:$0xff] }
 0x161   : > { %4396 = vmatpush1.bf16.msra.mxu1 %v4395_v5  ;;  %v961_v5 = vld [vmem:[%s6366_s28 + $0x12a0] sm:$0xff] }
 0x162   : > { %4398 = vmatprep.subr.bf16.mxu1 %v4397_v10  ;;  %1779 = vmatmul.mubr.f32.vlgmr.msra.gmra.mrb[4].mxu0 %v6648_v12  ;;  %v930_v12 = vld [vmem:[%s6366_s28 + $0x11a8] sm:$0xff]  ;;  %v4659_v15 = vpack.c.bf16 %v969_v6, %v961_v5  ;;  %v855_v5 = vld [vmem:[%s6366_s28 + $0xf50] sm:$0xff] }
 0x163   : > { %4640 = vmatpush1.bf16.msra.mxu0 %v4639_v21  ;;  %1784 = vmatprep.mubr.f32.mxu0 %v6650_v13  ;;  %v4647_v13 = vpack.c.bf16 %v921_v38, %v913_v37  ;;  %v4649_v45 = vpack.c.bf16 %v938_v40, %v930_v12  ;;  %v986_v10 = vld [vmem:[%s6366_s28 + $0x1368] sm:$0xff]  ;;  %v807_v37 = vld [vmem:[%s6366_s28 + $0xdd0] sm:$0xff]  ;;  %v824_v12 = vld [vmem:[%s6366_s28 + $0xe58] sm:$0xff] }
 0x164   : > { %4642 = vmatprep.subr.bf16.mxu0 %v4641_v24  ;;  %v4661_v21 = vpack.c.bf16 %v986_v10, %v978_v9  ;;  %v4421_v24 = vpack.c.bf16 %v792_v14, %v784_v11  ;;  %v1010_v38 = vld [vmem:[%s6366_s28 + $0x1428] sm:$0xff]  ;;  %v872_v9 = vld [vmem:[%s6366_s28 + $0xfd8] sm:$0xff]  ;;  %v4439_v11 = vpack.c.bf16 %v855_v5, %v847_v0  ;;  %v863_v14 = vld [vmem:[%s6366_s28 + $0xf90] sm:$0xff] }
 0x165   : > { %4400 = vmatpush1.bf16.msra.mxu1 %v4399_v22  ;;  %v977_v22 = vld [vmem:[%s6366_s28 + $0x1320] sm:$0xff]  ;;  %v1058_v6 = vld [vmem:[%s6366_s28 + $0x15a8] sm:$0xff]  ;;  %v927_v0 = vld [vmem:[%s6366_s28 + $0x1190] sm:$0xff] }
 0x166   : > { %4402 = vmatprep.subr.bf16.mxu1 %v4401_v28  ;;  %1785 = vmatmul.mubr.f32.gmra.mrb[6].mxu0 %v6661_v30  ;;  %v4409_v30 = vpack.c.bf16 %v744_v27, %v736_v41  ;;  %v1002_v28 = vld [vmem:[%s6366_s28 + $0x13e8] sm:$0xff]  ;;  %v4663_v31 = vpack.c.bf16 %v985_v23, %v977_v22  ;;  %v4427_v41 = vpack.c.bf16 %v807_v37, %v799_v17  ;;  %v815_v27 = vld [vmem:[%s6366_s28 + $0xe10] sm:$0xff]  ;;  %v1081_v17 = vld [vmem:[%s6366_s28 + $0x1660] sm:$0xff] }
 0x167   : > { %4644 = vmatpush1.bf16.msra.mxu0 %v4643_v33  ;;  %1855 = vmatprep.mubr.f32.mxu0 %v6841_v42  ;;  %v4665_v33 = vpack.c.bf16 %v1002_v28, %v994_v26  ;;  %v4431_v51 = vpack.c.bf16 %v823_v46, %v815_v27  ;;  %v871_v22 = vld [vmem:[%s6366_s28 + $0xfd0] sm:$0xff]  ;;  %v1074_v23 = vld [vmem:[%s6366_s28 + $0x1628] sm:$0xff]  ;;  %v888_v26 = vld [vmem:[%s6366_s28 + $0x1058] sm:$0xff] }
 0x168   : > { %4646 = vmatprep.subr.bf16.mxu0 %v4645_v36  ;;  %v4425_v36 = vpack.c.bf16 %v808_v29, %v800_v57  ;;  %v4443_v57 = vpack.c.bf16 %v871_v22, %v863_v14  ;;  %v879_v29 = vld [vmem:[%s6366_s28 + $0x1010] sm:$0xff]  ;;  %v896_v37 = vld [vmem:[%s6366_s28 + $0x1098] sm:$0xff]  ;;  %v1097_v27 = vld [vmem:[%s6366_s28 + $0x16e0] sm:$0xff] }
 0x169   : > { %4404 = vmatpush1.bf16.msra.mxu1 %v4403_v34  ;;  %v993_v34 = vld [vmem:[%s6366_s28 + $0x13a0] sm:$0xff]  ;;  %v912_v46 = vld [vmem:[%s6366_s28 + $0x1118] sm:$0xff]  ;;  %v935_v5 = vld [vmem:[%s6366_s28 + $0x11d0] sm:$0xff] }
 0x16a   : > { %4406 = vmatprep.subr.bf16.mxu1 %v4405_v39  ;;  %v1018_v39 = vld [vmem:[%s6366_s28 + $0x1468] sm:$0xff]  ;;  %v4667_v40 = vpack.c.bf16 %v1001_v35, %v993_v34  ;;  %v887_v34 = vld [vmem:[%s6366_s28 + $0x1050] sm:$0xff]  ;;  %v2192_v22 = vld [vmem:[%s6374_s8 + $0x68] sm:$0xff] }
 0x16b   : > { %4648 = vmatpush1.bf16.msra.mxu0 %v4647_v13  ;;  %v4669_v13 = vpack.c.bf16 %v1018_v39, %v1010_v38  ;;  %v1090_v35 = vld [vmem:[%s6366_s28 + $0x16a8] sm:$0xff]  ;;  %v904_v38 = vld [vmem:[%s6366_s28 + $0x10d8] sm:$0xff]  ;;  %v943_v14 = vld [vmem:[%s6366_s28 + $0x1210] sm:$0xff] }
 0x16c   : > { %4650 = vmatprep.subr.bf16.mxu0 %v4649_v45  ;;  %v4429_v45 = vpack.c.bf16 %v824_v12, %v816_v20  ;;  %v4447_v20 = vpack.c.bf16 %v887_v34, %v879_v29  ;;  %v895_v12 = vld [vmem:[%s6366_s28 + $0x1090] sm:$0xff]  ;;  %v2204_v34 = vld [vmem:[%s6374_s8 + $0xc8] sm:$0xff] }
 0x16d   : > { %4408 = vmatpush1.bf16.msra.mxu1 %v4407_v43  ;;  %v1009_v43 = vld [vmem:[%s6366_s28 + $0x1420] sm:$0xff] }
 0x16e   : > { %4410 = vmatprep.subr.bf16.mxu1 %v4409_v30  ;;  %v1034_v30 = vld [vmem:[%s6366_s28 + $0x14e8] sm:$0xff]  ;;  %v4671_v50 = vpack.c.bf16 %v1017_v44, %v1009_v43  ;;  %v903_v43 = vld [vmem:[%s6366_s28 + $0x10d0] sm:$0xff] }
 0x16f   : > { %4652 = vmatpush1.bf16.msra.mxu0 %v4651_v53  ;;  %v4673_v53 = vpack.c.bf16 %v1034_v30, %v1026_v47  ;;  %v1106_v44 = vld [vmem:[%s6366_s28 + $0x1728] sm:$0xff]  ;;  %v920_v47 = vld [vmem:[%s6366_s28 + $0x1158] sm:$0xff]  ;;  %v5876_v30 = vld [vmem:[#allocation2 + $0x10] sm:$0xff] }
 0x170   : > { %4654 = vmatprep.subr.bf16.mxu0 %v4653_v56  ;;  %v4433_v56 = vpack.c.bf16 %v840_v49, %v832_v48  ;;  %v4451_v49 = vpack.c.bf16 %v903_v43, %v895_v12 }
 0x171   : > { %4412 = vmatpush1.bf16.msra.mxu1 %v4411_v54  ;;  %v1025_v54 = vld [vmem:[%s6366_s28 + $0x14a0] sm:$0xff] }
 0x172   : > { %4414 = vmatprep.subr.bf16.mxu1 %v4413_v60  ;;  %v1050_v60 = vld [vmem:[%s6366_s28 + $0x1568] sm:$0xff]  ;;  %v4675_v16 = vpack.c.bf16 %v1033_v55, %v1025_v54  ;;  %v4453_v54 = vpack.c.bf16 %v920_v47, %v912_v46  ;;  %v919_v55 = vld [vmem:[%s6366_s28 + $0x1150] sm:$0xff]  ;;  %v992_v47 = vld [vmem:[%s6366_s28 + $0x1398] sm:$0xff] }
 0x173   : > { %4656 = vmatpush1.bf16.msra.mxu0 %v4655_v1  ;;  %v4677_v1 = vpack.c.bf16 %v1050_v60, %v1042_v59  ;;  %v5877_v59 = vld [vmem:[#allocation2 + $0x48] sm:$0xff]  ;;  %v928_v60 = vld [vmem:[%s6366_s28 + $0x1198] sm:$0xff] }
 0x174   : > { %4658 = vmatprep.subr.bf16.mxu0 %v4657_v4  ;;  %v4437_v4 = vpack.c.bf16 %v856_v62, %v848_v61  ;;  %v936_v61 = vld [vmem:[%s6366_s28 + $0x11d8] sm:$0xff]  ;;  %v2222_v46 = vld [vmem:[%s6374_s8 + $0x158] sm:$0xff] }
 0x175   : > { %4416 = vmatpush1.bf16.msra.mxu1 %v4415_v2  ;;  %v1041_v2 = vld [vmem:[%s6366_s28 + $0x1520] sm:$0xff] }
 0x176   : > { %4418 = vmatprep.subr.bf16.mxu1 %v4417_v7  ;;  %v1066_v7 = vld [vmem:[%s6366_s28 + $0x15e8] sm:$0xff]  ;;  %v4679_v10 = vpack.c.bf16 %v1049_v3, %v1041_v2  ;;  %v1121_v2 = vld [vmem:[%s6366_s28 + $0x17a0] sm:$0xff] }
 0x177   : > { %4660 = vmatpush1.bf16.msra.mxu0 %v4659_v15  ;;  %v4681_v15 = vpack.c.bf16 %v1066_v7, %v1058_v6  ;;  %v1129_v3 = vld [vmem:[%s6366_s28 + $0x17e0] sm:$0xff]  ;;  %v2180_v6 = vld [vmem:[%s6374_s8 + $0x8] sm:$0xff]  ;;  %v2186_v7 = vld [vmem:[%s6374_s8 + $0x38] sm:$0xff] }
 0x178   : > { %4662 = vmatprep.subr.bf16.mxu0 %v4661_v21  ;;  %v4441_v21 = vpack.c.bf16 %v872_v9, %v864_v8  ;;  %v944_v8 = vld [vmem:[%s6366_s28 + $0x1218] sm:$0xff] }
 0x179   : > { %4420 = vmatpush1.bf16.msra.mxu1 %v4419_v18  ;;  %v1057_v18 = vld [vmem:[%s6366_s28 + $0x15a0] sm:$0xff]  ;;  %v952_v9 = vld [vmem:[%s6366_s28 + $0x1258] sm:$0xff] }
 0x17a   : > { %4422 = vmatprep.subr.bf16.mxu1 %v4421_v24  ;;  %v1082_v24 = vld [vmem:[%s6366_s28 + $0x1668] sm:$0xff]  ;;  %v4683_v28 = vpack.c.bf16 %v1065_v19, %v1057_v18  ;;  %v2179_v18 = vld [vmem:[%s6374_s8] sm:$0xff]  ;;  %v2185_v19 = vld [vmem:[%s6374_s8 + $0x30] sm:$0xff] }
 0x17b   : > { %4664 = vmatpush1.bf16.msra.mxu0 %v4663_v31  ;;  %v4685_v31 = vpack.c.bf16 %v1082_v24, %v1074_v23  ;;  %v2198_v23 = vld [vmem:[%s6374_s8 + $0x98] sm:$0xff]  ;;  %v960_v24 = vld [vmem:[%s6366_s28 + $0x1298] sm:$0xff] }
 0x17c   : > { %4666 = vmatprep.subr.bf16.mxu0 %v4665_v33  ;;  %v4445_v33 = vpack.c.bf16 %v888_v26, %v880_v25  ;;  %v968_v25 = vld [vmem:[%s6366_s28 + $0x12d8] sm:$0xff]  ;;  %v4895_v26 = vpack.c.bf16 %v2185_v19, %v2179_v18  ;;  %v4897_v29 = vpack.c.bf16 %v2198_v23, %v2192_v22  ;;  %v2245_v18 = vld [vmem:[%s6374_s8 + $0x210] sm:$0xff]  ;;  %v2258_v22 = vld [vmem:[%s6374_s8 + $0x278] sm:$0xff] }
 0x17d   : > { %4424 = vmatpush1.bf16.msra.mxu1 %v4423_v32  ;;  %v1073_v32 = vld [vmem:[%s6366_s28 + $0x1620] sm:$0xff]  ;;  %v1040_v23 = vld [vmem:[%s6366_s28 + $0x1518] sm:$0xff] }
 0x17e   : > { %4426 = vmatprep.subr.bf16.mxu1 %v4425_v36  ;;  %v1098_v36 = vld [vmem:[%s6366_s28 + $0x16e8] sm:$0xff]  ;;  %v4687_v39 = vpack.c.bf16 %v1081_v17, %v1073_v32  ;;  %v2197_v32 = vld [vmem:[%s6374_s8 + $0x90] sm:$0xff]  ;;  %v4465_v17 = vpack.c.bf16 %v968_v25, %v960_v24  ;;  %v1048_v24 = vld [vmem:[%s6366_s28 + $0x1558] sm:$0xff] }
 0x17f   : > { %4668 = vmatpush1.bf16.msra.mxu0 %v4667_v40  ;;  %v4689_v40 = vpack.c.bf16 %v1098_v36, %v1090_v35  ;;  %v2210_v35 = vld [vmem:[%s6374_s8 + $0xf8] sm:$0xff]  ;;  %v976_v36 = vld [vmem:[%s6366_s28 + $0x1318] sm:$0xff] }
 0x180   : > { %4670 = vmatprep.subr.bf16.mxu0 %v4669_v13  ;;  %v4449_v13 = vpack.c.bf16 %v904_v38, %v896_v37  ;;  %v984_v37 = vld [vmem:[%s6366_s28 + $0x1358] sm:$0xff]  ;;  %v6965_v38 = vld [vmem:[#allocation2 + $0x20] sm:$0xff] }
 0x181   : > { %4428 = vmatpush1.bf16.msra.mxu1 %v4427_v41  ;;  %v1089_v41 = vld [vmem:[%s6366_s28 + $0x16a0] sm:$0xff]  ;;  %v4469_v43 = vpack.c.bf16 %v984_v37, %v976_v36  ;;  %v1056_v36 = vld [vmem:[%s6366_s28 + $0x1598] sm:$0xff] }
 0x182   : > { %4430 = vmatprep.subr.bf16.mxu1 %v4429_v45  ;;  %v1114_v45 = vld [vmem:[%s6366_s28 + $0x1768] sm:$0xff]  ;;  %v4691_v48 = vpack.c.bf16 %v1097_v27, %v1089_v41  ;;  %v4901_v41 = vpack.c.bf16 %v2210_v35, %v2204_v34  ;;  %v2203_v27 = vld [vmem:[%s6374_s8 + $0xc0] sm:$0xff]  ;;  %v1064_v37 = vld [vmem:[%s6366_s28 + $0x15d8] sm:$0xff] }
 0x183   : > { %4672 = vmatpush1.bf16.msra.mxu0 %v4671_v50  ;;  %v911_v50 = vld [vmem:[%s6366_s28 + $0x1110] sm:$0xff]  ;;  %v2270_v34 = vld [vmem:[%s6374_s8 + $0x2d8] sm:$0xff] }
 0x184   : > { %4674 = vmatprep.subr.bf16.mxu0 %v4673_v53  ;;  %v1113_v53 = vld [vmem:[%s6366_s28 + $0x1760] sm:$0xff] }
 0x185   : > { %4432 = vmatpush1.bf16.msra.mxu1 %v4431_v51  ;;  %v4693_v51 = vpack.c.bf16 %v1114_v45, %v1106_v44  ;;  %v4695_v62 = vpack.c.bf16 %v1113_v53, %v1105_v52  ;;  %v983_v44 = vld [vmem:[%s6366_s28 + $0x1350] sm:$0xff]  ;;  %v2216_v45 = vld [vmem:[%s6374_s8 + $0x128] sm:$0xff] }
 0x186   : > { %4434 = vmatprep.subr.bf16.mxu1 %v4433_v56  ;;  %v1122_v56 = vld [vmem:[%s6366_s28 + $0x17a8] sm:$0xff]  ;;  %v4905_v52 = vpack.c.bf16 %v2222_v46, %v2216_v45  ;;  %v2215_v53 = vld [vmem:[%s6374_s8 + $0x120] sm:$0xff]  ;;  %v2276_v46 = vld [vmem:[%s6374_s8 + $0x308] sm:$0xff] }
 0x187   : > { %4676 = vmatpush1.bf16.msra.mxu0 %v4675_v16  ;;  %v5878_v16 = vld [vmem:[#allocation2 + $0x40] sm:$0xff]  ;;  %v1063_v45 = vld [vmem:[%s6366_s28 + $0x15d0] sm:$0xff] }
 0x188   : > { %4678 = vmatprep.subr.bf16.mxu0 %v4677_v1  ;;  %v4697_v1 = vpack.c.bf16 %v1130_v58, %v1122_v56  ;;  %v999_v56 = vld [vmem:[%s6366_s28 + $0x13d0] sm:$0xff]  ;;  %v2228_v58 = vld [vmem:[%s6374_s8 + $0x188] sm:$0xff] }
 0x189   : > { %4436 = vmatpush1.bf16.msra.mxu1 %v4435_v63  ;;  %v4455_v63 = vpack.c.bf16 %v919_v55, %v911_v50 }
 0x18a   : > { %4438 = vmatprep.subr.bf16.mxu1 %v4437_v4  ;;  %v4457_v4 = vpack.c.bf16 %v936_v61, %v928_v60  ;;  %v1008_v60 = vld [vmem:[%s6366_s28 + $0x1418] sm:$0xff] }
 0x18b   : > { %4680 = vmatpush1.bf16.msra.mxu0 %v4679_v10  ;;  %v4699_v10 = vpack.c.bf16 %v1129_v3, %v1121_v2  ;;  %v1016_v61 = vld [vmem:[%s6366_s28 + $0x1458] sm:$0xff]  ;;  %v2233_v2 = vld [vmem:[%s6374_s8 + $0x1b0] sm:$0xff] }
 0x18c   : > { %4682 = vmatprep.subr.bf16.mxu0 %v4681_v15  ;;  %v4893_v15 = vpack.c.bf16 %v2186_v7, %v2180_v6  ;;  %v4477_v3 = vpack.c.bf16 %v1016_v61, %v1008_v60  ;;  %v2246_v6 = vld [vmem:[%s6374_s8 + $0x218] sm:$0xff]  ;;  %v1024_v7 = vld [vmem:[%s6366_s28 + $0x1498] sm:$0xff]  ;;  %v1079_v60 = vld [vmem:[%s6366_s28 + $0x1650] sm:$0xff] }
 0x18d   : > { %4440 = vmatpush1.bf16.msra.mxu1 %v4439_v11  ;;  %v4459_v11 = vpack.c.bf16 %v935_v5, %v927_v0  ;;  %v2240_v5 = vld [vmem:[%s6374_s8 + $0x1e8] sm:$0xff] }
 0x18e   : > { %4442 = vmatprep.subr.bf16.mxu1 %v4441_v21  ;;  %v4461_v21 = vpack.c.bf16 %v952_v9, %v944_v8  ;;  %v1032_v8 = vld [vmem:[%s6366_s28 + $0x14d8] sm:$0xff] }
 0x18f   : > { %4684 = vmatpush1.bf16.msra.mxu0 %v4683_v28  ;;  %v4481_v19 = vpack.c.bf16 %v1032_v8, %v1024_v7  ;;  %v2288_v61 = vld [vmem:[%s6374_s8 + $0x368] sm:$0xff]  ;;  %v1095_v7 = vld [vmem:[%s6366_s28 + $0x16d0] sm:$0xff] }
 0x190   : > { %4686 = vmatprep.subr.bf16.mxu0 %v4685_v31  ;;  %v2191_v31 = vld [vmem:[%s6374_s8 + $0x60] sm:$0xff]  ;;  %v2300_v8 = vld [vmem:[%s6374_s8 + $0x3c8] sm:$0xff] }
 0x191   : > { %4444 = vmatpush1.bf16.msra.mxu1 %v4443_v57  ;;  %v959_v57 = vld [vmem:[%s6366_s28 + $0x1290] sm:$0xff] }
 0x192   : > { %4446 = vmatprep.subr.bf16.mxu1 %v4445_v33  ;;  %v967_v33 = vld [vmem:[%s6366_s28 + $0x12d0] sm:$0xff] }
 0x193   : > { %4688 = vmatpush1.bf16.msra.mxu0 %v4687_v39  ;;  %v4899_v39 = vpack.c.bf16 %v2197_v32, %v2191_v31  ;;  %v4467_v12 = vpack.c.bf16 %v967_v33, %v959_v57  ;;  %v2257_v31 = vld [vmem:[%s6374_s8 + $0x270] sm:$0xff]  ;;  %v4485_v32 = vpack.c.bf16 %v1048_v24, %v1040_v23  ;;  %v2264_v33 = vld [vmem:[%s6374_s8 + $0x2a8] sm:$0xff]  ;;  %v1111_v23 = vld [vmem:[%s6366_s28 + $0x1750] sm:$0xff] }
 0x194   : > { %1548 = vmatmul.mubr.f32.vlgmr.msra.gmra.mrb[4].mxu1 %v5876_v30  ;;  %4690 = vmatprep.subr.bf16.mxu0 %v4689_v40  ;;  %v975_v40 = vld [vmem:[%s6366_s28 + $0x1310] sm:$0xff]  ;;  %v1000_v30 = vld [vmem:[%s6366_s28 + $0x13d8] sm:$0xff] }
 0x195   : > { %4448 = vmatpush1.bf16.msra.mxu1 %v4447_v20  ;;  %1553 = vmatprep.mubr.f32.mxu1 %v5877_v59  ;;  %v6968_v20 = vld [vmem:[#allocation2 + $0x58] sm:$0xff]  ;;  %v4471_v50 = vpack.c.bf16 %v983_v44, %v975_v40  ;;  %v4473_v55 = vpack.c.bf16 %v1000_v30, %v992_v47  ;;  %v2234_v59 = vld [vmem:[%s6374_s8 + $0x1b8] sm:$0xff]  ;;  %v4489_v44 = vpack.c.bf16 %v1064_v37, %v1056_v36  ;;  %v1127_v36 = vld [vmem:[%s6366_s28 + $0x17d0] sm:$0xff] }
 0x196   : > { %4450 = vmatprep.subr.bf16.mxu1 %v4449_v13  ;;  %v2209_v13 = vld [vmem:[%s6374_s8 + $0xf0] sm:$0xff]  ;;  %v4909_v0 = vpack.c.bf16 %v2234_v59, %v2228_v58  ;;  %v2282_v47 = vld [vmem:[%s6374_s8 + $0x338] sm:$0xff]  ;;  %v2312_v24 = vld [vmem:[%s6374_s8 + $0x428] sm:$0xff] }
 0x197   : > { %4692 = vmatpush1.bf16.msra.mxu0 %v4691_v48  ;;  %v6979_v48 = vld [vmem:[#allocation2 + $0x50] sm:$0xff]  ;;  %v2281_v58 = vld [vmem:[%s6374_s8 + $0x330] sm:$0xff]  ;;  %v2324_v37 = vld [vmem:[%s6374_s8 + $0x488] sm:$0xff] }
 0x198   : > { %1554 = vmatmul.mubr.f32.gmra.mrb[6].mxu1 %v5878_v16  ;;  %4694 = vmatprep.subr.bf16.mxu0 %v4693_v51  ;;  %v991_v51 = vld [vmem:[%s6366_s28 + $0x1390] sm:$0xff] }
 0x199   : > { %4452 = vmatpush1.bf16.msra.mxu1 %v4451_v49  ;;  %1624 = vmatprep.mubr.f32.mxu1 %v6841_v42  ;;  %v951_v42 = vld [vmem:[%s6366_s28 + $0x1250] sm:$0xff]  ;;  %v4903_v49 = vpack.c.bf16 %v2209_v13, %v2203_v27  ;;  %v4475_v16 = vpack.c.bf16 %v999_v56, %v991_v51  ;;  %v4921_v27 = vpack.c.bf16 %v2270_v34, %v2264_v33  ;;  %v2317_v33 = vld [vmem:[%s6374_s8 + $0x450] sm:$0xff] }
 0x19a   : > { %4454 = vmatprep.subr.bf16.mxu1 %v4453_v54  ;;  %v4463_v28 = vpack.c.bf16 %v951_v42, %v943_v14  ;;  %v2221_v54 = vld [vmem:[%s6374_s8 + $0x150] sm:$0xff]  ;;  %v4913_v14 = vpack.c.bf16 %v2246_v6, %v2240_v5  ;;  %v2252_v42 = vld [vmem:[%s6374_s8 + $0x248] sm:$0xff]  ;;  %v2263_v13 = vld [vmem:[%s6374_s8 + $0x2a0] sm:$0xff] }
 0x19b   : > { %4696 = vmatpush1.bf16.msra.mxu0 %v4695_v62  ;;  %v4907_v62 = vpack.c.bf16 %v2221_v54, %v2215_v53  ;;  %v4917_v57 = vpack.c.bf16 %v2258_v22, %v2252_v42  ;;  %v1071_v54 = vld [vmem:[%s6366_s28 + $0x1610] sm:$0xff]  ;;  %v2293_v5 = vld [vmem:[%s6374_s8 + $0x390] sm:$0xff] }
 0x19c   : > { %4698 = vmatprep.subr.bf16.mxu0 %v4697_v1  ;;  %v2227_v1 = vld [vmem:[%s6374_s8 + $0x180] sm:$0xff]  ;;  %v2305_v42 = vld [vmem:[%s6374_s8 + $0x3f0] sm:$0xff] }
 0x19d   : > { %4456 = vmatpush1.bf16.msra.mxu1 %v4455_v63  ;;  %v1007_v63 = vld [vmem:[%s6366_s28 + $0x1410] sm:$0xff]  ;;  %v4911_v9 = vpack.c.bf16 %v2233_v2, %v2227_v1  ;;  %v4495_v1 = vpack.c.bf16 %v1079_v60, %v1071_v54  ;;  %v2342_v54 = vld [vmem:[%s6374_s8 + $0x518] sm:$0xff]  ;;  %v2341_v60 = vld [vmem:[%s6374_s8 + $0x510] sm:$0xff] }
 0x19e   : > { %4458 = vmatprep.subr.bf16.mxu1 %v4457_v4  ;;  %v1015_v4 = vld [vmem:[%s6366_s28 + $0x1450] sm:$0xff] }
 0x19f   : > { %4700 = vmatpush1.bf16.msra.mxu0 %v4699_v10  ;;  %v4479_v10 = vpack.c.bf16 %v1015_v4, %v1007_v63  ;;  %v2275_v56 = vld [vmem:[%s6374_s8 + $0x300] sm:$0xff]  ;;  %v1096_v63 = vld [vmem:[%s6366_s28 + $0x16d8] sm:$0xff] }
 0x1a0   : > { %4894 = vmatprep.subr.bf16.mxu0 %v4893_v15  ;;  %v2239_v15 = vld [vmem:[%s6374_s8 + $0x1e0] sm:$0xff] }
 0x1a1   : > { %4460 = vmatpush1.bf16.msra.mxu1 %v4459_v11  ;;  %v1023_v11 = vld [vmem:[%s6366_s28 + $0x1490] sm:$0xff]  ;;  %v4915_v25 = vpack.c.bf16 %v2245_v18, %v2239_v15 }
 0x1a2   : > { %4462 = vmatprep.subr.bf16.mxu1 %v4461_v21  ;;  %1856 = vmatmul.mubr.f32.vlgmr.msra.gmra.mrb[4].mxu0 %v6965_v38  ;;  %v1031_v21 = vld [vmem:[%s6366_s28 + $0x14d0] sm:$0xff] }
 0x1a3   : > { %4896 = vmatpush1.bf16.msra.mxu0 %v4895_v26  ;;  %1861 = vmatprep.mubr.f32.mxu0 %v6968_v20  ;;  %v4483_v26 = vpack.c.bf16 %v1031_v21, %v1023_v11  ;;  %v1087_v2 = vld [vmem:[%s6366_s28 + $0x1690] sm:$0xff]  ;;  %v1112_v11 = vld [vmem:[%s6366_s28 + $0x1758] sm:$0xff] }
 0x1a4   : > { %4898 = vmatprep.subr.bf16.mxu0 %v4897_v29  ;;  %v2251_v29 = vld [vmem:[%s6374_s8 + $0x240] sm:$0xff]  ;;  %v4499_v15 = vpack.c.bf16 %v1095_v7, %v1087_v2  ;;  %v412_v2 = vld [vmem:[%s6366_s28 + $0x178] sm:$0xff] }
 0x1a5   : > { %4464 = vmatpush1.bf16.msra.mxu1 %v4463_v28  ;;  %v1039_v28 = vld [vmem:[%s6366_s28 + $0x1510] sm:$0xff] }
 0x1a6   : > { %4466 = vmatprep.subr.bf16.mxu1 %v4465_v17  ;;  %1862 = vmatmul.mubr.f32.gmra.mrb[6].mxu0 %v6979_v48  ;;  %v1047_v17 = vld [vmem:[%s6366_s28 + $0x1550] sm:$0xff] }
 0x1a7   : > { %4900 = vmatpush1.bf16.msra.mxu0 %v4899_v39  ;;  %v4487_v40 = vpack.c.bf16 %v1047_v17, %v1039_v28  ;;  %v2287_v4 = vld [vmem:[%s6374_s8 + $0x360] sm:$0xff]  ;;  %v1128_v28 = vld [vmem:[%s6366_s28 + $0x17d8] sm:$0xff] }
 0x1a8   : > { %4902 = vmatprep.subr.bf16.mxu0 %v4901_v41  ;;  %v1055_v41 = vld [vmem:[%s6366_s28 + $0x1590] sm:$0xff] }
 0x1a9   : > { %4468 = vmatpush1.bf16.msra.mxu1 %v4467_v12  ;;  %v4919_v12 = vpack.c.bf16 %v2257_v31, %v2251_v29  ;;  %v4491_v53 = vpack.c.bf16 %v1063_v45, %v1055_v41  ;;  %v1103_v18 = vld [vmem:[%s6366_s28 + $0x1710] sm:$0xff]  ;;  %v380_v41 = vld [vmem:[%s6366_s28 + $0x78] sm:$0xff]  ;;  %v2329_v45 = vld [vmem:[%s6374_s8 + $0x4b0] sm:$0xff] }
 0x1aa   : > { %4470 = vmatprep.subr.bf16.mxu1 %v4469_v43  ;;  %v2269_v43 = vld [vmem:[%s6374_s8 + $0x2d0] sm:$0xff]  ;;  %v2299_v21 = vld [vmem:[%s6374_s8 + $0x3c0] sm:$0xff]  ;;  %v4503_v29 = vpack.c.bf16 %v1111_v23, %v1103_v18 }
 0x1ab   : > { %4904 = vmatpush1.bf16.msra.mxu0 %v4903_v49  ;;  %v1072_v49 = vld [vmem:[%s6366_s28 + $0x1618] sm:$0xff]  ;;  %v1119_v31 = vld [vmem:[%s6366_s28 + $0x1790] sm:$0xff] }
 0x1ac   : > { %4906 = vmatprep.subr.bf16.mxu0 %v4905_v52  ;;  %v4923_v52 = vpack.c.bf16 %v2269_v43, %v2263_v13  ;;  %v2311_v17 = vld [vmem:[%s6374_s8 + $0x420] sm:$0xff]  ;;  %v4507_v13 = vpack.c.bf16 %v1127_v36, %v1119_v31  ;;  %v460_v36 = vld [vmem:[%s6366_s28 + $0x2f8] sm:$0xff] }
 0x1ad   : > { %4472 = vmatpush1.bf16.msra.mxu1 %v4471_v50  ;;  %v1080_v50 = vld [vmem:[%s6366_s28 + $0x1658] sm:$0xff]  ;;  %v2347_v7 = vld [vmem:[%s6374_s8 + $0x540] sm:$0xff] }
 0x1ae   : > { %4474 = vmatprep.subr.bf16.mxu1 %v4473_v55  ;;  %v4925_v55 = vpack.c.bf16 %v2282_v47, %v2276_v46  ;;  %v4493_v59 = vpack.c.bf16 %v1080_v50, %v1072_v49  ;;  %v371_v47 = vld [vmem:[%s6366_s28 + $0x30] sm:$0xff]  ;;  %v388_v50 = vld [vmem:[%s6366_s28 + $0xb8] sm:$0xff] }
 0x1af   : > { %4908 = vmatpush1.bf16.msra.mxu0 %v4907_v62  ;;  %v2294_v62 = vld [vmem:[%s6374_s8 + $0x398] sm:$0xff]  ;;  %v379_v49 = vld [vmem:[%s6366_s28 + $0x70] sm:$0xff] }
 0x1b0   : > { %4910 = vmatprep.subr.bf16.mxu0 %v4909_v0  ;;  %v4927_v0 = vpack.c.bf16 %v2281_v58, %v2275_v56  ;;  %v4703_v56 = vpack.c.bf16 %v379_v49, %v371_v47  ;;  %v387_v58 = vld [vmem:[%s6366_s28 + $0xb0] sm:$0xff] }
 0x1b1   : > { %4476 = vmatpush1.bf16.msra.mxu1 %v4475_v16  ;;  %v1088_v16 = vld [vmem:[%s6366_s28 + $0x1698] sm:$0xff] }
 0x1b2   : > { %4478 = vmatprep.subr.bf16.mxu1 %v4477_v3  ;;  %v4929_v3 = vpack.c.bf16 %v2294_v62, %v2288_v61  ;;  %v4497_v6 = vpack.c.bf16 %v1096_v63, %v1088_v16  ;;  %v395_v62 = vld [vmem:[%s6366_s28 + $0xf0] sm:$0xff]  ;;  %v2348_v63 = vld [vmem:[%s6374_s8 + $0x548] sm:$0xff] }
 0x1b3   : > { %4912 = vmatpush1.bf16.msra.mxu0 %v4911_v9  ;;  %v2306_v9 = vld [vmem:[%s6374_s8 + $0x3f8] sm:$0xff] }
 0x1b4   : > { %4914 = vmatprep.subr.bf16.mxu0 %v4913_v14  ;;  %v4931_v14 = vpack.c.bf16 %v2293_v5, %v2287_v4  ;;  %v4707_v4 = vpack.c.bf16 %v395_v62, %v387_v58  ;;  %v403_v5 = vld [vmem:[%s6366_s28 + $0x130] sm:$0xff] }
 0x1b5   : > { %4480 = vmatpush1.bf16.msra.mxu1 %v4479_v10  ;;  %v7012_v35 = vpop.f32.mrb[0].mxu0  ;;  %v1104_v10 = vld [vmem:[%s6366_s28 + $0x1718] sm:$0xff] }
 0x1b6   : > { %4482 = vmatprep.subr.bf16.mxu1 %v4481_v19  ;;  %v7016_v39 = vpop.f32.mrb[1].mxu0  ;;  %v4933_v19 = vpack.c.bf16 %v2306_v9, %v2300_v8  ;;  %v4501_v22 = vpack.c.bf16 %v1112_v11, %v1104_v10  ;;  %v2353_v8 = vld [vmem:[%s6374_s8 + $0x570] sm:$0xff]  ;;  %v411_v10 = vld [vmem:[%s6366_s28 + $0x170] sm:$0xff]  ;;  %v2360_v11 = vld [vmem:[%s6374_s8 + $0x5a8] sm:$0xff] }
 0x1b7   : > { %4916 = vmatpush1.bf16.msra.mxu0 %v4915_v25  ;;  %v2318_v25 = vld [vmem:[%s6374_s8 + $0x458] sm:$0xff]  ;;  %v4951_v18 = vpack.c.bf16 %v2353_v8, %v2347_v7 }
 0x1b8   : > { %4918 = vmatprep.subr.bf16.mxu0 %v4917_v57  ;;  %v4935_v57 = vpack.c.bf16 %v2305_v42, %v2299_v21  ;;  %v2359_v42 = vld [vmem:[%s6374_s8 + $0x5a0] sm:$0xff] }
 0x1b9   : > { %4484 = vmatpush1.bf16.msra.mxu1 %v4483_v26  ;;  %v7024_v30 = vpop.f32.mrb[2].mxu0  ;;  %v1120_v26 = vld [vmem:[%s6366_s28 + $0x1798] sm:$0xff] }
 0x1ba   : > { %4486 = vmatprep.subr.bf16.mxu1 %v4485_v32  ;;  %v7028_v51 = vpop.f32.mrb[3].mxu0  ;;  %v4937_v32 = vpack.c.bf16 %v2318_v25, %v2312_v24  ;;  %v4505_v34 = vpack.c.bf16 %v1128_v28, %v1120_v26  ;;  %v419_v24 = vld [vmem:[%s6366_s28 + $0x1b0] sm:$0xff]  ;;  %v436_v26 = vld [vmem:[%s6366_s28 + $0x238] sm:$0xff] }
 0x1bb   : > { %4920 = vmatpush1.bf16.msra.mxu0 %v4919_v12  ;;  %v2330_v12 = vld [vmem:[%s6374_s8 + $0x4b8] sm:$0xff]  ;;  %v427_v25 = vld [vmem:[%s6366_s28 + $0x1f0] sm:$0xff]  ;;  %v444_v28 = vld [vmem:[%s6366_s28 + $0x278] sm:$0xff] }
 0x1bc   : > { %4922 = vmatprep.subr.bf16.mxu0 %v4921_v27  ;;  %v4939_v27 = vpack.c.bf16 %v2317_v33, %v2311_v17  ;;  %v4941_v43 = vpack.c.bf16 %v2330_v12, %v2324_v37  ;;  %v4715_v31 = vpack.c.bf16 %v427_v25, %v419_v24  ;;  %v435_v17 = vld [vmem:[%s6366_s28 + $0x230] sm:$0xff] }
 0x1bd   : > { %4488 = vmatpush1.bf16.msra.mxu1 %v4487_v40  ;;  %v372_v40 = vld [vmem:[%s6366_s28 + $0x38] sm:$0xff]  ;;  %v443_v33 = vld [vmem:[%s6366_s28 + $0x270] sm:$0xff] }
 0x1be   : > { %4490 = vmatprep.subr.bf16.mxu1 %v4489_v44  ;;  %v2323_v44 = vld [vmem:[%s6374_s8 + $0x480] sm:$0xff]  ;;  %v4701_v46 = vpack.c.bf16 %v380_v41, %v372_v40  ;;  %v4719_v12 = vpack.c.bf16 %v443_v33, %v435_v17  ;;  %v1133_v40 = vld [vmem:[%s6372_s24] sm:$0xff] }
 0x1bf   : > { %4924 = vmatpush1.bf16.msra.mxu0 %v4923_v52  ;;  %v396_v52 = vld [vmem:[%s6366_s28 + $0xf8] sm:$0xff] }
 0x1c0   : > { %4926 = vmatprep.subr.bf16.mxu0 %v4925_v55  ;;  %v4943_v55 = vpack.c.bf16 %v2329_v45, %v2323_v44  ;;  %v4705_v61 = vpack.c.bf16 %v396_v52, %v388_v50  ;;  %v468_v44 = vld [vmem:[%s6366_s28 + $0x338] sm:$0xff]  ;;  %v467_v52 = vld [vmem:[%s6366_s28 + $0x330] sm:$0xff] }
 0x1c1   : > { %4492 = vmatpush1.bf16.msra.mxu1 %v4491_v53  ;;  %v2336_v53 = vld [vmem:[%s6374_s8 + $0x4e8] sm:$0xff] }
 0x1c2   : > { %4494 = vmatprep.subr.bf16.mxu1 %v4493_v59  ;;  %v2335_v59 = vld [vmem:[%s6374_s8 + $0x4e0] sm:$0xff]  ;;  %v4945_v16 = vpack.c.bf16 %v2342_v54, %v2336_v53  ;;  %v476_v45 = vld [vmem:[%s6366_s28 + $0x378] sm:$0xff] }
 0x1c3   : > { %4928 = vmatpush1.bf16.msra.mxu0 %v4927_v0  ;;  %v2354_v0 = vld [vmem:[%s6374_s8 + $0x578] sm:$0xff]  ;;  %v4725_v50 = vpack.c.bf16 %v476_v45, %v468_v44  ;;  %v475_v53 = vld [vmem:[%s6366_s28 + $0x370] sm:$0xff] }
 0x1c4   : > { %4930 = vmatprep.subr.bf16.mxu0 %v4929_v3  ;;  %v4947_v3 = vpack.c.bf16 %v2341_v60, %v2335_v59  ;;  %v2378_v44 = vld [vmem:[%s6374_s8 + $0x638] sm:$0xff] }
 0x1c5   : > { %4496 = vmatpush1.bf16.msra.mxu1 %v4495_v1  ;;  %v404_v1 = vld [vmem:[%s6366_s28 + $0x138] sm:$0xff] }
 0x1c6   : > { %4498 = vmatprep.subr.bf16.mxu1 %v4497_v6  ;;  %v4949_v6 = vpack.c.bf16 %v2354_v0, %v2348_v63  ;;  %v4709_v9 = vpack.c.bf16 %v412_v2, %v404_v1  ;;  %v483_v63 = vld [vmem:[%s6366_s28 + $0x3b0] sm:$0xff] }
 0x1c7   : > { %4932 = vmatpush1.bf16.msra.mxu0 %v4931_v14  ;;  %v420_v14 = vld [vmem:[%s6366_s28 + $0x1b8] sm:$0xff]  ;;  %v491_v0 = vld [vmem:[%s6366_s28 + $0x3f0] sm:$0xff] }
 0x1c8   : > { %4934 = vmatprep.subr.bf16.mxu0 %v4933_v19  ;;  %v4711_v19 = vpack.c.bf16 %v411_v10, %v403_v5 }
 0x1c9   : > { %4500 = vmatpush1.bf16.msra.mxu1 %v4499_v15  ;;  %v428_v15 = vld [vmem:[%s6366_s28 + $0x1f8] sm:$0xff] }
 0x1ca   : > { %4502 = vmatprep.subr.bf16.mxu1 %v4501_v22  ;;  %v2365_v22 = vld [vmem:[%s6374_s8 + $0x5d0] sm:$0xff]  ;;  %v4713_v23 = vpack.c.bf16 %v428_v15, %v420_v14  ;;  %v516_v15 = vld [vmem:[%s6366_s28 + $0x4b8] sm:$0xff] }
 0x1cb   : > { %4936 = vmatpush1.bf16.msra.mxu0 %v4935_v57 }
 0x1cc   : > { %4938 = vmatprep.subr.bf16.mxu0 %v4937_v32  ;;  %v4717_v32 = vpack.c.bf16 %v444_v28, %v436_v26  ;;  %v539_v26 = vld [vmem:[%s6366_s28 + $0x570] sm:$0xff]  ;;  %v548_v28 = vld [vmem:[%s6366_s28 + $0x5b8] sm:$0xff] }
 0x1cd   : > { %4504 = vmatpush1.bf16.msra.mxu1 %v4503_v29  ;;  %v4955_v29 = vpack.c.bf16 %v2365_v22, %v2359_v42  ;;  %v515_v42 = vld [vmem:[%s6366_s28 + $0x4b0] sm:$0xff] }
 0x1ce   : > { %4506 = vmatprep.subr.bf16.mxu1 %v4505_v34  ;;  %v452_v34 = vld [vmem:[%s6366_s28 + $0x2b8] sm:$0xff]  ;;  %v523_v22 = vld [vmem:[%s6366_s28 + $0x4f0] sm:$0xff] }
 0x1cf   : > { %4940 = vmatpush1.bf16.msra.mxu0 %v4939_v27  ;;  %v4721_v27 = vpack.c.bf16 %v460_v36, %v452_v34  ;;  %v4739_v24 = vpack.c.bf16 %v523_v22, %v515_v42  ;;  %v547_v34 = vld [vmem:[%s6366_s28 + $0x5b0] sm:$0xff]  ;;  %v2372_v36 = vld [vmem:[%s6374_s8 + $0x608] sm:$0xff] }
 0x1d0   : > { %4942 = vmatprep.subr.bf16.mxu0 %v4941_v43  ;;  %v459_v43 = vld [vmem:[%s6366_s28 + $0x2f0] sm:$0xff] }
 0x1d1   : > { %4508 = vmatpush1.bf16.msra.mxu1 %v4507_v13  ;;  %v451_v13 = vld [vmem:[%s6366_s28 + $0x2b0] sm:$0xff] }
 0x1d2   : > { %4702 = vmatprep.subr.bf16.mxu1 %v4701_v46  ;;  %v4723_v49 = vpack.c.bf16 %v459_v43, %v451_v13  ;;  %v555_v13 = vld [vmem:[%s6366_s28 + $0x5f0] sm:$0xff]  ;;  %v564_v43 = vld [vmem:[%s6366_s28 + $0x638] sm:$0xff] }
 0x1d3   : > { %4944 = vmatpush1.bf16.msra.mxu0 %v4943_v55  ;;  %v484_v55 = vld [vmem:[%s6366_s28 + $0x3b8] sm:$0xff] }
 0x1d4   : > { %1625 = vmatmul.mubr.f32.vlgmr.msra.gmra.mrb[4].mxu1 %v6965_v38  ;;  %4946 = vmatprep.subr.bf16.mxu0 %v4945_v16  ;;  %v2366_v38 = vld [vmem:[%s6374_s8 + $0x5d8] sm:$0xff] }
 0x1d5   : > { %4704 = vmatpush1.bf16.msra.mxu1 %v4703_v56  ;;  %1630 = vmatprep.mubr.f32.mxu1 %v6968_v20  ;;  %v1135_v20 = vlaneseq  ;;  %v4953_v21 = vpack.c.bf16 %v2366_v38, %v2360_v11  ;;  %v492_v56 = vld [vmem:[%s6366_s28 + $0x3f8] sm:$0xff]  ;;  %v499_v11 = vld [vmem:[%s6366_s28 + $0x430] sm:$0xff] }
 0x1d6   : > { %4706 = vmatprep.subr.bf16.mxu1 %v4705_v61  ;;  %v4727_v61 = vpack.c.bf16 %v475_v53, %v467_v52  ;;  %v4729_v16 = vpack.c.bf16 %v492_v56, %v484_v55  ;;  %v507_v38 = vld [vmem:[%s6366_s28 + $0x470] sm:$0xff] }
 0x1d7   : > { %4948 = vmatpush1.bf16.msra.mxu0 %v4947_v3  ;;  %v7095_v57 = vshrl.u32 %v1135_v20, 7  ;;  %v500_v3 = vld [vmem:[%s6366_s28 + $0x438] sm:$0xff] }
 0x1d8   : > { %1631 = vmatmul.mubr.f32.gmra.mrb[6].mxu1 %v6979_v48  ;;  %4950 = vmatprep.subr.bf16.mxu0 %v4949_v6  ;;  %v5882_v48 = vld [vmem:[#allocation2 + $0x8] sm:$0xff]  ;;  %v524_v20 = vld [vmem:[%s6366_s28 + $0x4f8] sm:$0xff] }
 0x1d9   : > { %4708 = vmatpush1.bf16.msra.mxu1 %v4707_v4  ;;  %1932 = vmatprep.mubr.f32.mxu1 %v5882_v48  ;;  %v1137_v37 = vsub.s32 0, %v7095_v57  ;;  %v1141_v41 = vsub.s32 1, %v7095_v57  ;;  %v508_v4 = vld [vmem:[%s6366_s28 + $0x478] sm:$0xff]  ;;  %v531_v48 = vld [vmem:[%s6366_s28 + $0x530] sm:$0xff] }
 0x1da   : > { %4710 = vmatprep.subr.bf16.mxu1 %v4709_v9  ;;  %v4743_v33 = vpack.c.bf16 %v539_v26, %v531_v48  ;;  %v612_v48 = vld [vmem:[%s6366_s28 + $0x7b8] sm:$0xff]  ;;  %v2414_v26 = vld [vmem:[%s6374_s8 + $0x758] sm:$0xff] }
 0x1db   : > { %4952 = vmatpush1.bf16.msra.mxu0 %v4951_v18  ;;  %v1138_v46 = vrot.slane %v1133_v40, %v1137_v37  ;;  %v1142_v47 = vrot.slane %v1133_v40, %v1141_v41 }
 0x1dc   : > { %4954 = vmatprep.subr.bf16.mxu0 %v4953_v21  ;;  %v4737_v21 = vpack.c.bf16 %v524_v20, %v516_v15  ;;  %v596_v15 = vld [vmem:[%s6366_s28 + $0x738] sm:$0xff]  ;;  %v2402_v20 = vld [vmem:[%s6374_s8 + $0x6f8] sm:$0xff] }
 0x1dd   : > { %4712 = vmatpush1.bf16.msra.mxu1 %v4711_v19 }
 0x1de   : > { %4714 = vmatprep.subr.bf16.mxu1 %v4713_v23  ;;  %v532_v23 = vld [vmem:[%s6366_s28 + $0x538] sm:$0xff] }
 0x1df   : > { %4956 = vmatpush1.bf16.msra.mxu0 %v4955_v29  ;;  %v556_v29 = vld [vmem:[%s6366_s28 + $0x5f8] sm:$0xff] }
 0x1e1   : > { %4716 = vmatpush1.bf16.msra.mxu1 %v4715_v31 }
 0x1e2   : > { %4718 = vmatprep.subr.bf16.mxu1 %v4717_v32 }
 0x1e5   : > { %4720 = vmatpush1.bf16.msra.mxu1 %v4719_v12 }
 0x1e6   : > { %4722 = vmatprep.subr.bf16.mxu1 %v4721_v27  ;;  %v4745_v27 = vpack.c.bf16 %v556_v29, %v548_v28  ;;  %v620_v28 = vld [vmem:[%s6366_s28 + $0x7f8] sm:$0xff] }
 0x1e7   : > { %v1318_v54 = vpop.f32.mrb[0].mxu1 }
 0x1e8   : > { %v5661_v58 = vadd.f32 %v1318_v54, %v1138_v46  ;;  %v1320_v59 = vpop.f32.mrb[1].mxu1 }
 0x1e9   : > { %v5663_v60 = vadd.f32 %v1320_v59, %v1142_v47  ;;  %4724 = vmatpush1.bf16.msra.mxu1 %v4723_v49  ;;  %v2371_v49 = vld [vmem:[%s6374_s8 + $0x600] sm:$0xff]  ;;  %v4747_v59 = vpack.c.bf16 %v555_v13, %v547_v34  ;;  %v2426_v13 = vld [vmem:[%s6374_s8 + $0x7b8] sm:$0xff] }
 0x1ea   : > { %v5662_v62 = vadd.f32 %v5661_v58, %v7012_v35  ;;  %4726 = vmatprep.subr.bf16.mxu1 %v4725_v50  ;;  %v4731_v35 = vpack.c.bf16 %v491_v0, %v483_v63  ;;  %v2377_v50 = vld [vmem:[%s6374_s8 + $0x630] sm:$0xff]  ;;  %v571_v0 = vld [vmem:[%s6366_s28 + $0x670] sm:$0xff] }
 0x1eb   : > { %v5664_v1 = vadd.f32 %v5663_v60, %v7016_v39  ;;  %v1324_v2 = vpop.f32.mrb[2].mxu1  ;;  %v4733_v39 = vpack.c.bf16 %v508_v4, %v500_v3  ;;  %v4959_v54 = vpack.c.bf16 %v2377_v50, %v2371_v49  ;;  %v563_v60 = vld [vmem:[%s6366_s28 + $0x630] sm:$0xff]  ;;  %v588_v4 = vld [vmem:[%s6366_s28 + $0x6f8] sm:$0xff] }
 0x1ec   : > { %v2115_v5 = vmul.f32 0.70710677, %v5662_v62  ;;  %v5665_v6 = vadd.f32 %v1324_v2, %v1138_v46  ;;  %v1326_v7 = vpop.f32.mrb[3].mxu1  ;;  %v2099_v45 = vmul.f32 0.5, %v5662_v62  ;;  %v572_v46 = vld [vmem:[%s6366_s28 + $0x678] sm:$0xff]  ;;  %v2390_v2 = vld [vmem:[%s6374_s8 + $0x698] sm:$0xff] }
 0x1ed   : > { %v2116_v8 = vmul.f32 0.70710677, %v5664_v1  ;;  %v5667_v9 = vadd.f32 %v1326_v7, %v1142_v47  ;;  %4728 = vmatpush1.bf16.msra.mxu1 %v4727_v61  ;;  %v2100_v12 = vmul.f32 0.5, %v5664_v1  ;;  %v4957_v47 = vpack.c.bf16 %v2378_v44, %v2372_v36  ;;  %v2384_v61 = vld [vmem:[%s6374_s8 + $0x668] sm:$0xff]  ;;  %v2389_v7 = vld [vmem:[%s6374_s8 + $0x690] sm:$0xff]  ;;  %v611_v34 = vld [vmem:[%s6366_s28 + $0x7b0] sm:$0xff] }
 0x1ee   : > { %5839 = verf.f32 %v2115_v5  ;;  %v7123_v10 = vadd.f32 %v5665_v6, %v7024_v30  ;;  %4730 = vmatprep.subr.bf16.mxu1 %v4729_v16  ;;  %v4735_v30 = vpack.c.bf16 %v507_v38, %v499_v11  ;;  %v4749_v63 = vpack.c.bf16 %v572_v46, %v564_v43  ;;  %v580_v1 = vld [vmem:[%s6366_s28 + $0x6b8] sm:$0xff]  ;;  %v2383_v6 = vld [vmem:[%s6374_s8 + $0x660] sm:$0xff]  ;;  %v2425_v46 = vld [vmem:[%s6374_s8 + $0x7b0] sm:$0xff] }
 0x1ef   : > { %5841 = verf.f32 %v2116_v8  ;;  %v5668_v14 = vadd.f32 %v5667_v9, %v7028_v51  ;;  %v540_v51 = vld [vmem:[%s6366_s28 + $0x578] sm:$0xff]  ;;  %4958 = vmatprep.subr.bf16.mxu0 %v4957_v47  ;;  %v4961_v5 = vpack.c.bf16 %v2390_v2, %v2384_v61  ;;  %v4963_v9 = vpack.c.bf16 %v2389_v7, %v2383_v6  ;;  %v627_v50 = vld [vmem:[%s6366_s28 + $0x830] sm:$0xff] }
 0x1f0   : > { %v2123_v18 = vmul.f32 0.70710677, %v7123_v10  ;;  %v4741_v25 = vpack.c.bf16 %v540_v51, %v532_v23  ;;  %v2107_v3 = vmul.f32 0.5, %v7123_v10  ;;  %v4751_v10 = vpack.c.bf16 %v571_v0, %v563_v60  ;;  %v2396_v11 = vld [vmem:[%s6374_s8 + $0x6c8] sm:$0xff]  ;;  %v595_v23 = vld [vmem:[%s6366_s28 + $0x730] sm:$0xff] }
 0x1f1   : > { %v2124_v19 = vmul.f32 0.70710677, %v5668_v14  ;;  %4732 = vmatpush1.bf16.msra.mxu1 %v4731_v35  ;;  %v2108_v62 = vmul.f32 0.5, %v5668_v14  ;;  %v4753_v38 = vpack.c.bf16 %v588_v4, %v580_v1  ;;  %v587_v14 = vld [vmem:[%s6366_s28 + $0x6f0] sm:$0xff]  ;;  %v2408_v51 = vld [vmem:[%s6374_s8 + $0x728] sm:$0xff] }
 0x1f2   : > { %5843 = verf.f32 %v2123_v18  ;;  %4734 = vmatprep.subr.bf16.mxu1 %v4733_v39  ;;  %v579_v39 = vld [vmem:[%s6366_s28 + $0x6b0] sm:$0xff]  ;;  %v604_v18 = vld [vmem:[%s6366_s28 + $0x778] sm:$0xff]  ;;  %v4969_v29 = vpack.c.bf16 %v2414_v26, %v2408_v51 }
 0x1f3   : > { %5845 = verf.f32 %v2124_v19  ;;  %v4965_v19 = vpack.c.bf16 %v2402_v20, %v2396_v11  ;;  %v4755_v22 = vpack.c.bf16 %v587_v14, %v579_v39  ;;  %v2420_v36 = vld [vmem:[%s6374_s8 + $0x788] sm:$0xff]  ;;  %v643_v1 = vld [vmem:[%s6366_s28 + $0x8b0] sm:$0xff]  ;;  %v5883_v11 = vld [vmem:[#allocation2] sm:$0xff] }
 0x1f4   : > { %v636_v43 = vld [vmem:[%s6366_s28 + $0x878] sm:$0xff]  ;;  %v4973_v44 = vpack.c.bf16 %v2426_v13, %v2420_v36  ;;  %v2443_v7 = vld [vmem:[%s6374_s8 + $0x840] sm:$0xff] }
 0x1f5   : > { %4736 = vmatpush1.bf16.msra.mxu1 %v4735_v30  ;;  %v2395_v30 = vld [vmem:[%s6374_s8 + $0x6c0] sm:$0xff]  ;;  %v652_v60 = vld [vmem:[%s6366_s28 + $0x8f8] sm:$0xff] }
 0x1f6   : > { %4738 = vmatprep.subr.bf16.mxu1 %v4737_v21  ;;  %v2401_v21 = vld [vmem:[%s6374_s8 + $0x6f0] sm:$0xff]  ;;  %v2444_v2 = vld [vmem:[%s6374_s8 + $0x848] sm:$0xff]  ;;  %v2467_v36 = vld [vmem:[%s6374_s8 + $0x900] sm:$0xff] }
 0x1f7   : > { %v4967_v42 = vpack.c.bf16 %v2401_v21, %v2395_v30  ;;  %v668_v39 = vld [vmem:[%s6366_s28 + $0x978] sm:$0xff]  ;;  %v667_v21 = vld [vmem:[%s6366_s28 + $0x970] sm:$0xff] }
 0x1f8   : > { %v5840_v31 = vpop.eup %5839  ;;  %v5884_v20 = vld [vmem:[#allocation2 + $0x38] sm:$0xff] }
 0x1f9   : > { %v5842_v32 = vpop.eup %5841  ;;  %v2147_v17 = vadd.f32 1.0, %v5840_v31  ;;  %4740 = vmatpush1.bf16.msra.mxu1 %v4739_v24  ;;  %v4757_v24 = vpack.c.bf16 %v604_v18, %v596_v15  ;;  %v2407_v31 = vld [vmem:[%s6374_s8 + $0x720] sm:$0xff]  ;;  %v2456_v18 = vld [vmem:[%s6374_s8 + $0x8a8] sm:$0xff] }
 0x1fa   : > { %v2148_v40 = vadd.f32 1.0, %v5842_v32  ;;  %4742 = vmatprep.subr.bf16.mxu1 %v4741_v25  ;;  %v603_v25 = vld [vmem:[%s6366_s28 + $0x770] sm:$0xff]  ;;  %v2413_v32 = vld [vmem:[%s6374_s8 + $0x750] sm:$0xff]  ;;  %v676_v51 = vld [vmem:[%s6366_s28 + $0x9b8] sm:$0xff] }
 0x1fb   : > { %v7149_v56 = vmul.f32 %v2147_v17, %v2099_v45  ;;  %v4971_v17 = vpack.c.bf16 %v2413_v32, %v2407_v31  ;;  %v2419_v45 = vld [vmem:[%s6374_s8 + $0x780] sm:$0xff]  ;;  %v2468_v31 = vld [vmem:[%s6374_s8 + $0x908] sm:$0xff]  ;;  %v2474_v32 = vld [vmem:[%s6374_s8 + $0x938] sm:$0xff] }
 0x1fc   : > { %v5844_v52 = vpop.eup %5843  ;;  %v7147_v53 = vmul.f32 %v2148_v40, %v2100_v12  ;;  %v4761_v12 = vpack.c.bf16 %v620_v28, %v612_v48  ;;  %v619_v40 = vld [vmem:[%s6366_s28 + $0x7f0] sm:$0xff]  ;;  %v4975_v47 = vpack.c.bf16 %v2425_v46, %v2419_v45  ;;  %v2480_v45 = vld [vmem:[%s6374_s8 + $0x968] sm:$0xff]  ;;  %v2486_v46 = vld [vmem:[%s6374_s8 + $0x998] sm:$0xff] }
 0x1fd   : > { %v5846_v55 = vpop.eup %5845  ;;  %v2155_v58 = vadd.f32 1.0, %v5844_v52  ;;  %4744 = vmatpush1.bf16.msra.mxu1 %v4743_v33  ;;  %v4759_v33 = vpack.c.bf16 %v603_v25, %v595_v23  ;;  %v4763_v49 = vpack.c.bf16 %v619_v40, %v611_v34  ;;  %v2432_v52 = vld [vmem:[%s6374_s8 + $0x7e8] sm:$0xff]  ;;  %v659_v15 = vld [vmem:[%s6366_s28 + $0x930] sm:$0xff]  ;;  %v2461_v23 = vld [vmem:[%s6374_s8 + $0x8d0] sm:$0xff]  ;;  %v4989_v34 = vpack.c.bf16 %v2474_v32, %v2468_v31 }
 0x1fe   : > { %v2156_v16 = vadd.f32 1.0, %v5846_v55  ;;  %3011 = vmatprep.mubr.f32.mxu0 %v7147_v53  ;;  %4746 = vmatprep.subr.bf16.mxu1 %v4745_v27  ;;  %v628_v27 = vld [vmem:[%s6366_s28 + $0x838] sm:$0xff]  ;;  %v635_v55 = vld [vmem:[%s6366_s28 + $0x870] sm:$0xff]  ;;  %v4775_v26 = vpack.c.bf16 %v667_v21, %v659_v15 }
 0x1ff   : > { %3012 = vmatmul.mubr.f32.vlgmr.msra.gmra.mrb[8].mxu0 %v7149_v56  ;;  %v7164_v35 = vmul.f32 %v2155_v58, %v2107_v3  ;;  %v644_v58 = vld [vmem:[%s6366_s28 + $0x8b8] sm:$0xff]  ;;  %v4767_v0 = vpack.c.bf16 %v635_v55, %v627_v50  ;;  %v2450_v3 = vld [vmem:[%s6374_s8 + $0x878] sm:$0xff]  ;;  %v5885_v25 = vld [vmem:[#allocation2 + $0x30] sm:$0xff]  ;;  %v4993_v50 = vpack.c.bf16 %v2486_v46, %v2480_v45 }
 0x200   : > { %v7162_v8 = vmul.f32 %v2156_v16, %v2108_v62  ;;  %4960 = vmatpush1.bf16.msra.mxu0 %v4959_v54  ;;  %v4765_v54 = vpack.c.bf16 %v636_v43, %v628_v27  ;;  %v2431_v62 = vld [vmem:[%s6374_s8 + $0x7e0] sm:$0xff]  ;;  %v2437_v16 = vld [vmem:[%s6374_s8 + $0x810] sm:$0xff]  ;;  %v4769_v4 = vpack.c.bf16 %v652_v60, %v644_v58  ;;  %v4981_v6 = vpack.c.bf16 %v2450_v3, %v2444_v2  ;;  %v692_v40 = vld [vmem:[%s6366_s28 + $0xa38] sm:$0xff] }
 0x201   : > { %4748 = vmatpush1.bf16.msra.mxu1 %v4747_v59  ;;  %4962 = vmatprep.subr.bf16.mxu0 %v4961_v5  ;;  %v2438_v59 = vld [vmem:[%s6374_s8 + $0x818] sm:$0xff]  ;;  %v651_v5 = vld [vmem:[%s6366_s28 + $0x8f0] sm:$0xff]  ;;  %v700_v27 = vld [vmem:[%s6366_s28 + $0xa78] sm:$0xff] }
 0x202   : > { %3017 = vmatprep.mubr.f32.mxu0 %v7162_v8  ;;  %4750 = vmatprep.subr.bf16.mxu1 %v4749_v63  ;;  %v4977_v61 = vpack.c.bf16 %v2438_v59, %v2432_v52  ;;  %v4979_v63 = vpack.c.bf16 %v2437_v16, %v2431_v62  ;;  %v4771_v14 = vpack.c.bf16 %v651_v5, %v643_v1  ;;  %v675_v28 = vld [vmem:[%s6366_s28 + $0x9b0] sm:$0xff]  ;;  %v708_v55 = vld [vmem:[%s6366_s28 + $0xab8] sm:$0xff]  ;;  %v2498_v16 = vld [vmem:[%s6374_s8 + $0x9f8] sm:$0xff] }
 0x203   : > { %3018 = vmatmul.mubr.f32.gmra.mrb[10].mxu0 %v7164_v35  ;;  %v2479_v52 = vld [vmem:[%s6374_s8 + $0x960] sm:$0xff]  ;;  %v716_v58 = vld [vmem:[%s6366_s28 + $0xaf8] sm:$0xff]  ;;  %v2497_v3 = vld [vmem:[%s6374_s8 + $0x9f0] sm:$0xff] }
 0x204   : > { %4964 = vmatpush1.bf16.msra.mxu0 %v4963_v9  ;;  %v2449_v9 = vld [vmem:[%s6374_s8 + $0x870] sm:$0xff]  ;;  %v2492_v62 = vld [vmem:[%s6374_s8 + $0x9c8] sm:$0xff]  ;;  %v2491_v2 = vld [vmem:[%s6374_s8 + $0x9c0] sm:$0xff] }
 0x205   : > { %4752 = vmatpush1.bf16.msra.mxu1 %v4751_v10  ;;  %4966 = vmatprep.subr.bf16.mxu0 %v4965_v19  ;;  %v660_v10 = vld [vmem:[%s6366_s28 + $0x938] sm:$0xff]  ;;  %v2462_v19 = vld [vmem:[%s6374_s8 + $0x8d8] sm:$0xff]  ;;  %v4997_v1 = vpack.c.bf16 %v2498_v16, %v2492_v62  ;;  %v2503_v15 = vld [vmem:[%s6374_s8 + $0xa20] sm:$0xff] }
 0x206   : > { %4754 = vmatprep.subr.bf16.mxu1 %v4753_v38  ;;  %v4983_v38 = vpack.c.bf16 %v2449_v9, %v2443_v7  ;;  %v4773_v30 = vpack.c.bf16 %v668_v39, %v660_v10  ;;  %v732_v5 = vld [vmem:[%s6366_s28 + $0xb78] sm:$0xff]  ;;  %v723_v9 = vld [vmem:[%s6366_s28 + $0xb30] sm:$0xff]  ;;  %v2510_v39 = vld [vmem:[%s6374_s8 + $0xa58] sm:$0xff] }
 0x207   : > { %v2504_v10 = vld [vmem:[%s6374_s8 + $0xa28] sm:$0xff] }
 0x208   : > { %4968 = vmatpush1.bf16.msra.mxu0 %v4967_v42  ;;  %v4985_v42 = vpack.c.bf16 %v2462_v19, %v2456_v18  ;;  %v740_v18 = vld [vmem:[%s6366_s28 + $0xbb8] sm:$0xff] }
 0x209   : > { %4756 = vmatpush1.bf16.msra.mxu1 %v4755_v22  ;;  %4970 = vmatprep.subr.bf16.mxu0 %v4969_v29  ;;  %v2455_v22 = vld [vmem:[%s6374_s8 + $0x8a0] sm:$0xff]  ;;  %v5886_v29 = vld [vmem:[#allocation2 + $0x18] sm:$0xff] }
 0x20a   : > { %4758 = vmatprep.subr.bf16.mxu1 %v4757_v24  ;;  %v684_v24 = vld [vmem:[%s6366_s28 + $0x9f8] sm:$0xff]  ;;  %v4987_v48 = vpack.c.bf16 %v2461_v23, %v2455_v22  ;;  %v2522_v23 = vld [vmem:[%s6374_s8 + $0xab8] sm:$0xff] }
 0x20b   : > { %v748_v19 = vld [vmem:[%s6366_s28 + $0xbf8] sm:$0xff] }
 0x20c   : > { %4972 = vmatpush1.bf16.msra.mxu0 %v4971_v17  ;;  %v4777_v17 = vpack.c.bf16 %v684_v24, %v676_v51  ;;  %v2516_v22 = vld [vmem:[%s6374_s8 + $0xa88] sm:$0xff]  ;;  %v4793_v51 = vpack.c.bf16 %v748_v19, %v740_v18  ;;  %v747_v24 = vld [vmem:[%s6366_s28 + $0xbf0] sm:$0xff] }
 0x20d   : > { %4760 = vmatpush1.bf16.msra.mxu1 %v4759_v33  ;;  %4974 = vmatprep.subr.bf16.mxu0 %v4973_v44  ;;  %v683_v33 = vld [vmem:[%s6366_s28 + $0x9f0] sm:$0xff]  ;;  %v820_v19 = vld [vmem:[%s6366_s28 + $0xe38] sm:$0xff] }
 0x20e   : > { %4762 = vmatprep.subr.bf16.mxu1 %v4761_v12  ;;  %v2473_v12 = vld [vmem:[%s6374_s8 + $0x930] sm:$0xff]  ;;  %v4779_v43 = vpack.c.bf16 %v683_v33, %v675_v28  ;;  %v691_v44 = vld [vmem:[%s6366_s28 + $0xa30] sm:$0xff]  ;;  %v756_v28 = vld [vmem:[%s6366_s28 + $0xc38] sm:$0xff] }
 0x20f   : > { %v4991_v13 = vpack.c.bf16 %v2473_v12, %v2467_v36  ;;  %v2528_v33 = vld [vmem:[%s6374_s8 + $0xae8] sm:$0xff]  ;;  %v763_v12 = vld [vmem:[%s6366_s28 + $0xc70] sm:$0xff] }
 0x210   : > { %4976 = vmatpush1.bf16.msra.mxu0 %v4975_v47  ;;  %v4781_v47 = vpack.c.bf16 %v700_v27, %v692_v40  ;;  %v2527_v27 = vld [vmem:[%s6374_s8 + $0xae0] sm:$0xff] }
 0x211   : > { %4764 = vmatpush1.bf16.msra.mxu1 %v4763_v49  ;;  %4978 = vmatprep.subr.bf16.mxu0 %v4977_v61  ;;  %v699_v49 = vld [vmem:[%s6366_s28 + $0xa70] sm:$0xff] }
 0x212   : > { %4766 = vmatprep.subr.bf16.mxu1 %v4765_v54  ;;  %v2485_v54 = vld [vmem:[%s6374_s8 + $0x990] sm:$0xff]  ;;  %v4783_v60 = vpack.c.bf16 %v699_v49, %v691_v44  ;;  %v707_v61 = vld [vmem:[%s6366_s28 + $0xab0] sm:$0xff]  ;;  %v780_v44 = vld [vmem:[%s6366_s28 + $0xcf8] sm:$0xff] }
 0x213   : > { %v4995_v59 = vpack.c.bf16 %v2485_v54, %v2479_v52  ;;  %v2540_v49 = vld [vmem:[%s6374_s8 + $0xb48] sm:$0xff]  ;;  %v779_v54 = vld [vmem:[%s6366_s28 + $0xcf0] sm:$0xff] }
 0x214   : > { %1933 = vmatmul.mubr.f32.vlgmr.msra.gmra.mrb[8].mxu1 %v5883_v11  ;;  %4980 = vmatpush1.bf16.msra.mxu0 %v4979_v63  ;;  %v4785_v63 = vpack.c.bf16 %v716_v58, %v708_v55  ;;  %v2539_v58 = vld [vmem:[%s6374_s8 + $0xb40] sm:$0xff] }
 0x215   : > { %4768 = vmatpush1.bf16.msra.mxu1 %v4767_v0  ;;  %1938 = vmatprep.mubr.f32.mxu1 %v5884_v20  ;;  %v715_v0 = vld [vmem:[%s6366_s28 + $0xaf0] sm:$0xff]  ;;  %v2509_v20 = vld [vmem:[%s6374_s8 + $0xa50] sm:$0xff] }
 0x216   : > { %4770 = vmatprep.subr.bf16.mxu1 %v4769_v4  ;;  %4982 = vmatprep.subr.bf16.mxu0 %v4981_v6  ;;  %v724_v4 = vld [vmem:[%s6366_s28 + $0xb38] sm:$0xff]  ;;  %v4999_v6 = vpack.c.bf16 %v2497_v3, %v2491_v2  ;;  %v4787_v7 = vpack.c.bf16 %v715_v0, %v707_v61  ;;  %v795_v3 = vld [vmem:[%s6366_s28 + $0xd70] sm:$0xff] }
 0x217   : > { %v4789_v11 = vpack.c.bf16 %v732_v5, %v724_v4  ;;  %v796_v61 = vld [vmem:[%s6366_s28 + $0xd78] sm:$0xff]  ;;  %v2551_v5 = vld [vmem:[%s6374_s8 + $0xba0] sm:$0xff] }
 0x218   : > { %1939 = vmatmul.mubr.f32.gmra.mrb[10].mxu1 %v5885_v25  ;;  %4984 = vmatpush1.bf16.msra.mxu0 %v4983_v38  ;;  %v731_v38 = vld [vmem:[%s6366_s28 + $0xb70] sm:$0xff]  ;;  %v5005_v25 = vpack.c.bf16 %v2522_v23, %v2516_v22  ;;  %v2552_v0 = vld [vmem:[%s6374_s8 + $0xba8] sm:$0xff] }
 0x219   : > { %4772 = vmatpush1.bf16.msra.mxu1 %v4771_v14  ;;  %2009 = vmatprep.mubr.f32.mxu1 %v5886_v29  ;;  %v5001_v14 = vpack.c.bf16 %v2510_v39, %v2504_v10  ;;  %v4791_v21 = vpack.c.bf16 %v731_v38, %v723_v9  ;;  %v764_v29 = vld [vmem:[%s6366_s28 + $0xc78] sm:$0xff]  ;;  %v2570_v38 = vld [vmem:[%s6374_s8 + $0xc38] sm:$0xff]  ;;  %v819_v22 = vld [vmem:[%s6366_s28 + $0xe30] sm:$0xff] }
 0x21a   : > { %4774 = vmatprep.subr.bf16.mxu1 %v4773_v30  ;;  %4986 = vmatprep.subr.bf16.mxu0 %v4985_v42  ;;  %v5003_v30 = vpack.c.bf16 %v2509_v20, %v2503_v15  ;;  %v739_v42 = vld [vmem:[%s6366_s28 + $0xbb0] sm:$0xff]  ;;  %v4797_v36 = vpack.c.bf16 %v764_v29, %v756_v28  ;;  %v812_v9 = vld [vmem:[%s6366_s28 + $0xdf8] sm:$0xff] }
 0x21b   : > { %v4795_v32 = vpack.c.bf16 %v747_v24, %v739_v42  ;;  %v803_v15 = vld [vmem:[%s6366_s28 + $0xdb0] sm:$0xff]  ;;  %v844_v24 = vld [vmem:[%s6366_s28 + $0xef8] sm:$0xff] }
 0x21c   : > { %4988 = vmatpush1.bf16.msra.mxu0 %v4987_v48  ;;  %v2515_v48 = vld [vmem:[%s6374_s8 + $0xa80] sm:$0xff]  ;;  %v852_v29 = vld [vmem:[%s6366_s28 + $0xf38] sm:$0xff] }
 0x21d   : > { %4776 = vmatpush1.bf16.msra.mxu1 %v4775_v26  ;;  %4990 = vmatprep.subr.bf16.mxu0 %v4989_v34  ;;  %v2521_v26 = vld [vmem:[%s6374_s8 + $0xab0] sm:$0xff]  ;;  %v2534_v34 = vld [vmem:[%s6374_s8 + $0xb18] sm:$0xff]  ;;  %v811_v20 = vld [vmem:[%s6366_s28 + $0xdf0] sm:$0xff] }
 0x21e   : > { %4778 = vmatprep.subr.bf16.mxu1 %v4777_v17  ;;  %v5007_v31 = vpack.c.bf16 %v2521_v26, %v2515_v48  ;;  %v755_v17 = vld [vmem:[%s6366_s28 + $0xc30] sm:$0xff]  ;;  %v5009_v40 = vpack.c.bf16 %v2534_v34, %v2528_v33 }
 0x21f   : > { %v4799_v46 = vpack.c.bf16 %v763_v12, %v755_v17  ;;  %v827_v23 = vld [vmem:[%s6366_s28 + $0xe70] sm:$0xff]  ;;  %v876_v12 = vld [vmem:[%s6366_s28 + $0xff8] sm:$0xff] }
 0x220   : > { %4992 = vmatpush1.bf16.msra.mxu0 %v4991_v13  ;;  %v2533_v13 = vld [vmem:[%s6374_s8 + $0xb10] sm:$0xff]  ;;  %v835_v26 = vld [vmem:[%s6366_s28 + $0xeb0] sm:$0xff] }
 0x221   : > { %4780 = vmatpush1.bf16.msra.mxu1 %v4779_v43  ;;  %4994 = vmatprep.subr.bf16.mxu0 %v4993_v50  ;;  %v772_v43 = vld [vmem:[%s6366_s28 + $0xcb8] sm:$0xff]  ;;  %v5011_v45 = vpack.c.bf16 %v2533_v13, %v2527_v27  ;;  %v2546_v50 = vld [vmem:[%s6374_s8 + $0xb78] sm:$0xff]  ;;  %v843_v28 = vld [vmem:[%s6366_s28 + $0xef0] sm:$0xff] }
 0x222   : > { %4782 = vmatprep.subr.bf16.mxu1 %v4781_v47  ;;  %v771_v47 = vld [vmem:[%s6366_s28 + $0xcb0] sm:$0xff]  ;;  %v4801_v52 = vpack.c.bf16 %v780_v44, %v772_v43  ;;  %v5013_v55 = vpack.c.bf16 %v2546_v50, %v2540_v49  ;;  %v884_v44 = vld [vmem:[%s6366_s28 + $0x1038] sm:$0xff] }
 0x223   : > { %v4803_v16 = vpack.c.bf16 %v779_v54, %v771_v47  ;;  %v851_v33 = vld [vmem:[%s6366_s28 + $0xf30] sm:$0xff]  ;;  %v908_v54 = vld [vmem:[%s6366_s28 + $0x10f8] sm:$0xff] }
 0x224   : > { %4996 = vmatpush1.bf16.msra.mxu0 %v4995_v59  ;;  %v2545_v59 = vld [vmem:[%s6374_s8 + $0xb70] sm:$0xff]  ;;  %v859_v34 = vld [vmem:[%s6366_s28 + $0xf70] sm:$0xff] }
 0x225   : > { %4784 = vmatpush1.bf16.msra.mxu1 %v4783_v60  ;;  %4998 = vmatprep.subr.bf16.mxu0 %v4997_v1  ;;  %v788_v60 = vld [vmem:[%s6366_s28 + $0xd38] sm:$0xff]  ;;  %v5015_v62 = vpack.c.bf16 %v2545_v59, %v2539_v58  ;;  %v2558_v1 = vld [vmem:[%s6374_s8 + $0xbd8] sm:$0xff]  ;;  %v867_v13 = vld [vmem:[%s6366_s28 + $0xfb0] sm:$0xff] }
 0x226   : > { %4786 = vmatprep.subr.bf16.mxu1 %v4785_v63  ;;  %v787_v63 = vld [vmem:[%s6366_s28 + $0xd30] sm:$0xff]  ;;  %v4805_v2 = vpack.c.bf16 %v796_v61, %v788_v60  ;;  %v5017_v4 = vpack.c.bf16 %v2558_v1, %v2552_v0  ;;  %v916_v61 = vld [vmem:[%s6366_s28 + $0x1138] sm:$0xff]  ;;  %v5888_v0 = vld [vmem:[#allocation2 + $0x48] sm:$0xff] }
 0x227   : > { %v4807_v39 = vpack.c.bf16 %v795_v3, %v787_v63  ;;  %v875_v43 = vld [vmem:[%s6366_s28 + $0xff0] sm:$0xff] }
 0x228   : > { %5000 = vmatpush1.bf16.msra.mxu0 %v4999_v6  ;;  %v2557_v6 = vld [vmem:[%s6374_s8 + $0xbd0] sm:$0xff]  ;;  %v883_v49 = vld [vmem:[%s6366_s28 + $0x1030] sm:$0xff] }
 0x229   : > { %4788 = vmatpush1.bf16.msra.mxu1 %v4787_v7  ;;  %5002 = vmatprep.subr.bf16.mxu0 %v5001_v14  ;;  %v804_v7 = vld [vmem:[%s6366_s28 + $0xdb8] sm:$0xff]  ;;  %v5019_v10 = vpack.c.bf16 %v2557_v6, %v2551_v5  ;;  %v891_v50 = vld [vmem:[%s6366_s28 + $0x1070] sm:$0xff]  ;;  %v5889_v6 = vld [vmem:[#allocation2 + $0x40] sm:$0xff] }
 0x22a   : > { %4790 = vmatprep.subr.bf16.mxu1 %v4789_v11  ;;  %v2564_v11 = vld [vmem:[%s6374_s8 + $0xc08] sm:$0xff]  ;;  %v4809_v14 = vpack.c.bf16 %v812_v9, %v804_v7  ;;  %v899_v59 = vld [vmem:[%s6366_s28 + $0x10b0] sm:$0xff]  ;;  %v5890_v9 = vld [vmem:[#allocation2 + $0x28] sm:$0xff] }
 0x22b   : > { %v5021_v18 = vpack.c.bf16 %v2570_v38, %v2564_v11  ;;  %v907_v60 = vld [vmem:[%s6366_s28 + $0x10f0] sm:$0xff]  ;;  %v940_v5 = vld [vmem:[%s6366_s28 + $0x11f8] sm:$0xff] }
 0x22c   : > { %5004 = vmatpush1.bf16.msra.mxu0 %v5003_v30  ;;  %v828_v30 = vld [vmem:[%s6366_s28 + $0xe78] sm:$0xff]  ;;  %v4835_v63 = vpack.c.bf16 %v907_v60, %v899_v59  ;;  %v923_v3 = vld [vmem:[%s6366_s28 + $0x1170] sm:$0xff] }
 0x22d   : > { %4792 = vmatpush1.bf16.msra.mxu1 %v4791_v21  ;;  %5006 = vmatprep.subr.bf16.mxu0 %v5005_v25  ;;  %v4811_v21 = vpack.c.bf16 %v811_v20, %v803_v15  ;;  %v4813_v42 = vpack.c.bf16 %v828_v30, %v820_v19  ;;  %v4815_v25 = vpack.c.bf16 %v827_v23, %v819_v22  ;;  %v939_v11 = vld [vmem:[%s6366_s28 + $0x11f0] sm:$0xff]  ;;  %v948_v38 = vld [vmem:[%s6366_s28 + $0x1238] sm:$0xff] }
 0x22e   : > { %4794 = vmatprep.subr.bf16.mxu1 %v4793_v51  ;;  %v836_v51 = vld [vmem:[%s6366_s28 + $0xeb8] sm:$0xff]  ;;  %v955_v19 = vld [vmem:[%s6366_s28 + $0x1270] sm:$0xff] }
 0x22f   : > { %v4817_v48 = vpack.c.bf16 %v844_v24, %v836_v51  ;;  %v964_v30 = vld [vmem:[%s6366_s28 + $0x12b8] sm:$0xff]  ;;  %v963_v23 = vld [vmem:[%s6366_s28 + $0x12b0] sm:$0xff] }
 0x230   : > { %5008 = vmatpush1.bf16.msra.mxu0 %v5007_v31  ;;  %v860_v31 = vld [vmem:[%s6366_s28 + $0xf78] sm:$0xff]  ;;  %v971_v51 = vld [vmem:[%s6366_s28 + $0x12f0] sm:$0xff] }
 0x231   : > { %4796 = vmatpush1.bf16.msra.mxu1 %v4795_v32  ;;  %5010 = vmatprep.subr.bf16.mxu0 %v5009_v40  ;;  %v4819_v32 = vpack.c.bf16 %v843_v28, %v835_v26  ;;  %v4821_v17 = vpack.c.bf16 %v860_v31, %v852_v29  ;;  %v4823_v40 = vpack.c.bf16 %v859_v34, %v851_v33  ;;  %v980_v24 = vld [vmem:[%s6366_s28 + $0x1338] sm:$0xff]  ;;  %v979_v28 = vld [vmem:[%s6366_s28 + $0x1330] sm:$0xff] }
 0x232   : > { %4798 = vmatprep.subr.bf16.mxu1 %v4797_v36  ;;  %v868_v36 = vld [vmem:[%s6366_s28 + $0xfb8] sm:$0xff]  ;;  %v987_v29 = vld [vmem:[%s6366_s28 + $0x1370] sm:$0xff] }
 0x233   : > { %v4825_v27 = vpack.c.bf16 %v876_v12, %v868_v36  ;;  %v996_v31 = vld [vmem:[%s6366_s28 + $0x13b8] sm:$0xff]  ;;  %v995_v34 = vld [vmem:[%s6366_s28 + $0x13b0] sm:$0xff] }
 0x234   : > { %5012 = vmatpush1.bf16.msra.mxu0 %v5011_v45  ;;  %v892_v45 = vld [vmem:[%s6366_s28 + $0x1078] sm:$0xff]  ;;  %v1003_v36 = vld [vmem:[%s6366_s28 + $0x13f0] sm:$0xff] }
 0x235   : > { %4800 = vmatpush1.bf16.msra.mxu1 %v4799_v46  ;;  %5014 = vmatprep.subr.bf16.mxu0 %v5013_v55  ;;  %v4827_v46 = vpack.c.bf16 %v875_v43, %v867_v13  ;;  %v4829_v47 = vpack.c.bf16 %v892_v45, %v884_v44  ;;  %v4831_v55 = vpack.c.bf16 %v891_v50, %v883_v49  ;;  %v1012_v12 = vld [vmem:[%s6366_s28 + $0x1438] sm:$0xff]  ;;  %v1011_v43 = vld [vmem:[%s6366_s28 + $0x1430] sm:$0xff] }
 0x236   : > { %4802 = vmatprep.subr.bf16.mxu1 %v4801_v52  ;;  %v900_v52 = vld [vmem:[%s6366_s28 + $0x10b8] sm:$0xff]  ;;  %v1019_v44 = vld [vmem:[%s6366_s28 + $0x1470] sm:$0xff] }
 0x237   : > { %v4833_v58 = vpack.c.bf16 %v908_v54, %v900_v52  ;;  %v1028_v45 = vld [vmem:[%s6366_s28 + $0x14b8] sm:$0xff]  ;;  %v1027_v50 = vld [vmem:[%s6366_s28 + $0x14b0] sm:$0xff] }
 0x238   : > { %5016 = vmatpush1.bf16.msra.mxu0 %v5015_v62  ;;  %v924_v62 = vld [vmem:[%s6366_s28 + $0x1178] sm:$0xff]  ;;  %v1035_v52 = vld [vmem:[%s6366_s28 + $0x14f0] sm:$0xff] }
 0x239   : > { %4804 = vmatpush1.bf16.msra.mxu1 %v4803_v16  ;;  %5018 = vmatprep.subr.bf16.mxu0 %v5017_v4  ;;  %v5887_v16 = vld [vmem:[#allocation2 + $0x10] sm:$0xff]  ;;  %v4837_v1 = vpack.c.bf16 %v924_v62, %v916_v61  ;;  %v932_v4 = vld [vmem:[%s6366_s28 + $0x11b8] sm:$0xff] }
 0x23a   : > { %4806 = vmatprep.subr.bf16.mxu1 %v4805_v2  ;;  %v915_v2 = vld [vmem:[%s6366_s28 + $0x1130] sm:$0xff]  ;;  %v1044_v54 = vld [vmem:[%s6366_s28 + $0x1538] sm:$0xff] }
 0x23b   : > { %v4839_v7 = vpack.c.bf16 %v923_v3, %v915_v2  ;;  %v1043_v60 = vld [vmem:[%s6366_s28 + $0x1530] sm:$0xff] }
 0x23c   : > { %5020 = vmatpush1.bf16.msra.mxu0 %v5019_v10  ;;  %v4841_v10 = vpack.c.bf16 %v940_v5, %v932_v4  ;;  %v1051_v61 = vld [vmem:[%s6366_s28 + $0x1570] sm:$0xff] }
 0x23d   : > { %4808 = vmatpush1.bf16.msra.mxu1 %v4807_v39  ;;  %5022 = vmatprep.subr.bf16.mxu0 %v5021_v18  ;;  %v931_v39 = vld [vmem:[%s6366_s28 + $0x11b0] sm:$0xff] }
 0x23e   : > { %4810 = vmatprep.subr.bf16.mxu1 %v4809_v14  ;;  %v956_v14 = vld [vmem:[%s6366_s28 + $0x1278] sm:$0xff]  ;;  %v4843_v15 = vpack.c.bf16 %v939_v11, %v931_v39  ;;  %v947_v18 = vld [vmem:[%s6366_s28 + $0x1230] sm:$0xff] }
 0x23f   : > { %v4845_v20 = vpack.c.bf16 %v956_v14, %v948_v38  ;;  %v1059_v3 = vld [vmem:[%s6366_s28 + $0x15b0] sm:$0xff]  ;;  %v1092_v14 = vld [vmem:[%s6366_s28 + $0x16b8] sm:$0xff] }
 0x240   : > { %v1067_v4 = vld [vmem:[%s6366_s28 + $0x15f0] sm:$0xff] }
 0x241   : > { %4812 = vmatpush1.bf16.msra.mxu1 %v4811_v21  ;;  %v972_v21 = vld [vmem:[%s6366_s28 + $0x12f8] sm:$0xff]  ;;  %v1075_v11 = vld [vmem:[%s6366_s28 + $0x1630] sm:$0xff] }
 0x242   : > { %4814 = vmatprep.subr.bf16.mxu1 %v4813_v42  ;;  %v4847_v42 = vpack.c.bf16 %v955_v19, %v947_v18  ;;  %v4849_v22 = vpack.c.bf16 %v972_v21, %v964_v30  ;;  %v1083_v38 = vld [vmem:[%s6366_s28 + $0x1670] sm:$0xff]  ;;  %v1108_v21 = vld [vmem:[%s6366_s28 + $0x1738] sm:$0xff] }
 0x243   : > { %v1091_v19 = vld [vmem:[%s6366_s28 + $0x16b0] sm:$0xff] }
 0x244   : > { %v1099_v30 = vld [vmem:[%s6366_s28 + $0x16f0] sm:$0xff] }
 0x245   : > { %4816 = vmatpush1.bf16.msra.mxu1 %v4815_v25  ;;  %v988_v25 = vld [vmem:[%s6366_s28 + $0x1378] sm:$0xff] }
 0x246   : > { %4818 = vmatprep.subr.bf16.mxu1 %v4817_v48  ;;  %v4851_v48 = vpack.c.bf16 %v971_v51, %v963_v23  ;;  %v4853_v26 = vpack.c.bf16 %v988_v25, %v980_v24  ;;  %v1107_v51 = vld [vmem:[%s6366_s28 + $0x1730] sm:$0xff]  ;;  %v1124_v25 = vld [vmem:[%s6366_s28 + $0x17b8] sm:$0xff] }
 0x247   : > { %v1115_v24 = vld [vmem:[%s6366_s28 + $0x1770] sm:$0xff] }
 0x249   : > { %4820 = vmatpush1.bf16.msra.mxu1 %v4819_v32  ;;  %v1004_v32 = vld [vmem:[%s6366_s28 + $0x13f8] sm:$0xff] }
 0x24a   : > { %4822 = vmatprep.subr.bf16.mxu1 %v4821_v17  ;;  %v4855_v17 = vpack.c.bf16 %v987_v29, %v979_v28  ;;  %v4857_v33 = vpack.c.bf16 %v1004_v32, %v996_v31  ;;  %v1123_v29 = vld [vmem:[%s6366_s28 + $0x17b0] sm:$0xff]  ;;  %v2182_v32 = vld [vmem:[%s6374_s8 + $0x18] sm:$0xff] }
 0x24b   : > { %v1131_v31 = vld [vmem:[%s6366_s28 + $0x17f0] sm:$0xff] }
 0x24d   : > { %4824 = vmatpush1.bf16.msra.mxu1 %v4823_v40  ;;  %v1020_v40 = vld [vmem:[%s6366_s28 + $0x1478] sm:$0xff] }
 0x24e   : > { %4826 = vmatprep.subr.bf16.mxu1 %v4825_v27  ;;  %v4859_v27 = vpack.c.bf16 %v1003_v36, %v995_v34  ;;  %v4861_v13 = vpack.c.bf16 %v1020_v40, %v1012_v12  ;;  %v2181_v36 = vld [vmem:[%s6374_s8 + $0x10] sm:$0xff]  ;;  %v2187_v12 = vld [vmem:[%s6374_s8 + $0x40] sm:$0xff]  ;;  %v2194_v40 = vld [vmem:[%s6374_s8 + $0x78] sm:$0xff] }
 0x251   : > { %4828 = vmatpush1.bf16.msra.mxu1 %v4827_v46  ;;  %v1036_v46 = vld [vmem:[%s6366_s28 + $0x14f8] sm:$0xff] }
 0x252   : > { %4830 = vmatprep.subr.bf16.mxu1 %v4829_v47  ;;  %v4863_v47 = vpack.c.bf16 %v1019_v44, %v1011_v43  ;;  %v4865_v49 = vpack.c.bf16 %v1036_v46, %v1028_v45  ;;  %v2193_v44 = vld [vmem:[%s6374_s8 + $0x70] sm:$0xff]  ;;  %v2199_v45 = vld [vmem:[%s6374_s8 + $0xa0] sm:$0xff]  ;;  %v2206_v46 = vld [vmem:[%s6374_s8 + $0xd8] sm:$0xff] }
 0x254   : > { %2010 = vmatmul.mubr.f32.vlgmr.msra.gmra.mrb[8].mxu1 %v5887_v16  ;;  %v1060_v16 = vld [vmem:[%s6366_s28 + $0x15b8] sm:$0xff] }
 0x255   : > { %4832 = vmatpush1.bf16.msra.mxu1 %v4831_v55  ;;  %2015 = vmatprep.mubr.f32.mxu1 %v5888_v0  ;;  %v1052_v55 = vld [vmem:[%s6366_s28 + $0x1578] sm:$0xff] }
 0x256   : > { %4834 = vmatprep.subr.bf16.mxu1 %v4833_v58  ;;  %v4867_v58 = vpack.c.bf16 %v1035_v52, %v1027_v50  ;;  %v4869_v59 = vpack.c.bf16 %v1052_v55, %v1044_v54  ;;  %v5892_v50 = vld [vmem:[#allocation2 + $0x58] sm:$0xff]  ;;  %v5155_v52 = vpack.c.bf16 %v2199_v45, %v2193_v44  ;;  %v2205_v55 = vld [vmem:[%s6374_s8 + $0xd0] sm:$0xff]  ;;  %v2271_v44 = vld [vmem:[%s6374_s8 + $0x2e0] sm:$0xff] }
 0x257   : > { %v2278_v45 = vld [vmem:[%s6374_s8 + $0x318] sm:$0xff] }
 0x258   : > { %2016 = vmatmul.mubr.f32.gmra.mrb[10].mxu1 %v5889_v6  ;;  %v1076_v6 = vld [vmem:[%s6366_s28 + $0x1638] sm:$0xff] }
 0x259   : > { %4836 = vmatpush1.bf16.msra.mxu1 %v4835_v63  ;;  %2086 = vmatprep.mubr.f32.mxu1 %v5890_v9  ;;  %v1068_v63 = vld [vmem:[%s6366_s28 + $0x15f8] sm:$0xff] }
 0x25a   : > { %4838 = vmatprep.subr.bf16.mxu1 %v4837_v1  ;;  %v4871_v1 = vpack.c.bf16 %v1051_v61, %v1043_v60  ;;  %v4873_v2 = vpack.c.bf16 %v1068_v63, %v1060_v16  ;;  %v2224_v60 = vld [vmem:[%s6374_s8 + $0x168] sm:$0xff]  ;;  %v5893_v61 = vld [vmem:[#allocation2 + $0x50] sm:$0xff] }
 0x25d   : > { %4840 = vmatpush1.bf16.msra.mxu1 %v4839_v7  ;;  %v1084_v7 = vld [vmem:[%s6366_s28 + $0x1678] sm:$0xff] }
 0x25e   : > { %4842 = vmatprep.subr.bf16.mxu1 %v4841_v10  ;;  %v4875_v10 = vpack.c.bf16 %v1067_v4, %v1059_v3  ;;  %v4877_v39 = vpack.c.bf16 %v1084_v7, %v1076_v6  ;;  %v2230_v3 = vld [vmem:[%s6374_s8 + $0x198] sm:$0xff]  ;;  %v2236_v4 = vld [vmem:[%s6374_s8 + $0x1c8] sm:$0xff] }
 0x25f   : > { %v5165_v7 = vpack.c.bf16 %v2236_v4, %v2230_v3  ;;  %v2289_v4 = vld [vmem:[%s6374_s8 + $0x370] sm:$0xff] }
 0x261   : > { %4844 = vmatpush1.bf16.msra.mxu1 %v4843_v15  ;;  %v1100_v15 = vld [vmem:[%s6366_s28 + $0x16f8] sm:$0xff] }
 0x262   : > { %4846 = vmatprep.subr.bf16.mxu1 %v4845_v20  ;;  %v4879_v20 = vpack.c.bf16 %v1083_v38, %v1075_v11  ;;  %v4881_v18 = vpack.c.bf16 %v1100_v15, %v1092_v14  ;;  %v1157_v11 = vsub.s32 5, %v7095_v57  ;;  %v2242_v38 = vld [vmem:[%s6374_s8 + $0x1f8] sm:$0xff]  ;;  %v2248_v14 = vld [vmem:[%s6374_s8 + $0x228] sm:$0xff]  ;;  %v1145_v15 = vsub.s32 2, %v7095_v57 }
 0x265   : > { %4848 = vmatpush1.bf16.msra.mxu1 %v4847_v42  ;;  %v1116_v42 = vld [vmem:[%s6366_s28 + $0x1778] sm:$0xff] }
 0x266   : > { %4850 = vmatprep.subr.bf16.mxu1 %v4849_v22  ;;  %v4883_v22 = vpack.c.bf16 %v1099_v30, %v1091_v19  ;;  %v4885_v23 = vpack.c.bf16 %v1116_v42, %v1108_v21  ;;  %v5169_v19 = vpack.c.bf16 %v2248_v14, %v2242_v38  ;;  %v2241_v30 = vld [vmem:[%s6374_s8 + $0x1f0] sm:$0xff]  ;;  %v2247_v21 = vld [vmem:[%s6374_s8 + $0x220] sm:$0xff] }
 0x267   : > { %v7401_v42 = vld [vmem:[%s6372_s24] sm:$0xff] }
 0x269   : > { %4852 = vmatpush1.bf16.msra.mxu1 %v4851_v48  ;;  %v1132_v48 = vld [vmem:[%s6366_s28 + $0x17f8] sm:$0xff] }
 0x26a   : > { %4854 = vmatprep.subr.bf16.mxu1 %v4853_v26  ;;  %v4887_v26 = vpack.c.bf16 %v1115_v24, %v1107_v51  ;;  %v4889_v28 = vpack.c.bf16 %v1132_v48, %v1124_v25  ;;  %v2260_v51 = vld [vmem:[%s6374_s8 + $0x288] sm:$0xff]  ;;  %v1146_v24 = vrot.slane %v7401_v42, %v1145_v15  ;;  %v5171_v48 = vpack.c.bf16 %v2247_v21, %v2241_v30  ;;  %v2307_v30 = vld [vmem:[%s6374_s8 + $0x400] sm:$0xff] }
 0x26d   : > { %4856 = vmatpush1.bf16.msra.mxu1 %v4855_v17  ;;  %v2188_v17 = vld [vmem:[%s6374_s8 + $0x48] sm:$0xff] }
 0x26e   : > { %4858 = vmatprep.subr.bf16.mxu1 %v4857_v33  ;;  %v4891_v33 = vpack.c.bf16 %v1131_v31, %v1123_v29  ;;  %v5149_v34 = vpack.c.bf16 %v2188_v17, %v2182_v32  ;;  %v2259_v29 = vld [vmem:[%s6374_s8 + $0x280] sm:$0xff]  ;;  %v2266_v17 = vld [vmem:[%s6374_s8 + $0x2b8] sm:$0xff] }
 0x271   : > { %4860 = vmatpush1.bf16.msra.mxu1 %v4859_v27  ;;  %v2200_v27 = vld [vmem:[%s6374_s8 + $0xa8] sm:$0xff] }
 0x272   : > { %4862 = vmatprep.subr.bf16.mxu1 %v4861_v13  ;;  %v5151_v13 = vpack.c.bf16 %v2187_v12, %v2181_v36  ;;  %v5153_v43 = vpack.c.bf16 %v2200_v27, %v2194_v40 }
 0x275   : > { %4864 = vmatpush1.bf16.msra.mxu1 %v4863_v47  ;;  %v7344_v62 = vpop.f32.mrb[4].mxu0  ;;  %v2212_v47 = vld [vmem:[%s6374_s8 + $0x108] sm:$0xff] }
 0x276   : > { %4866 = vmatprep.subr.bf16.mxu1 %v4865_v49  ;;  %v7348_v0 = vpop.f32.mrb[5].mxu0  ;;  %v5891_v49 = vld [vmem:[#allocation2 + $0x20] sm:$0xff]  ;;  %v5157_v54 = vpack.c.bf16 %v2212_v47, %v2206_v46 }
 0x279   : > { %4868 = vmatpush1.bf16.msra.mxu1 %v4867_v58  ;;  %v7352_v5 = vpop.f32.mrb[6].mxu0  ;;  %v2211_v58 = vld [vmem:[%s6374_s8 + $0x100] sm:$0xff] }
 0x27a   : > { %4870 = vmatprep.subr.bf16.mxu1 %v4869_v59  ;;  %v7356_v9 = vpop.f32.mrb[7].mxu0  ;;  %v2218_v59 = vld [vmem:[%s6374_s8 + $0x138] sm:$0xff]  ;;  %v5159_v16 = vpack.c.bf16 %v2211_v58, %v2205_v55 }
 0x27b   : > { %v5161_v63 = vpack.c.bf16 %v2224_v60, %v2218_v59  ;;  %v2277_v60 = vld [vmem:[%s6374_s8 + $0x310] sm:$0xff] }
 0x27d   : > { %4872 = vmatpush1.bf16.msra.mxu1 %v4871_v1  ;;  %v2217_v1 = vld [vmem:[%s6374_s8 + $0x130] sm:$0xff] }
 0x27e   : > { %4874 = vmatprep.subr.bf16.mxu1 %v4873_v2  ;;  %v2223_v2 = vld [vmem:[%s6374_s8 + $0x160] sm:$0xff] }
 0x27f   : > { %v5163_v6 = vpack.c.bf16 %v2223_v2, %v2217_v1  ;;  %v2296_v1 = vld [vmem:[%s6374_s8 + $0x3a8] sm:$0xff] }
 0x281   : > { %4876 = vmatpush1.bf16.msra.mxu1 %v4875_v10  ;;  %v2229_v10 = vld [vmem:[%s6374_s8 + $0x190] sm:$0xff] }
 0x282   : > { %4878 = vmatprep.subr.bf16.mxu1 %v4877_v39  ;;  %v2235_v39 = vld [vmem:[%s6374_s8 + $0x1c0] sm:$0xff] }
 0x285   : > { %4880 = vmatpush1.bf16.msra.mxu1 %v4879_v20  ;;  %v5167_v20 = vpack.c.bf16 %v2235_v39, %v2229_v10  ;;  %v2308_v10 = vld [vmem:[%s6374_s8 + $0x408] sm:$0xff] }
 0x286   : > { %4882 = vmatprep.subr.bf16.mxu1 %v4881_v18  ;;  %v1149_v18 = vsub.s32 3, %v7095_v57 }
 0x288   : > { %v1150_v25 = vrot.slane %v7401_v42, %v1149_v18 }
 0x289   : > { %4884 = vmatpush1.bf16.msra.mxu1 %v4883_v22  ;;  %v7406_v22 = vrot.slane %v7401_v42, %v1157_v11 }
 0x28a   : > { %4886 = vmatprep.subr.bf16.mxu1 %v4885_v23  ;;  %v2254_v23 = vld [vmem:[%s6374_s8 + $0x258] sm:$0xff] }
 0x28b   : > { %v7420_v31 = vadd.f32 %v7348_v0, %v7406_v22 }
 0x28d   : > { %4888 = vmatpush1.bf16.msra.mxu1 %v4887_v26  ;;  %v5173_v26 = vpack.c.bf16 %v2260_v51, %v2254_v23  ;;  %v2120_v0 = vmul.f32 0.70710677, %v7420_v31  ;;  %v2569_v51 = vld [vmem:[%s6374_s8 + $0xc30] sm:$0xff] }
 0x28e   : > { %4890 = vmatprep.subr.bf16.mxu1 %v4889_v28  ;;  %v2253_v28 = vld [vmem:[%s6374_s8 + $0x250] sm:$0xff] }
 0x28f   : > { %v5175_v40 = vpack.c.bf16 %v2259_v29, %v2253_v28  ;;  %v2576_v28 = vld [vmem:[%s6374_s8 + $0xc68] sm:$0xff]  ;;  %v2582_v29 = vld [vmem:[%s6374_s8 + $0xc98] sm:$0xff] }
 0x291   : > { %4892 = vmatpush1.bf16.msra.mxu1 %v4891_v33  ;;  %v2272_v33 = vld [vmem:[%s6374_s8 + $0x2e8] sm:$0xff] }
 0x292   : > { %5150 = vmatprep.subr.bf16.mxu1 %v5149_v34 }
 0x294   : > { %2087 = vmatmul.mubr.f32.vlgmr.msra.gmra.mrb[8].mxu1 %v5891_v49  ;;  %v2284_v49 = vld [vmem:[%s6374_s8 + $0x348] sm:$0xff] }
 0x295   : > { %5152 = vmatpush1.bf16.msra.mxu1 %v5151_v13  ;;  %2092 = vmatprep.mubr.f32.mxu1 %v5892_v50  ;;  %v5177_v13 = vpack.c.bf16 %v2272_v33, %v2266_v17  ;;  %v5181_v59 = vpack.c.bf16 %v2284_v49, %v2278_v45  ;;  %v2588_v49 = vld [vmem:[%s6374_s8 + $0xcc8] sm:$0xff] }
 0x296   : > { %5154 = vmatprep.subr.bf16.mxu1 %v5153_v43  ;;  %v2265_v43 = vld [vmem:[%s6374_s8 + $0x2b0] sm:$0xff] }
 0x297   : > { %v5179_v55 = vpack.c.bf16 %v2271_v44, %v2265_v43  ;;  %v2575_v43 = vld [vmem:[%s6374_s8 + $0xc60] sm:$0xff] }
 0x298   : > { %2093 = vmatmul.mubr.f32.gmra.mrb[10].mxu1 %v5893_v61  ;;  %v2283_v61 = vld [vmem:[%s6374_s8 + $0x340] sm:$0xff] }
 0x299   : > { %5156 = vmatpush1.bf16.msra.mxu1 %v5155_v52  ;;  %3319 = vmatprep.mubr.f32.mxu1 %v7147_v53  ;;  %v5183_v2 = vpack.c.bf16 %v2283_v61, %v2277_v60  ;;  %v2319_v44 = vld [vmem:[%s6374_s8 + $0x460] sm:$0xff]  ;;  %v2326_v61 = vld [vmem:[%s6374_s8 + $0x498] sm:$0xff] }
 0x29a   : > { %5158 = vmatprep.subr.bf16.mxu1 %v5157_v54 }
 0x29d   : > { %5160 = vmatpush1.bf16.msra.mxu1 %v5159_v16 }
 0x29e   : > { %5162 = vmatprep.subr.bf16.mxu1 %v5161_v63  ;;  %v2290_v63 = vld [vmem:[%s6374_s8 + $0x378] sm:$0xff] }
 0x29f   : > { %v5185_v3 = vpack.c.bf16 %v2296_v1, %v2290_v63 }
 0x2a1   : > { %5164 = vmatpush1.bf16.msra.mxu1 %v5163_v6  ;;  %v2295_v6 = vld [vmem:[%s6374_s8 + $0x3a0] sm:$0xff] }
 0x2a2   : > { %5166 = vmatprep.subr.bf16.mxu1 %v5165_v7  ;;  %v2302_v7 = vld [vmem:[%s6374_s8 + $0x3d8] sm:$0xff]  ;;  %v5187_v39 = vpack.c.bf16 %v2295_v6, %v2289_v4  ;;  %v2331_v4 = vld [vmem:[%s6374_s8 + $0x4c0] sm:$0xff] }
 0x2a3   : > { %v5189_v14 = vpack.c.bf16 %v2308_v10, %v2302_v7  ;;  %v2593_v10 = vld [vmem:[%s6374_s8 + $0xcf0] sm:$0xff] }
 0x2a5   : > { %5168 = vmatpush1.bf16.msra.mxu1 %v5167_v20  ;;  %v2563_v20 = vld [vmem:[%s6374_s8 + $0xc00] sm:$0xff] }
 0x2a6   : > { %5170 = vmatprep.subr.bf16.mxu1 %v5169_v19  ;;  %v2301_v19 = vld [vmem:[%s6374_s8 + $0x3d0] sm:$0xff] }
 0x2a7   : > { %v1626_v32 = vpop.f32.mrb[4].mxu1  ;;  %v5191_v33 = vpack.c.bf16 %v2307_v30, %v2301_v19  ;;  %v2606_v19 = vld [vmem:[%s6374_s8 + $0xd58] sm:$0xff] }
 0x2a8   : > { %v5669_v34 = vadd.f32 %v1626_v32, %v1146_v24  ;;  %v1628_v36 = vpop.f32.mrb[5].mxu1 }
 0x2a9   : > { %v5670_v12 = vadd.f32 %v1628_v36, %v1150_v25  ;;  %5172 = vmatpush1.bf16.msra.mxu1 %v5171_v48 }
 0x2aa   : > { %v2117_v27 = vmul.f32 0.70710677, %v5669_v34  ;;  %5174 = vmatprep.subr.bf16.mxu1 %v5173_v26  ;;  %v2101_v17 = vmul.f32 0.5, %v5669_v34  ;;  %v5025_v34 = vpack.c.bf16 %v2582_v29, %v2576_v28  ;;  %v2350_v28 = vld [vmem:[%s6374_s8 + $0x558] sm:$0xff]  ;;  %v2356_v29 = vld [vmem:[%s6374_s8 + $0x588] sm:$0xff] }
 0x2ab   : > { %v2118_v46 = vmul.f32 0.70710677, %v5670_v12  ;;  %v1632_v47 = vpop.f32.mrb[6].mxu1  ;;  %v2102_v48 = vmul.f32 0.5, %v5670_v12  ;;  %v2313_v12 = vld [vmem:[%s6374_s8 + $0x430] sm:$0xff] }
 0x2ac   : > { %5847 = verf.f32 %v2117_v27  ;;  %v7429_v50 = vadd.f32 %v1632_v47, %v1146_v24  ;;  %v1634_v52 = vpop.f32.mrb[7].mxu1  ;;  %v2314_v24 = vld [vmem:[%s6374_s8 + $0x438] sm:$0xff]  ;;  %v5023_v27 = vpack.c.bf16 %v2569_v51, %v2563_v20  ;;  %v2581_v47 = vld [vmem:[%s6374_s8 + $0xc90] sm:$0xff]  ;;  %v5195_v1 = vpack.c.bf16 %v2319_v44, %v2313_v12  ;;  %v2600_v20 = vld [vmem:[%s6374_s8 + $0xd28] sm:$0xff] }
 0x2ad   : > { %5849 = verf.f32 %v2118_v46  ;;  %v5672_v54 = vadd.f32 %v1634_v52, %v1150_v25  ;;  %5176 = vmatpush1.bf16.msra.mxu1 %v5175_v40  ;;  %v2320_v25 = vld [vmem:[%s6374_s8 + $0x468] sm:$0xff]  ;;  %v2594_v52 = vld [vmem:[%s6374_s8 + $0xcf8] sm:$0xff]  ;;  %v2599_v51 = vld [vmem:[%s6374_s8 + $0xd20] sm:$0xff] }
 0x2ae   : > { %v2125_v58 = vmul.f32 0.70710677, %v7429_v50  ;;  %5178 = vmatprep.subr.bf16.mxu1 %v5177_v13  ;;  %5851 = verf.f32 %v2120_v0  ;;  %v5193_v13 = vpack.c.bf16 %v2320_v25, %v2314_v24  ;;  %v2109_v63 = vmul.f32 0.5, %v7429_v50  ;;  %v2337_v24 = vld [vmem:[%s6374_s8 + $0x4f0] sm:$0xff]  ;;  %v2343_v25 = vld [vmem:[%s6374_s8 + $0x520] sm:$0xff] }
 0x2af   : > { %v2126_v16 = vmul.f32 0.70710677, %v5672_v54  ;;  %v5029_v50 = vpack.c.bf16 %v2594_v52, %v2588_v49  ;;  %v2355_v12 = vld [vmem:[%s6374_s8 + $0x580] sm:$0xff]  ;;  %v2630_v49 = vld [vmem:[%s6374_s8 + $0xe18] sm:$0xff] }
 0x2b0   : > { %5853 = verf.f32 %v2125_v58 }
 0x2b1   : > { %5855 = verf.f32 %v2126_v16  ;;  %5180 = vmatpush1.bf16.msra.mxu1 %v5179_v55  ;;  %v2104_v55 = vmul.f32 0.5, %v7420_v31  ;;  %v2332_v16 = vld [vmem:[%s6374_s8 + $0x4c8] sm:$0xff] }
 0x2b2   : > { %5182 = vmatprep.subr.bf16.mxu1 %v5181_v59  ;;  %v2110_v59 = vmul.f32 0.5, %v5672_v54  ;;  %v5027_v54 = vpack.c.bf16 %v2581_v47, %v2575_v43  ;;  %v5197_v7 = vpack.c.bf16 %v2332_v16, %v2326_v61  ;;  %v2349_v43 = vld [vmem:[%s6374_s8 + $0x550] sm:$0xff]  ;;  %v2624_v47 = vld [vmem:[%s6374_s8 + $0xde8] sm:$0xff]  ;;  %v2367_v61 = vld [vmem:[%s6374_s8 + $0x5e0] sm:$0xff] }
 0x2b3   : > { %v5207_v52 = vpack.c.bf16 %v2355_v12, %v2349_v43  ;;  %v5041_v16 = vpack.c.bf16 %v2630_v49, %v2624_v47  ;;  %v2665_v49 = vld [vmem:[%s6374_s8 + $0xf30] sm:$0xff] }
 0x2b5   : > { %5184 = vmatpush1.bf16.msra.mxu1 %v5183_v2  ;;  %v2587_v2 = vld [vmem:[%s6374_s8 + $0xcc0] sm:$0xff] }
 0x2b6   : > { %v5848_v38 = vpop.eup %5847  ;;  %5186 = vmatprep.subr.bf16.mxu1 %v5185_v3  ;;  %v2325_v3 = vld [vmem:[%s6374_s8 + $0x490] sm:$0xff] }
 0x2b7   : > { %v5850_v21 = vpop.eup %5849  ;;  %v2149_v23 = vadd.f32 1.0, %v5848_v38  ;;  %v2344_v38 = vld [vmem:[%s6374_s8 + $0x528] sm:$0xff]  ;;  %v5199_v30 = vpack.c.bf16 %v2331_v4, %v2325_v3  ;;  %v2642_v3 = vld [vmem:[%s6374_s8 + $0xe78] sm:$0xff] }
 0x2b8   : > { %v2150_v26 = vadd.f32 1.0, %v5850_v21  ;;  %v5852_v32 = vpop.eup %5851  ;;  %v5031_v21 = vpack.c.bf16 %v2593_v10, %v2587_v2  ;;  %v2636_v2 = vld [vmem:[%s6374_s8 + $0xe48] sm:$0xff]  ;;  %v2635_v10 = vld [vmem:[%s6374_s8 + $0xe40] sm:$0xff] }
 0x2b9   : > { %5188 = vmatpush1.bf16.msra.mxu1 %v5187_v39  ;;  %v7453_v0 = vmul.f32 %v2149_v23, %v2101_v17  ;;  %v2152_v58 = vadd.f32 1.0, %v5852_v32  ;;  %v2338_v39 = vld [vmem:[%s6374_s8 + $0x4f8] sm:$0xff]  ;;  %v2612_v32 = vld [vmem:[%s6374_s8 + $0xd88] sm:$0xff] }
 0x2ba   : > { %v5854_v36 = vpop.eup %5853  ;;  %v7448_v40 = vmul.f32 %v2150_v26, %v2102_v48  ;;  %5190 = vmatprep.subr.bf16.mxu1 %v5189_v14  ;;  %v5201_v23 = vpack.c.bf16 %v2344_v38, %v2338_v39  ;;  %v5033_v48 = vpack.c.bf16 %v2606_v19, %v2600_v20  ;;  %v2605_v26 = vld [vmem:[%s6374_s8 + $0xd50] sm:$0xff]  ;;  %v2618_v17 = vld [vmem:[%s6374_s8 + $0xdb8] sm:$0xff]  ;;  %v2379_v38 = vld [vmem:[%s6374_s8 + $0x640] sm:$0xff]  ;;  %v5045_v20 = vpack.c.bf16 %v2642_v3, %v2636_v2 }
 0x2bb   : > { %v5856_v45 = vpop.eup %5855  ;;  %v2157_v46 = vadd.f32 1.0, %v5854_v36  ;;  %v7475_v14 = vmul.f32 %v2152_v58, %v2104_v55  ;;  %v5035_v36 = vpack.c.bf16 %v2605_v26, %v2599_v51  ;;  %v5037_v44 = vpack.c.bf16 %v2618_v17, %v2612_v32  ;;  %v2373_v39 = vld [vmem:[%s6374_s8 + $0x610] sm:$0xff]  ;;  %v2654_v51 = vld [vmem:[%s6374_s8 + $0xed8] sm:$0xff]  ;;  %v2647_v26 = vld [vmem:[%s6374_s8 + $0xea0] sm:$0xff] }
 0x2bc   : > { %v2158_v60 = vadd.f32 1.0, %v5856_v45  ;;  %3088 = vmatprep.mubr.f32.mxu0 %v7448_v40  ;;  %v2617_v45 = vld [vmem:[%s6374_s8 + $0xdb0] sm:$0xff]  ;;  %v2415_v2 = vld [vmem:[%s6374_s8 + $0x760] sm:$0xff] }
 0x2bd   : > { %3089 = vmatmul.mubr.f32.vlgmr.msra.gmra.mrb[8].mxu0 %v7453_v0  ;;  %5192 = vmatpush1.bf16.msra.mxu1 %v5191_v33  ;;  %v7469_v6 = vmul.f32 %v2157_v46, %v2109_v63  ;;  %v5203_v33 = vpack.c.bf16 %v2343_v25, %v2337_v24  ;;  %v2362_v46 = vld [vmem:[%s6374_s8 + $0x5b8] sm:$0xff]  ;;  %v2629_v63 = vld [vmem:[%s6374_s8 + $0xe10] sm:$0xff]  ;;  %v5215_v24 = vpack.c.bf16 %v2379_v38, %v2373_v39 }
 0x2be   : > { %5024 = vmatpush1.bf16.msra.mxu0 %v5023_v27  ;;  %v7464_v31 = vmul.f32 %v2158_v60, %v2110_v59  ;;  %5194 = vmatprep.subr.bf16.mxu1 %v5193_v13  ;;  %v5205_v27 = vpack.c.bf16 %v2356_v29, %v2350_v28  ;;  %v2611_v13 = vld [vmem:[%s6374_s8 + $0xd80] sm:$0xff]  ;;  %v2361_v60 = vld [vmem:[%s6374_s8 + $0x5b0] sm:$0xff]  ;;  %v2690_v39 = vld [vmem:[%s6374_s8 + $0xff8] sm:$0xff] }
 0x2bf   : > { %5026 = vmatprep.subr.bf16.mxu0 %v5025_v34  ;;  %v2368_v34 = vld [vmem:[%s6374_s8 + $0x5e8] sm:$0xff]  ;;  %v5039_v55 = vpack.c.bf16 %v2617_v45, %v2611_v13  ;;  %v2623_v59 = vld [vmem:[%s6374_s8 + $0xde0] sm:$0xff]  ;;  %v5211_v4 = vpack.c.bf16 %v2367_v61, %v2361_v60  ;;  %v2641_v19 = vld [vmem:[%s6374_s8 + $0xe70] sm:$0xff]  ;;  %v1153_v61 = vsub.s32 4, %v7095_v57 }
 0x2c0   : > { %3094 = vmatprep.mubr.f32.mxu0 %v7464_v31  ;;  %v5209_v58 = vpack.c.bf16 %v2368_v34, %v2362_v46  ;;  %v5047_v25 = vpack.c.bf16 %v2641_v19, %v2635_v10  ;;  %v2385_v28 = vld [vmem:[%s6374_s8 + $0x670] sm:$0xff]  ;;  %v2391_v29 = vld [vmem:[%s6374_s8 + $0x6a0] sm:$0xff]  ;;  %v2666_v13 = vld [vmem:[%s6374_s8 + $0xf38] sm:$0xff] }
 0x2c1   : > { %3095 = vmatmul.mubr.f32.gmra.mrb[10].mxu0 %v7469_v6  ;;  %5196 = vmatpush1.bf16.msra.mxu1 %v5195_v1  ;;  %v2374_v1 = vld [vmem:[%s6374_s8 + $0x618] sm:$0xff]  ;;  %v2653_v17 = vld [vmem:[%s6374_s8 + $0xed0] sm:$0xff]  ;;  %v5219_v43 = vpack.c.bf16 %v2391_v29, %v2385_v28  ;;  %v2659_v45 = vld [vmem:[%s6374_s8 + $0xf00] sm:$0xff] }
 0x2c2   : > { %5028 = vmatpush1.bf16.msra.mxu0 %v5027_v54  ;;  %3165 = vmatprep.mubr.f32.mxu0 %v7475_v14  ;;  %v2380_v54 = vld [vmem:[%s6374_s8 + $0x648] sm:$0xff]  ;;  %v5051_v12 = vpack.c.bf16 %v2653_v17, %v2647_v26  ;;  %v2397_v46 = vld [vmem:[%s6374_s8 + $0x6d0] sm:$0xff]  ;;  %v2403_v34 = vld [vmem:[%s6374_s8 + $0x700] sm:$0xff] }
 0x2c3   : > { %5030 = vmatprep.subr.bf16.mxu0 %v5029_v50  ;;  %5198 = vmatprep.subr.bf16.mxu1 %v5197_v7  ;;  %v5043_v50 = vpack.c.bf16 %v2629_v63, %v2623_v59  ;;  %v5213_v7 = vpack.c.bf16 %v2380_v54, %v2374_v1  ;;  %v2678_v59 = vld [vmem:[%s6374_s8 + $0xf98] sm:$0xff]  ;;  %v5223_v60 = vpack.c.bf16 %v2403_v34, %v2397_v46  ;;  %v2671_v1 = vld [vmem:[%s6374_s8 + $0xf60] sm:$0xff]  ;;  %v2409_v54 = vld [vmem:[%s6374_s8 + $0x730] sm:$0xff] }
 0x2c4   : > { %v2684_v10 = vld [vmem:[%s6374_s8 + $0xfc8] sm:$0xff]  ;;  %v5227_v38 = vpack.c.bf16 %v2415_v2, %v2409_v54  ;;  %v2702_v29 = vld [vmem:[%s6374_s8 + $0x1058] sm:$0xff] }
 0x2c5   : > { %5200 = vmatpush1.bf16.msra.mxu1 %v5199_v30  ;;  %v2386_v30 = vld [vmem:[%s6374_s8 + $0x678] sm:$0xff]  ;;  %v2440_v26 = vld [vmem:[%s6374_s8 + $0x828] sm:$0xff] }
 0x2c6   : > { %5032 = vmatpush1.bf16.msra.mxu0 %v5031_v21  ;;  %5202 = vmatprep.subr.bf16.mxu1 %v5201_v23  ;;  %v2392_v21 = vld [vmem:[%s6374_s8 + $0x6a8] sm:$0xff]  ;;  %v2714_v34 = vld [vmem:[%s6374_s8 + $0x10b8] sm:$0xff] }
 0x2c7   : > { %5034 = vmatprep.subr.bf16.mxu0 %v5033_v48  ;;  %v2648_v23 = vld [vmem:[%s6374_s8 + $0xea8] sm:$0xff]  ;;  %v5217_v48 = vpack.c.bf16 %v2392_v21, %v2386_v30  ;;  %v2683_v21 = vld [vmem:[%s6374_s8 + $0xfc0] sm:$0xff] }
 0x2c8   : > { %v5049_v32 = vpack.c.bf16 %v2654_v51, %v2648_v23  ;;  %v2421_v23 = vld [vmem:[%s6374_s8 + $0x790] sm:$0xff]  ;;  %v2427_v51 = vld [vmem:[%s6374_s8 + $0x7c0] sm:$0xff]  ;;  %v2696_v28 = vld [vmem:[%s6374_s8 + $0x1028] sm:$0xff] }
 0x2c9   : > { %5204 = vmatpush1.bf16.msra.mxu1 %v5203_v33  ;;  %v2398_v33 = vld [vmem:[%s6374_s8 + $0x6d8] sm:$0xff]  ;;  %v2708_v46 = vld [vmem:[%s6374_s8 + $0x1088] sm:$0xff] }
 0x2ca   : > { %5036 = vmatpush1.bf16.msra.mxu0 %v5035_v36  ;;  %5206 = vmatprep.subr.bf16.mxu1 %v5205_v27  ;;  %v2404_v36 = vld [vmem:[%s6374_s8 + $0x708] sm:$0xff] }
 0x2cb   : > { %5038 = vmatprep.subr.bf16.mxu0 %v5037_v44  ;;  %v2660_v27 = vld [vmem:[%s6374_s8 + $0xf08] sm:$0xff]  ;;  %v5221_v44 = vpack.c.bf16 %v2404_v36, %v2398_v33  ;;  %v2695_v36 = vld [vmem:[%s6374_s8 + $0x1020] sm:$0xff] }
 0x2cc   : > { %v5053_v47 = vpack.c.bf16 %v2666_v13, %v2660_v27  ;;  %v2433_v27 = vld [vmem:[%s6374_s8 + $0x7f0] sm:$0xff]  ;;  %v2439_v13 = vld [vmem:[%s6374_s8 + $0x820] sm:$0xff]  ;;  %v2464_v54 = vld [vmem:[%s6374_s8 + $0x8e8] sm:$0xff] }
 0x2cd   : > { %5208 = vmatpush1.bf16.msra.mxu1 %v5207_v52  ;;  %v2410_v52 = vld [vmem:[%s6374_s8 + $0x738] sm:$0xff]  ;;  %v2720_v2 = vld [vmem:[%s6374_s8 + $0x10e8] sm:$0xff] }
 0x2ce   : > { %5040 = vmatpush1.bf16.msra.mxu0 %v5039_v55  ;;  %5210 = vmatprep.subr.bf16.mxu1 %v5209_v58  ;;  %v2416_v55 = vld [vmem:[%s6374_s8 + $0x768] sm:$0xff] }
 0x2cf   : > { %5042 = vmatprep.subr.bf16.mxu0 %v5041_v16  ;;  %v2672_v58 = vld [vmem:[%s6374_s8 + $0xf68] sm:$0xff]  ;;  %v5055_v16 = vpack.c.bf16 %v2665_v49, %v2659_v45  ;;  %v5225_v63 = vpack.c.bf16 %v2416_v55, %v2410_v52  ;;  %v2446_v45 = vld [vmem:[%s6374_s8 + $0x858] sm:$0xff]  ;;  %v2707_v55 = vld [vmem:[%s6374_s8 + $0x1080] sm:$0xff] }
 0x2d0   : > { %v5057_v3 = vpack.c.bf16 %v2678_v59, %v2672_v58  ;;  %v2445_v58 = vld [vmem:[%s6374_s8 + $0x850] sm:$0xff]  ;;  %v2451_v59 = vld [vmem:[%s6374_s8 + $0x880] sm:$0xff] }
 0x2d1   : > { %5212 = vmatpush1.bf16.msra.mxu1 %v5211_v4  ;;  %v2677_v4 = vld [vmem:[%s6374_s8 + $0xf90] sm:$0xff] }
 0x2d2   : > { %5044 = vmatpush1.bf16.msra.mxu0 %v5043_v50  ;;  %5214 = vmatprep.subr.bf16.mxu1 %v5213_v7  ;;  %v2422_v50 = vld [vmem:[%s6374_s8 + $0x798] sm:$0xff]  ;;  %v2428_v7 = vld [vmem:[%s6374_s8 + $0x7c8] sm:$0xff]  ;;  %v5059_v19 = vpack.c.bf16 %v2677_v4, %v2671_v1 }
 0x2d3   : > { %5046 = vmatprep.subr.bf16.mxu0 %v5045_v20  ;;  %v1154_v20 = vrot.slane %v7401_v42, %v1153_v61  ;;  %v5229_v30 = vpack.c.bf16 %v2428_v7, %v2422_v50  ;;  %v5231_v42 = vpack.c.bf16 %v2427_v51, %v2421_v23  ;;  %v2458_v1 = vld [vmem:[%s6374_s8 + $0x8b8] sm:$0xff]  ;;  %v2732_v23 = vld [vmem:[%s6374_s8 + $0x1148] sm:$0xff] }
 0x2d4   : > { %3320 = vmatmul.mubr.f32.vlgmr.msra.gmra.mrb[12].mxu1 %v7149_v56  ;;  %v5241_v7 = vpack.c.bf16 %v2464_v54, %v2458_v1  ;;  %v2738_v51 = vld [vmem:[%s6374_s8 + $0x1178] sm:$0xff]  ;;  %v2493_v54 = vld [vmem:[%s6374_s8 + $0x9d0] sm:$0xff] }
 0x2d5   : > { %3325 = vmatprep.mubr.f32.mxu1 %v7162_v8  ;;  %5216 = vmatpush1.bf16.msra.mxu1 %v5215_v24  ;;  %v5061_v24 = vpack.c.bf16 %v2690_v39, %v2684_v10  ;;  %v2719_v10 = vld [vmem:[%s6374_s8 + $0x10e0] sm:$0xff]  ;;  %v2457_v39 = vld [vmem:[%s6374_s8 + $0x8b0] sm:$0xff] }
 0x2d6   : > { %5048 = vmatpush1.bf16.msra.mxu0 %v5047_v25  ;;  %5218 = vmatprep.subr.bf16.mxu1 %v5217_v48  ;;  %v2689_v25 = vld [vmem:[%s6374_s8 + $0xff0] sm:$0xff]  ;;  %v2434_v48 = vld [vmem:[%s6374_s8 + $0x7f8] sm:$0xff] }
 0x2d7   : > { %5050 = vmatprep.subr.bf16.mxu0 %v5049_v32  ;;  %v7554_v32 = vadd.f32 %v7344_v62, %v1154_v20  ;;  %v5063_v17 = vpack.c.bf16 %v2689_v25, %v2683_v21  ;;  %v5233_v33 = vpack.c.bf16 %v2440_v26, %v2434_v48  ;;  %v2452_v62 = vld [vmem:[%s6374_s8 + $0x888] sm:$0xff]  ;;  %v2731_v26 = vld [vmem:[%s6374_s8 + $0x1140] sm:$0xff] }
 0x2d8   : > { %3326 = vmatmul.mubr.f32.gmra.mrb[14].mxu1 %v7164_v35  ;;  %v5237_v52 = vpack.c.bf16 %v2452_v62, %v2446_v45  ;;  %v2476_v21 = vld [vmem:[%s6374_s8 + $0x948] sm:$0xff]  ;;  %v2743_v62 = vld [vmem:[%s6374_s8 + $0x11a0] sm:$0xff] }
 0x2d9   : > { %5220 = vmatpush1.bf16.msra.mxu1 %v5219_v43  ;;  %3396 = vmatprep.mubr.f32.mxu1 %v7448_v40  ;;  %v7561_v43 = vadd.f32 %v7356_v9, %v7406_v22  ;;  %v2119_v49 = vmul.f32 0.70710677, %v7554_v32  ;;  %v7570_v9 = vadd.f32 %v7352_v5, %v1154_v20  ;;  %v2726_v5 = vld [vmem:[%s6374_s8 + $0x1118] sm:$0xff] }
 0x2da   : > { %5052 = vmatpush1.bf16.msra.mxu0 %v5051_v12  ;;  %5222 = vmatprep.subr.bf16.mxu1 %v5221_v44  ;;  %v5065_v12 = vpack.c.bf16 %v2702_v29, %v2696_v28  ;;  %v2701_v44 = vld [vmem:[%s6374_s8 + $0x1050] sm:$0xff]  ;;  %v5073_v20 = vpack.c.bf16 %v2726_v5, %v2720_v2  ;;  %v2475_v29 = vld [vmem:[%s6374_s8 + $0x940] sm:$0xff]  ;;  %v2103_v5 = vmul.f32 0.5, %v7554_v32  ;;  %v2774_v32 = vld [vmem:[%s6374_s8 + $0x1298] sm:$0xff] }
 0x2db   : > { %5054 = vmatprep.subr.bf16.mxu0 %v5053_v47  ;;  %v5235_v47 = vpack.c.bf16 %v2439_v13, %v2433_v27  ;;  %v5067_v22 = vpack.c.bf16 %v2701_v44, %v2695_v36  ;;  %5857 = verf.f32 %v2119_v49  ;;  %v2127_v4 = vmul.f32 0.70710677, %v7570_v9  ;;  %v2469_v28 = vld [vmem:[%s6374_s8 + $0x910] sm:$0xff]  ;;  %v2488_v36 = vld [vmem:[%s6374_s8 + $0x9a8] sm:$0xff]  ;;  %v2750_v13 = vld [vmem:[%s6374_s8 + $0x11d8] sm:$0xff] }
 0x2dc   : > { %v2744_v27 = vld [vmem:[%s6374_s8 + $0x11a8] sm:$0xff]  ;;  %v2749_v49 = vld [vmem:[%s6374_s8 + $0x11d0] sm:$0xff]  ;;  %v2499_v2 = vld [vmem:[%s6374_s8 + $0xa00] sm:$0xff] }
 0x2dd   : > { %5224 = vmatpush1.bf16.msra.mxu1 %v5223_v60  ;;  %v2128_v60 = vmul.f32 0.70710677, %v7561_v43 }
 0x2de   : > { %5056 = vmatpush1.bf16.msra.mxu0 %v5055_v16  ;;  %5226 = vmatprep.subr.bf16.mxu1 %v5225_v63  ;;  %v5069_v16 = vpack.c.bf16 %v2714_v34, %v2708_v46  ;;  %v2713_v63 = vld [vmem:[%s6374_s8 + $0x10b0] sm:$0xff]  ;;  %v2487_v34 = vld [vmem:[%s6374_s8 + $0x9a0] sm:$0xff] }
 0x2df   : > { %5058 = vmatprep.subr.bf16.mxu0 %v5057_v3  ;;  %v5239_v3 = vpack.c.bf16 %v2451_v59, %v2445_v58  ;;  %v5071_v50 = vpack.c.bf16 %v2713_v63, %v2707_v55  ;;  %5859 = verf.f32 %v2128_v60  ;;  %v2481_v46 = vld [vmem:[%s6374_s8 + $0x970] sm:$0xff]  ;;  %v2756_v58 = vld [vmem:[%s6374_s8 + $0x1208] sm:$0xff]  ;;  %v2762_v59 = vld [vmem:[%s6374_s8 + $0x1238] sm:$0xff]  ;;  %v5083_v63 = vpack.c.bf16 %v2749_v49, %v2743_v62 }
 0x2e0   : > { %5861 = verf.f32 %v2127_v4  ;;  %v2506_v4 = vld [vmem:[%s6374_s8 + $0xa38] sm:$0xff] }
 0x2e1   : > { %5228 = vmatpush1.bf16.msra.mxu1 %v5227_v38  ;;  %v2463_v38 = vld [vmem:[%s6374_s8 + $0x8e0] sm:$0xff] }
 0x2e2   : > { %5060 = vmatpush1.bf16.msra.mxu0 %v5059_v19  ;;  %5230 = vmatprep.subr.bf16.mxu1 %v5229_v30  ;;  %v2725_v19 = vld [vmem:[%s6374_s8 + $0x1110] sm:$0xff]  ;;  %v2470_v30 = vld [vmem:[%s6374_s8 + $0x918] sm:$0xff] }
 0x2e3   : > { %5062 = vmatprep.subr.bf16.mxu0 %v5061_v24  ;;  %v5243_v24 = vpack.c.bf16 %v2463_v38, %v2457_v39  ;;  %v5075_v25 = vpack.c.bf16 %v2725_v19, %v2719_v10  ;;  %v5245_v48 = vpack.c.bf16 %v2476_v21, %v2470_v30  ;;  %v2112_v39 = vmul.f32 0.5, %v7561_v43  ;;  %v2761_v19 = vld [vmem:[%s6374_s8 + $0x1230] sm:$0xff]  ;;  %v2768_v21 = vld [vmem:[%s6374_s8 + $0x1268] sm:$0xff] }
 0x2e4   : > { %v5255_v30 = vpack.c.bf16 %v2499_v2, %v2493_v54  ;;  %v2111_v43 = vmul.f32 0.5, %v7570_v9  ;;  %v2780_v9 = vld [vmem:[%s6374_s8 + $0x12c8] sm:$0xff] }
 0x2e5   : > { %5232 = vmatpush1.bf16.msra.mxu1 %v5231_v42  ;;  %v5077_v42 = vpack.c.bf16 %v2738_v51, %v2732_v23  ;;  %v5858_v55 = vpop.eup %5857  ;;  %v2505_v51 = vld [vmem:[%s6374_s8 + $0xa30] sm:$0xff]  ;;  %v2548_v54 = vld [vmem:[%s6374_s8 + $0xb88] sm:$0xff] }
 0x2e6   : > { %5064 = vmatpush1.bf16.msra.mxu0 %v5063_v17  ;;  %5234 = vmatprep.subr.bf16.mxu1 %v5233_v33  ;;  %v2737_v17 = vld [vmem:[%s6374_s8 + $0x1170] sm:$0xff]  ;;  %v2482_v33 = vld [vmem:[%s6374_s8 + $0x978] sm:$0xff] }
 0x2e7   : > { %5066 = vmatprep.subr.bf16.mxu0 %v5065_v12  ;;  %v5247_v12 = vpack.c.bf16 %v2475_v29, %v2469_v28  ;;  %v5079_v44 = vpack.c.bf16 %v2737_v17, %v2731_v26  ;;  %v5249_v45 = vpack.c.bf16 %v2488_v36, %v2482_v33  ;;  %v2518_v26 = vld [vmem:[%s6374_s8 + $0xa98] sm:$0xff]  ;;  %v2524_v28 = vld [vmem:[%s6374_s8 + $0xac8] sm:$0xff]  ;;  %v5089_v17 = vpack.c.bf16 %v2774_v32, %v2768_v21  ;;  %v2767_v33 = vld [vmem:[%s6374_s8 + $0x1260] sm:$0xff] }
 0x2e8   : > { %v2773_v36 = vld [vmem:[%s6374_s8 + $0x1290] sm:$0xff] }
 0x2e9   : > { %5236 = vmatpush1.bf16.msra.mxu1 %v5235_v47  ;;  %v5081_v47 = vpack.c.bf16 %v2750_v13, %v2744_v27  ;;  %v5860_v60 = vpop.eup %5859  ;;  %v2786_v13 = vld [vmem:[%s6374_s8 + $0x12f8] sm:$0xff] }
 0x2ea   : > { %5068 = vmatpush1.bf16.msra.mxu0 %v5067_v22  ;;  %5238 = vmatprep.subr.bf16.mxu1 %v5237_v52  ;;  %v2494_v22 = vld [vmem:[%s6374_s8 + $0x9d8] sm:$0xff]  ;;  %v2500_v52 = vld [vmem:[%s6374_s8 + $0xa08] sm:$0xff]  ;;  %v5862_v10 = vpop.eup %5861  ;;  %v2160_v38 = vadd.f32 1.0, %v5860_v60  ;;  %v5093_v49 = vpack.c.bf16 %v2786_v13, %v2780_v9  ;;  %v2815_v9 = vld [vmem:[%s6374_s8 + $0x13e0] sm:$0xff] }
 0x2eb   : > { %5070 = vmatprep.subr.bf16.mxu0 %v5069_v16  ;;  %v5251_v16 = vpack.c.bf16 %v2487_v34, %v2481_v46  ;;  %v5253_v1 = vpack.c.bf16 %v2500_v52, %v2494_v22  ;;  %v2530_v46 = vld [vmem:[%s6374_s8 + $0xaf8] sm:$0xff]  ;;  %v2536_v34 = vld [vmem:[%s6374_s8 + $0xb28] sm:$0xff]  ;;  %v2779_v22 = vld [vmem:[%s6374_s8 + $0x12c0] sm:$0xff] }
 0x2ec   : > { %v2785_v52 = vld [vmem:[%s6374_s8 + $0x12f0] sm:$0xff]  ;;  %v5265_v60 = vpack.c.bf16 %v2536_v34, %v2530_v46 }
 0x2ed   : > { %5240 = vmatpush1.bf16.msra.mxu1 %v5239_v3  ;;  %v2151_v3 = vadd.f32 1.0, %v5858_v55  ;;  %v5095_v2 = vpack.c.bf16 %v2785_v52, %v2779_v22  ;;  %v2821_v13 = vld [vmem:[%s6374_s8 + $0x1410] sm:$0xff]  ;;  %v2584_v22 = vld [vmem:[%s6374_s8 + $0xca8] sm:$0xff] }
 0x2ee   : > { %5072 = vmatpush1.bf16.msra.mxu0 %v5071_v50  ;;  %5242 = vmatprep.subr.bf16.mxu1 %v5241_v7  ;;  %v2512_v50 = vld [vmem:[%s6374_s8 + $0xa68] sm:$0xff]  ;;  %v5085_v7 = vpack.c.bf16 %v2762_v59, %v2756_v58  ;;  %v2798_v59 = vld [vmem:[%s6374_s8 + $0x1358] sm:$0xff]  ;;  %v2565_v34 = vld [vmem:[%s6374_s8 + $0xc10] sm:$0xff]  ;;  %v5107_v52 = vpack.c.bf16 %v2821_v13, %v2815_v9 }
 0x2ef   : > { %5074 = vmatprep.subr.bf16.mxu0 %v5073_v20  ;;  %v2755_v20 = vld [vmem:[%s6374_s8 + $0x1200] sm:$0xff]  ;;  %v5257_v23 = vpack.c.bf16 %v2512_v50, %v2506_v4  ;;  %v2792_v58 = vld [vmem:[%s6374_s8 + $0x1328] sm:$0xff]  ;;  %v2797_v4 = vld [vmem:[%s6374_s8 + $0x1350] sm:$0xff] }
 0x2f0   : > { %v5087_v29 = vpack.c.bf16 %v2761_v19, %v2755_v20  ;;  %v2547_v20 = vld [vmem:[%s6374_s8 + $0xb80] sm:$0xff]  ;;  %v2554_v19 = vld [vmem:[%s6374_s8 + $0xbb8] sm:$0xff]  ;;  %v2620_v9 = vld [vmem:[%s6374_s8 + $0xdc8] sm:$0xff] }
 0x2f1   : > { %5244 = vmatpush1.bf16.msra.mxu1 %v5243_v24  ;;  %v2511_v24 = vld [vmem:[%s6374_s8 + $0xa60] sm:$0xff] }
 0x2f2   : > { %5076 = vmatpush1.bf16.msra.mxu0 %v5075_v25  ;;  %5246 = vmatprep.subr.bf16.mxu1 %v5245_v48  ;;  %v7618_v25 = vmul.f32 %v2151_v3, %v2103_v5  ;;  %v2159_v48 = vadd.f32 1.0, %v5862_v10  ;;  %v5259_v27 = vpack.c.bf16 %v2511_v24, %v2505_v51  ;;  %v5097_v5 = vpack.c.bf16 %v2798_v59, %v2792_v58  ;;  %v2791_v3 = vld [vmem:[%s6374_s8 + $0x1320] sm:$0xff]  ;;  %v2810_v10 = vld [vmem:[%s6374_s8 + $0x13b8] sm:$0xff]  ;;  %v2809_v51 = vld [vmem:[%s6374_s8 + $0x13b0] sm:$0xff] }
 0x2f3   : > { %5078 = vmatprep.subr.bf16.mxu0 %v5077_v42  ;;  %v7623_v42 = vmul.f32 %v2160_v38, %v2112_v39  ;;  %v2541_v38 = vld [vmem:[%s6374_s8 + $0xb50] sm:$0xff]  ;;  %v5099_v21 = vpack.c.bf16 %v2797_v4, %v2791_v3  ;;  %v2827_v58 = vld [vmem:[%s6374_s8 + $0x1440] sm:$0xff]  ;;  %v2596_v3 = vld [vmem:[%s6374_s8 + $0xd08] sm:$0xff] }
 0x2f4   : > { %v7633_v62 = vmul.f32 %v2159_v48, %v2111_v43  ;;  %v5271_v24 = vpack.c.bf16 %v2547_v20, %v2541_v38  ;;  %v2816_v43 = vld [vmem:[%s6374_s8 + $0x13e8] sm:$0xff]  ;;  %v2822_v48 = vld [vmem:[%s6374_s8 + $0x1418] sm:$0xff]  ;;  %v2833_v59 = vld [vmem:[%s6374_s8 + $0x1470] sm:$0xff] }
 0x2f5   : > { %5248 = vmatpush1.bf16.msra.mxu1 %v5247_v12  ;;  %v5261_v12 = vpack.c.bf16 %v2524_v28, %v2518_v26  ;;  %v2553_v28 = vld [vmem:[%s6374_s8 + $0xbb0] sm:$0xff]  ;;  %v5111_v4 = vpack.c.bf16 %v2833_v59, %v2827_v58  ;;  %v2852_v38 = vld [vmem:[%s6374_s8 + $0x1508] sm:$0xff]  ;;  %v2858_v20 = vld [vmem:[%s6374_s8 + $0x1538] sm:$0xff] }
 0x2f6   : > { %5080 = vmatpush1.bf16.msra.mxu0 %v5079_v44  ;;  %5250 = vmatprep.subr.bf16.mxu1 %v5249_v45  ;;  %v2517_v44 = vld [vmem:[%s6374_s8 + $0xa90] sm:$0xff]  ;;  %v2523_v45 = vld [vmem:[%s6374_s8 + $0xac0] sm:$0xff]  ;;  %v2632_v58 = vld [vmem:[%s6374_s8 + $0xe28] sm:$0xff] }
 0x2f7   : > { %5082 = vmatprep.subr.bf16.mxu0 %v5081_v47  ;;  %v5091_v47 = vpack.c.bf16 %v2773_v36, %v2767_v33  ;;  %v5263_v55 = vpack.c.bf16 %v2523_v45, %v2517_v44  ;;  %v2572_v33 = vld [vmem:[%s6374_s8 + $0xc48] sm:$0xff]  ;;  %v2834_v45 = vld [vmem:[%s6374_s8 + $0x1478] sm:$0xff] }
 0x2f8   : > { %v2828_v44 = vld [vmem:[%s6374_s8 + $0x1448] sm:$0xff] }
 0x2f9   : > { %5252 = vmatpush1.bf16.msra.mxu1 %v5251_v16  ;;  %v2529_v16 = vld [vmem:[%s6374_s8 + $0xaf0] sm:$0xff] }
 0x2fa   : > { %5084 = vmatpush1.bf16.msra.mxu0 %v5083_v63  ;;  %5254 = vmatprep.subr.bf16.mxu1 %v5253_v1  ;;  %v2535_v63 = vld [vmem:[%s6374_s8 + $0xb20] sm:$0xff]  ;;  %v2542_v1 = vld [vmem:[%s6374_s8 + $0xb58] sm:$0xff] }
 0x2fb   : > { %5086 = vmatprep.subr.bf16.mxu0 %v5085_v7  ;;  %v5267_v50 = vpack.c.bf16 %v2535_v63, %v2529_v16  ;;  %v2804_v7 = vld [vmem:[%s6374_s8 + $0x1388] sm:$0xff]  ;;  %v5269_v39 = vpack.c.bf16 %v2548_v54, %v2542_v1  ;;  %v2846_v63 = vld [vmem:[%s6374_s8 + $0x14d8] sm:$0xff]  ;;  %v2577_v54 = vld [vmem:[%s6374_s8 + $0xc70] sm:$0xff] }
 0x2fc   : > { %v5101_v32 = vpack.c.bf16 %v2810_v10, %v2804_v7  ;;  %v2840_v16 = vld [vmem:[%s6374_s8 + $0x14a8] sm:$0xff]  ;;  %v2839_v7 = vld [vmem:[%s6374_s8 + $0x14a0] sm:$0xff]  ;;  %v2845_v10 = vld [vmem:[%s6374_s8 + $0x14d0] sm:$0xff] }
 0x2fd   : > { %3166 = vmatmul.mubr.f32.vlgmr.msra.gmra.mrb[8].mxu0 %v7618_v25  ;;  %5256 = vmatpush1.bf16.msra.mxu1 %v5255_v30  ;;  %v2560_v30 = vld [vmem:[%s6374_s8 + $0xbe8] sm:$0xff] }
 0x2fe   : > { %3171 = vmatprep.mubr.f32.mxu0 %v7623_v42  ;;  %5258 = vmatprep.subr.bf16.mxu1 %v5257_v23  ;;  %v2803_v23 = vld [vmem:[%s6374_s8 + $0x1380] sm:$0xff]  ;;  %v5273_v26 = vpack.c.bf16 %v2560_v30, %v2554_v19  ;;  %v2589_v30 = vld [vmem:[%s6374_s8 + $0xcd0] sm:$0xff] }
 0x2ff   : > { %5088 = vmatpush1.bf16.msra.mxu0 %v5087_v29  ;;  %v2559_v29 = vld [vmem:[%s6374_s8 + $0xbe0] sm:$0xff]  ;;  %v5103_v36 = vpack.c.bf16 %v2809_v51, %v2803_v23  ;;  %v2608_v23 = vld [vmem:[%s6374_s8 + $0xd68] sm:$0xff]  ;;  %v5115_v51 = vpack.c.bf16 %v2845_v10, %v2839_v7 }
 0x300   : > { %5090 = vmatprep.subr.bf16.mxu0 %v5089_v17  ;;  %v2566_v17 = vld [vmem:[%s6374_s8 + $0xc18] sm:$0xff]  ;;  %v2644_v7 = vld [vmem:[%s6374_s8 + $0xe88] sm:$0xff] }
 0x301   : > { %3172 = vmatmul.mubr.f32.gmra.mrb[10].mxu0 %v7633_v62  ;;  %5260 = vmatpush1.bf16.msra.mxu1 %v5259_v27  ;;  %v5105_v27 = vpack.c.bf16 %v2822_v48, %v2816_v43  ;;  %v5277_v46 = vpack.c.bf16 %v2572_v33, %v2566_v17  ;;  %v2851_v43 = vld [vmem:[%s6374_s8 + $0x1500] sm:$0xff]  ;;  %v2857_v48 = vld [vmem:[%s6374_s8 + $0x1530] sm:$0xff] }
 0x302   : > { %5262 = vmatprep.subr.bf16.mxu1 %v5261_v12  ;;  %v5275_v12 = vpack.c.bf16 %v2559_v29, %v2553_v28  ;;  %v2864_v28 = vld [vmem:[%s6374_s8 + $0x1568] sm:$0xff]  ;;  %v2870_v29 = vld [vmem:[%s6374_s8 + $0x1598] sm:$0xff]  ;;  %v2601_v33 = vld [vmem:[%s6374_s8 + $0xd30] sm:$0xff]  ;;  %v5119_v13 = vpack.c.bf16 %v2857_v48, %v2851_v43 }
 0x303   : > { %5092 = vmatpush1.bf16.msra.mxu0 %v5091_v47  ;;  %v2571_v47 = vld [vmem:[%s6374_s8 + $0xc40] sm:$0xff]  ;;  %v2656_v43 = vld [vmem:[%s6374_s8 + $0xee8] sm:$0xff] }
 0x304   : > { %5094 = vmatprep.subr.bf16.mxu0 %v5093_v49  ;;  %v2578_v49 = vld [vmem:[%s6374_s8 + $0xc78] sm:$0xff] }
 0x305   : > { %5264 = vmatpush1.bf16.msra.mxu1 %v5263_v55  ;;  %v5109_v55 = vpack.c.bf16 %v2834_v45, %v2828_v44  ;;  %v5281_v1 = vpack.c.bf16 %v2584_v22, %v2578_v49  ;;  %v2863_v44 = vld [vmem:[%s6374_s8 + $0x1560] sm:$0xff]  ;;  %v2869_v45 = vld [vmem:[%s6374_s8 + $0x1590] sm:$0xff] }
 0x306   : > { %5266 = vmatprep.subr.bf16.mxu1 %v5265_v60  ;;  %v5279_v60 = vpack.c.bf16 %v2571_v47, %v2565_v34  ;;  %v2876_v34 = vld [vmem:[%s6374_s8 + $0x15c8] sm:$0xff]  ;;  %v2882_v47 = vld [vmem:[%s6374_s8 + $0x15f8] sm:$0xff]  ;;  %v2613_v22 = vld [vmem:[%s6374_s8 + $0xd90] sm:$0xff]  ;;  %v5123_v59 = vpack.c.bf16 %v2869_v45, %v2863_v44 }
 0x307   : > { %5096 = vmatpush1.bf16.msra.mxu0 %v5095_v2  ;;  %v2583_v2 = vld [vmem:[%s6374_s8 + $0xca0] sm:$0xff]  ;;  %v2668_v44 = vld [vmem:[%s6374_s8 + $0xf48] sm:$0xff] }
 0x308   : > { %5098 = vmatprep.subr.bf16.mxu0 %v5097_v5  ;;  %v2590_v5 = vld [vmem:[%s6374_s8 + $0xcd8] sm:$0xff] }
 0x309   : > { %5268 = vmatpush1.bf16.msra.mxu1 %v5267_v50  ;;  %v5113_v50 = vpack.c.bf16 %v2846_v63, %v2840_v16  ;;  %v5285_v19 = vpack.c.bf16 %v2596_v3, %v2590_v5  ;;  %v2875_v16 = vld [vmem:[%s6374_s8 + $0x15c0] sm:$0xff]  ;;  %v2881_v63 = vld [vmem:[%s6374_s8 + $0x15f0] sm:$0xff] }
 0x30a   : > { %5270 = vmatprep.subr.bf16.mxu1 %v5269_v39  ;;  %v5283_v39 = vpack.c.bf16 %v2583_v2, %v2577_v54  ;;  %v2888_v54 = vld [vmem:[%s6374_s8 + $0x1628] sm:$0xff]  ;;  %v2894_v2 = vld [vmem:[%s6374_s8 + $0x1658] sm:$0xff]  ;;  %v2625_v3 = vld [vmem:[%s6374_s8 + $0xdf0] sm:$0xff]  ;;  %v5127_v10 = vpack.c.bf16 %v2881_v63, %v2875_v16 }
 0x30b   : > { %5100 = vmatpush1.bf16.msra.mxu0 %v5099_v21  ;;  %v2595_v21 = vld [vmem:[%s6374_s8 + $0xd00] sm:$0xff]  ;;  %v2680_v16 = vld [vmem:[%s6374_s8 + $0xfa8] sm:$0xff] }
 0x30c   : > { %5102 = vmatprep.subr.bf16.mxu0 %v5101_v32  ;;  %v2602_v32 = vld [vmem:[%s6374_s8 + $0xd38] sm:$0xff] }
 0x30d   : > { %5272 = vmatpush1.bf16.msra.mxu1 %v5271_v24  ;;  %v5117_v24 = vpack.c.bf16 %v2858_v20, %v2852_v38  ;;  %v5289_v17 = vpack.c.bf16 %v2608_v23, %v2602_v32  ;;  %v2887_v38 = vld [vmem:[%s6374_s8 + $0x1620] sm:$0xff]  ;;  %v2893_v20 = vld [vmem:[%s6374_s8 + $0x1650] sm:$0xff] }
 0x30e   : > { %5274 = vmatprep.subr.bf16.mxu1 %v5273_v26  ;;  %v5287_v26 = vpack.c.bf16 %v2595_v21, %v2589_v30  ;;  %v2900_v30 = vld [vmem:[%s6374_s8 + $0x1688] sm:$0xff]  ;;  %v2906_v21 = vld [vmem:[%s6374_s8 + $0x16b8] sm:$0xff]  ;;  %v2637_v23 = vld [vmem:[%s6374_s8 + $0xe50] sm:$0xff]  ;;  %v5131_v48 = vpack.c.bf16 %v2893_v20, %v2887_v38 }
 0x30f   : > { %5104 = vmatpush1.bf16.msra.mxu0 %v5103_v36  ;;  %v2607_v36 = vld [vmem:[%s6374_s8 + $0xd60] sm:$0xff]  ;;  %v2692_v38 = vld [vmem:[%s6374_s8 + $0x1008] sm:$0xff] }
 0x310   : > { %5106 = vmatprep.subr.bf16.mxu0 %v5105_v27  ;;  %v2614_v27 = vld [vmem:[%s6374_s8 + $0xd98] sm:$0xff] }
 0x311   : > { %5276 = vmatpush1.bf16.msra.mxu1 %v5275_v12  ;;  %v5121_v12 = vpack.c.bf16 %v2870_v29, %v2864_v28  ;;  %v5293_v49 = vpack.c.bf16 %v2620_v9, %v2614_v27  ;;  %v2899_v28 = vld [vmem:[%s6374_s8 + $0x1680] sm:$0xff]  ;;  %v2905_v29 = vld [vmem:[%s6374_s8 + $0x16b0] sm:$0xff] }
 0x312   : > { %5278 = vmatprep.subr.bf16.mxu1 %v5277_v46  ;;  %v5291_v46 = vpack.c.bf16 %v2607_v36, %v2601_v33  ;;  %v2912_v33 = vld [vmem:[%s6374_s8 + $0x16e8] sm:$0xff]  ;;  %v2918_v36 = vld [vmem:[%s6374_s8 + $0x1718] sm:$0xff]  ;;  %v2649_v9 = vld [vmem:[%s6374_s8 + $0xeb0] sm:$0xff]  ;;  %v5135_v45 = vpack.c.bf16 %v2905_v29, %v2899_v28 }
 0x313   : > { %5108 = vmatpush1.bf16.msra.mxu0 %v5107_v52  ;;  %v2619_v52 = vld [vmem:[%s6374_s8 + $0xdc0] sm:$0xff]  ;;  %v2704_v28 = vld [vmem:[%s6374_s8 + $0x1068] sm:$0xff] }
 0x314   : > { %3397 = vmatmul.mubr.f32.vlgmr.msra.gmra.mrb[12].mxu1 %v7453_v0  ;;  %5110 = vmatprep.subr.bf16.mxu0 %v5109_v55  ;;  %v2626_v55 = vld [vmem:[%s6374_s8 + $0xdf8] sm:$0xff] }
 0x315   : > { %3402 = vmatprep.mubr.f32.mxu1 %v7464_v31  ;;  %5280 = vmatpush1.bf16.msra.mxu1 %v5279_v60  ;;  %v5125_v60 = vpack.c.bf16 %v2882_v47, %v2876_v34  ;;  %v5297_v5 = vpack.c.bf16 %v2632_v58, %v2626_v55  ;;  %v2911_v34 = vld [vmem:[%s6374_s8 + $0x16e0] sm:$0xff]  ;;  %v2917_v47 = vld [vmem:[%s6374_s8 + $0x1710] sm:$0xff] }
 0x316   : > { %5282 = vmatprep.subr.bf16.mxu1 %v5281_v1  ;;  %v5295_v1 = vpack.c.bf16 %v2619_v52, %v2613_v22  ;;  %v2924_v22 = vld [vmem:[%s6374_s8 + $0x1748] sm:$0xff]  ;;  %v2930_v52 = vld [vmem:[%s6374_s8 + $0x1778] sm:$0xff]  ;;  %v2661_v58 = vld [vmem:[%s6374_s8 + $0xf10] sm:$0xff]  ;;  %v5139_v63 = vpack.c.bf16 %v2917_v47, %v2911_v34 }
 0x317   : > { %5112 = vmatpush1.bf16.msra.mxu0 %v5111_v4  ;;  %v2631_v4 = vld [vmem:[%s6374_s8 + $0xe20] sm:$0xff]  ;;  %v2722_v47 = vld [vmem:[%s6374_s8 + $0x10f8] sm:$0xff] }
 0x318   : > { %3403 = vmatmul.mubr.f32.gmra.mrb[14].mxu1 %v7469_v6  ;;  %5114 = vmatprep.subr.bf16.mxu0 %v5113_v50  ;;  %v2638_v50 = vld [vmem:[%s6374_s8 + $0xe58] sm:$0xff]  ;;  %v2715_v34 = vld [vmem:[%s6374_s8 + $0x10c0] sm:$0xff] }
 0x319   : > { %5284 = vmatpush1.bf16.msra.mxu1 %v5283_v39  ;;  %3473 = vmatprep.mubr.f32.mxu1 %v7475_v14  ;;  %v5129_v39 = vpack.c.bf16 %v2894_v2, %v2888_v54  ;;  %v5301_v32 = vpack.c.bf16 %v2644_v7, %v2638_v50  ;;  %v2923_v54 = vld [vmem:[%s6374_s8 + $0x1740] sm:$0xff]  ;;  %v2929_v2 = vld [vmem:[%s6374_s8 + $0x1770] sm:$0xff] }
 0x31a   : > { %5286 = vmatprep.subr.bf16.mxu1 %v5285_v19  ;;  %v5299_v19 = vpack.c.bf16 %v2631_v4, %v2625_v3  ;;  %v2936_v3 = vld [vmem:[%s6374_s8 + $0x17a8] sm:$0xff]  ;;  %v2942_v4 = vld [vmem:[%s6374_s8 + $0x17d8] sm:$0xff]  ;;  %v2673_v7 = vld [vmem:[%s6374_s8 + $0xf70] sm:$0xff]  ;;  %v5143_v20 = vpack.c.bf16 %v2929_v2, %v2923_v54 }
 0x31b   : > { %5116 = vmatpush1.bf16.msra.mxu0 %v5115_v51  ;;  %v2643_v51 = vld [vmem:[%s6374_s8 + $0xe80] sm:$0xff]  ;;  %v2746_v2 = vld [vmem:[%s6374_s8 + $0x11b8] sm:$0xff] }
 0x31c   : > { %5118 = vmatprep.subr.bf16.mxu0 %v5117_v24  ;;  %v2650_v24 = vld [vmem:[%s6374_s8 + $0xeb8] sm:$0xff]  ;;  %v2739_v54 = vld [vmem:[%s6374_s8 + $0x1180] sm:$0xff] }
 0x31d   : > { %5288 = vmatpush1.bf16.msra.mxu1 %v5287_v26  ;;  %v5133_v26 = vpack.c.bf16 %v2906_v21, %v2900_v30  ;;  %v5305_v27 = vpack.c.bf16 %v2656_v43, %v2650_v24  ;;  %v2935_v30 = vld [vmem:[%s6374_s8 + $0x17a0] sm:$0xff]  ;;  %v2941_v21 = vld [vmem:[%s6374_s8 + $0x17d0] sm:$0xff] }
 0x31e   : > { %5290 = vmatprep.subr.bf16.mxu1 %v5289_v17  ;;  %v5303_v17 = vpack.c.bf16 %v2643_v51, %v2637_v23  ;;  %v2184_v23 = vld [vmem:[%s6374_s8 + $0x28] sm:$0xff]  ;;  %v2190_v51 = vld [vmem:[%s6374_s8 + $0x58] sm:$0xff]  ;;  %v2685_v43 = vld [vmem:[%s6374_s8 + $0xfd0] sm:$0xff]  ;;  %v5147_v29 = vpack.c.bf16 %v2941_v21, %v2935_v30 }
 0x31f   : > { %5120 = vmatpush1.bf16.msra.mxu0 %v5119_v13  ;;  %v2655_v13 = vld [vmem:[%s6374_s8 + $0xee0] sm:$0xff]  ;;  %v2770_v21 = vld [vmem:[%s6374_s8 + $0x1278] sm:$0xff] }
 0x320   : > { %5122 = vmatprep.subr.bf16.mxu0 %v5121_v12  ;;  %v2662_v12 = vld [vmem:[%s6374_s8 + $0xf18] sm:$0xff]  ;;  %v2763_v30 = vld [vmem:[%s6374_s8 + $0x1240] sm:$0xff] }
 0x321   : > { %5292 = vmatpush1.bf16.msra.mxu1 %v5291_v46  ;;  %v5137_v46 = vpack.c.bf16 %v2918_v36, %v2912_v33  ;;  %v5309_v55 = vpack.c.bf16 %v2668_v44, %v2662_v12  ;;  %v2716_v12 = vld [vmem:[%s6374_s8 + $0x10c8] sm:$0xff] }
 0x322   : > { %5294 = vmatprep.subr.bf16.mxu1 %v5293_v49  ;;  %v5307_v49 = vpack.c.bf16 %v2655_v13, %v2649_v9  ;;  %v2703_v9 = vld [vmem:[%s6374_s8 + $0x1060] sm:$0xff]  ;;  %v2710_v13 = vld [vmem:[%s6374_s8 + $0x1098] sm:$0xff] }
 0x323   : > { %5124 = vmatpush1.bf16.msra.mxu0 %v5123_v59  ;;  %v2667_v59 = vld [vmem:[%s6374_s8 + $0xf40] sm:$0xff] }
 0x324   : > { %5126 = vmatprep.subr.bf16.mxu0 %v5125_v60  ;;  %v2674_v60 = vld [vmem:[%s6374_s8 + $0xf78] sm:$0xff] }
 0x325   : > { %5296 = vmatpush1.bf16.msra.mxu1 %v5295_v1  ;;  %v5141_v1 = vpack.c.bf16 %v2930_v52, %v2924_v22  ;;  %v5313_v50 = vpack.c.bf16 %v2680_v16, %v2674_v60  ;;  %v2740_v60 = vld [vmem:[%s6374_s8 + $0x1188] sm:$0xff] }
 0x326   : > { %5298 = vmatprep.subr.bf16.mxu1 %v5297_v5  ;;  %v5311_v5 = vpack.c.bf16 %v2667_v59, %v2661_v58  ;;  %v2727_v58 = vld [vmem:[%s6374_s8 + $0x1120] sm:$0xff]  ;;  %v2734_v59 = vld [vmem:[%s6374_s8 + $0x1158] sm:$0xff] }
 0x327   : > { %5128 = vmatpush1.bf16.msra.mxu0 %v5127_v10  ;;  %v2679_v10 = vld [vmem:[%s6374_s8 + $0xfa0] sm:$0xff] }
 0x328   : > { %5130 = vmatprep.subr.bf16.mxu0 %v5129_v39  ;;  %v2686_v39 = vld [vmem:[%s6374_s8 + $0xfd8] sm:$0xff] }
 0x329   : > { %5300 = vmatpush1.bf16.msra.mxu1 %v5299_v19  ;;  %v5145_v19 = vpack.c.bf16 %v2942_v4, %v2936_v3  ;;  %v5317_v24 = vpack.c.bf16 %v2692_v38, %v2686_v39  ;;  %v2764_v39 = vld [vmem:[%s6374_s8 + $0x1248] sm:$0xff] }
 0x32a   : > { %5302 = vmatprep.subr.bf16.mxu1 %v5301_v32  ;;  %v5315_v32 = vpack.c.bf16 %v2679_v10, %v2673_v7  ;;  %v2751_v7 = vld [vmem:[%s6374_s8 + $0x11e0] sm:$0xff]  ;;  %v2758_v10 = vld [vmem:[%s6374_s8 + $0x1218] sm:$0xff] }
 0x32b   : > { %5132 = vmatpush1.bf16.msra.mxu0 %v5131_v48  ;;  %v2691_v48 = vld [vmem:[%s6374_s8 + $0x1000] sm:$0xff] }
 0x32c   : > { %5134 = vmatprep.subr.bf16.mxu0 %v5133_v26  ;;  %v2698_v26 = vld [vmem:[%s6374_s8 + $0x1038] sm:$0xff]  ;;  %v5319_v33 = vpack.c.bf16 %v2691_v48, %v2685_v43  ;;  %v2775_v43 = vld [vmem:[%s6374_s8 + $0x12a0] sm:$0xff] }
 0x32d   : > { %5304 = vmatpush1.bf16.msra.mxu1 %v5303_v17  ;;  %v5405_v17 = vpack.c.bf16 %v2190_v51, %v2184_v23  ;;  %v5321_v36 = vpack.c.bf16 %v2704_v28, %v2698_v26  ;;  %v2782_v48 = vld [vmem:[%s6374_s8 + $0x12d8] sm:$0xff]  ;;  %v2788_v26 = vld [vmem:[%s6374_s8 + $0x1308] sm:$0xff] }
 0x32e   : > { %5306 = vmatprep.subr.bf16.mxu1 %v5305_v27  ;;  %v2697_v27 = vld [vmem:[%s6374_s8 + $0x1030] sm:$0xff] }
 0x32f   : > { %5136 = vmatpush1.bf16.msra.mxu0 %v5135_v45  ;;  %v5323_v44 = vpack.c.bf16 %v2703_v9, %v2697_v27  ;;  %v5325_v45 = vpack.c.bf16 %v2716_v12, %v2710_v13  ;;  %v2800_v27 = vld [vmem:[%s6374_s8 + $0x1368] sm:$0xff]  ;;  %v2793_v12 = vld [vmem:[%s6374_s8 + $0x1330] sm:$0xff] }
 0x330   : > { %5138 = vmatprep.subr.bf16.mxu0 %v5137_v46  ;;  %v2709_v46 = vld [vmem:[%s6374_s8 + $0x1090] sm:$0xff] }
 0x331   : > { %5308 = vmatpush1.bf16.msra.mxu1 %v5307_v49  ;;  %v2728_v49 = vld [vmem:[%s6374_s8 + $0x1128] sm:$0xff]  ;;  %v5327_v22 = vpack.c.bf16 %v2715_v34, %v2709_v46 }
 0x332   : > { %5310 = vmatprep.subr.bf16.mxu1 %v5309_v55  ;;  %v5329_v52 = vpack.c.bf16 %v2728_v49, %v2722_v47  ;;  %v2721_v55 = vld [vmem:[%s6374_s8 + $0x10f0] sm:$0xff]  ;;  %v2812_v46 = vld [vmem:[%s6374_s8 + $0x13c8] sm:$0xff] }
 0x333   : > { %5140 = vmatpush1.bf16.msra.mxu0 %v5139_v63  ;;  %v5331_v16 = vpack.c.bf16 %v2727_v58, %v2721_v55  ;;  %v5333_v63 = vpack.c.bf16 %v2740_v60, %v2734_v59  ;;  %v2805_v49 = vld [vmem:[%s6374_s8 + $0x1390] sm:$0xff]  ;;  %v2824_v55 = vld [vmem:[%s6374_s8 + $0x1428] sm:$0xff]  ;;  %v1161_v58 = vsub.s32 6, %v7095_v57  ;;  %v1165_v60 = vsub.s32 7, %v7095_v57 }
 0x334   : > { %5142 = vmatprep.subr.bf16.mxu0 %v5141_v1  ;;  %v2733_v1 = vld [vmem:[%s6374_s8 + $0x1150] sm:$0xff] }
 0x335   : > { %5312 = vmatpush1.bf16.msra.mxu1 %v5311_v5  ;;  %v2752_v5 = vld [vmem:[%s6374_s8 + $0x11e8] sm:$0xff]  ;;  %v5335_v3 = vpack.c.bf16 %v2739_v54, %v2733_v1  ;;  %v2823_v1 = vld [vmem:[%s6374_s8 + $0x1420] sm:$0xff]  ;;  %v2830_v54 = vld [vmem:[%s6374_s8 + $0x1458] sm:$0xff] }
 0x336   : > { %5314 = vmatprep.subr.bf16.mxu1 %v5313_v50  ;;  %v5337_v4 = vpack.c.bf16 %v2752_v5, %v2746_v2  ;;  %v2745_v50 = vld [vmem:[%s6374_s8 + $0x11b0] sm:$0xff]  ;;  %v2836_v2 = vld [vmem:[%s6374_s8 + $0x1488] sm:$0xff] }
 0x337   : > { %5144 = vmatpush1.bf16.msra.mxu0 %v5143_v20  ;;  %v5339_v38 = vpack.c.bf16 %v2751_v7, %v2745_v50  ;;  %v5341_v20 = vpack.c.bf16 %v2764_v39, %v2758_v10  ;;  %v5895_v5 = vld [vmem:[%s6372_s24] sm:$0xff]  ;;  %v5365_v7 = vpack.c.bf16 %v2836_v2, %v2830_v54  ;;  %v2835_v39 = vld [vmem:[%s6374_s8 + $0x1480] sm:$0xff] }
 0x338   : > { %5146 = vmatprep.subr.bf16.mxu0 %v5145_v19  ;;  %v2757_v19 = vld [vmem:[%s6374_s8 + $0x1210] sm:$0xff]  ;;  %v2883_v54 = vld [vmem:[%s6374_s8 + $0x1600] sm:$0xff] }
 0x339   : > { %5316 = vmatpush1.bf16.msra.mxu1 %v5315_v32  ;;  %v2776_v32 = vld [vmem:[%s6374_s8 + $0x12a8] sm:$0xff]  ;;  %v5343_v23 = vpack.c.bf16 %v2763_v30, %v2757_v19  ;;  %v2829_v10 = vld [vmem:[%s6374_s8 + $0x1450] sm:$0xff]  ;;  %v2183_v2 = vld [vmem:[%s6374_s8 + $0x20] sm:$0xff] }
 0x33a   : > { %5318 = vmatprep.subr.bf16.mxu1 %v5317_v24  ;;  %v5345_v51 = vpack.c.bf16 %v2776_v32, %v2770_v21  ;;  %v2769_v24 = vld [vmem:[%s6374_s8 + $0x1270] sm:$0xff]  ;;  %v2848_v19 = vld [vmem:[%s6374_s8 + $0x14e8] sm:$0xff] }
 0x33b   : > { %5148 = vmatpush1.bf16.msra.mxu0 %v5147_v29  ;;  %v5347_v28 = vpack.c.bf16 %v2775_v43, %v2769_v24  ;;  %v5349_v29 = vpack.c.bf16 %v2788_v26, %v2782_v48  ;;  %v2841_v43 = vld [vmem:[%s6374_s8 + $0x14b0] sm:$0xff]  ;;  %v2847_v48 = vld [vmem:[%s6374_s8 + $0x14e0] sm:$0xff] }
 0x33c   : > { %5406 = vmatprep.subr.bf16.mxu0 %v5405_v17  ;;  %v2781_v17 = vld [vmem:[%s6374_s8 + $0x12d0] sm:$0xff] }
 0x33d   : > { %5320 = vmatpush1.bf16.msra.mxu1 %v5319_v33  ;;  %v2787_v33 = vld [vmem:[%s6374_s8 + $0x1300] sm:$0xff] }
 0x33e   : > { %5322 = vmatprep.subr.bf16.mxu1 %v5321_v36  ;;  %v2794_v36 = vld [vmem:[%s6374_s8 + $0x1338] sm:$0xff]  ;;  %v5351_v9 = vpack.c.bf16 %v2787_v33, %v2781_v17  ;;  %v2860_v17 = vld [vmem:[%s6374_s8 + $0x1548] sm:$0xff] }
 0x33f   : > { %v5353_v13 = vpack.c.bf16 %v2800_v27, %v2794_v36 }
 0x341   : > { %5324 = vmatpush1.bf16.msra.mxu1 %v5323_v44  ;;  %v2799_v44 = vld [vmem:[%s6374_s8 + $0x1360] sm:$0xff] }
 0x342   : > { %5326 = vmatprep.subr.bf16.mxu1 %v5325_v45  ;;  %v2806_v45 = vld [vmem:[%s6374_s8 + $0x1398] sm:$0xff]  ;;  %v5355_v34 = vpack.c.bf16 %v2799_v44, %v2793_v12  ;;  %v2853_v44 = vld [vmem:[%s6374_s8 + $0x1510] sm:$0xff] }
 0x343   : > { %v5357_v47 = vpack.c.bf16 %v2812_v46, %v2806_v45  ;;  %v2859_v45 = vld [vmem:[%s6374_s8 + $0x1540] sm:$0xff] }
 0x345   : > { %5328 = vmatpush1.bf16.msra.mxu1 %v5327_v22  ;;  %v2811_v22 = vld [vmem:[%s6374_s8 + $0x13c0] sm:$0xff] }
 0x346   : > { %5330 = vmatprep.subr.bf16.mxu1 %v5329_v52  ;;  %v2818_v52 = vld [vmem:[%s6374_s8 + $0x13f8] sm:$0xff]  ;;  %v5359_v59 = vpack.c.bf16 %v2811_v22, %v2805_v49  ;;  %v5375_v49 = vpack.c.bf16 %v2859_v45, %v2853_v44  ;;  %v2908_v44 = vld [vmem:[%s6374_s8 + $0x16c8] sm:$0xff] }
 0x347   : > { %v2208_v45 = vld [vmem:[%s6374_s8 + $0xe8] sm:$0xff] }
 0x349   : > { %5332 = vmatpush1.bf16.msra.mxu1 %v5331_v16  ;;  %v5361_v16 = vpack.c.bf16 %v2824_v55, %v2818_v52  ;;  %v2865_v52 = vld [vmem:[%s6374_s8 + $0x1570] sm:$0xff]  ;;  %v2871_v55 = vld [vmem:[%s6374_s8 + $0x15a0] sm:$0xff] }
 0x34a   : > { %5334 = vmatprep.subr.bf16.mxu1 %v5333_v63  ;;  %v2817_v63 = vld [vmem:[%s6374_s8 + $0x13f0] sm:$0xff] }
 0x34b   : > { %v5363_v50 = vpack.c.bf16 %v2823_v1, %v2817_v63  ;;  %v2877_v1 = vld [vmem:[%s6374_s8 + $0x15d0] sm:$0xff] }
 0x34d   : > { %5336 = vmatpush1.bf16.msra.mxu1 %v5335_v3  ;;  %v1162_v3 = vrot.slane %v5895_v5, %v1161_v58  ;;  %v2878_v58 = vld [vmem:[%s6374_s8 + $0x15d8] sm:$0xff] }
 0x34e   : > { %5338 = vmatprep.subr.bf16.mxu1 %v5337_v4  ;;  %v1166_v4 = vrot.slane %v5895_v5, %v1165_v60  ;;  %v5379_v60 = vpack.c.bf16 %v2871_v55, %v2865_v52  ;;  %v2907_v52 = vld [vmem:[%s6374_s8 + $0x16c0] sm:$0xff] }
 0x34f   : > { %v2207_v55 = vld [vmem:[%s6374_s8 + $0xe0] sm:$0xff] }
 0x351   : > { %5340 = vmatpush1.bf16.msra.mxu1 %v5339_v38 }
 0x352   : > { %5342 = vmatprep.subr.bf16.mxu1 %v5341_v20  ;;  %v2842_v20 = vld [vmem:[%s6374_s8 + $0x14b8] sm:$0xff] }
 0x353   : > { %v5369_v24 = vpack.c.bf16 %v2848_v19, %v2842_v20  ;;  %v2202_v20 = vld [vmem:[%s6374_s8 + $0xb8] sm:$0xff] }
 0x354   : > { %3474 = vmatmul.mubr.f32.vlgmr.msra.gmra.mrb[12].mxu1 %v7618_v25 }
 0x355   : > { %3479 = vmatprep.mubr.f32.mxu1 %v7623_v42  ;;  %5344 = vmatpush1.bf16.msra.mxu1 %v5343_v23  ;;  %v5367_v23 = vpack.c.bf16 %v2835_v39, %v2829_v10 }
 0x356   : > { %5346 = vmatprep.subr.bf16.mxu1 %v5345_v51 }
 0x358   : > { %3480 = vmatmul.mubr.f32.gmra.mrb[14].mxu1 %v7633_v62 }
 0x359   : > { %5348 = vmatpush1.bf16.msra.mxu1 %v5347_v28 }
 0x35a   : > { %5350 = vmatprep.subr.bf16.mxu1 %v5349_v29  ;;  %v2854_v29 = vld [vmem:[%s6374_s8 + $0x1518] sm:$0xff] }
 0x35b   : > { %v5373_v12 = vpack.c.bf16 %v2860_v17, %v2854_v29 }
 0x35d   : > { %5352 = vmatpush1.bf16.msra.mxu1 %v5351_v9  ;;  %v5371_v9 = vpack.c.bf16 %v2847_v48, %v2841_v43  ;;  %v2889_v48 = vld [vmem:[%s6374_s8 + $0x1630] sm:$0xff] }
 0x35e   : > { %5354 = vmatprep.subr.bf16.mxu1 %v5353_v13 }
 0x361   : > { %5356 = vmatpush1.bf16.msra.mxu1 %v5355_v34  ;;  %v2866_v34 = vld [vmem:[%s6374_s8 + $0x1578] sm:$0xff] }
 0x362   : > { %5358 = vmatprep.subr.bf16.mxu1 %v5357_v47  ;;  %v2872_v47 = vld [vmem:[%s6374_s8 + $0x15a8] sm:$0xff] }
 0x363   : > { %v5377_v22 = vpack.c.bf16 %v2872_v47, %v2866_v34 }
 0x365   : > { %5360 = vmatpush1.bf16.msra.mxu1 %v5359_v59  ;;  %v2884_v59 = vld [vmem:[%s6374_s8 + $0x1608] sm:$0xff] }
 0x366   : > { %5362 = vmatprep.subr.bf16.mxu1 %v5361_v16  ;;  %v5381_v63 = vpack.c.bf16 %v2884_v59, %v2878_v58 }
 0x367   : > { %v2088_v38 = vpop.f32.mrb[8].mxu1 }
 0x368   : > { %v5677_v30 = vadd.f32 %v2088_v38, %v1162_v3  ;;  %v2090_v21 = vpop.f32.mrb[9].mxu1  ;;  %v2196_v38 = vld [vmem:[%s6374_s8 + $0x88] sm:$0xff] }
 0x369   : > { %v5678_v32 = vadd.f32 %v2090_v21, %v1166_v4  ;;  %5364 = vmatpush1.bf16.msra.mxu1 %v5363_v50  ;;  %v2890_v50 = vld [vmem:[%s6374_s8 + $0x1638] sm:$0xff]  ;;  %v5383_v21 = vpack.c.bf16 %v2883_v54, %v2877_v1  ;;  %v5409_v17 = vpack.c.bf16 %v2202_v20, %v2196_v38  ;;  %v2220_v1 = vld [vmem:[%s6374_s8 + $0x148] sm:$0xff] }
 0x36a   : > { %v2121_v51 = vmul.f32 0.70710677, %v5677_v30  ;;  %5366 = vmatprep.subr.bf16.mxu1 %v5365_v7  ;;  %v2896_v7 = vld [vmem:[%s6374_s8 + $0x1668] sm:$0xff]  ;;  %v2105_v19 = vmul.f32 0.5, %v5677_v30  ;;  %v2195_v30 = vld [vmem:[%s6374_s8 + $0x80] sm:$0xff]  ;;  %v2226_v54 = vld [vmem:[%s6374_s8 + $0x178] sm:$0xff] }
 0x36b   : > { %v2122_v26 = vmul.f32 0.70710677, %v5678_v32  ;;  %v2094_v28 = vpop.f32.mrb[10].mxu1  ;;  %v2106_v10 = vmul.f32 0.5, %v5678_v32  ;;  %v5385_v43 = vpack.c.bf16 %v2896_v7, %v2890_v50  ;;  %v2895_v32 = vld [vmem:[%s6374_s8 + $0x1660] sm:$0xff]  ;;  %v2926_v38 = vld [vmem:[%s6374_s8 + $0x1758] sm:$0xff] }
 0x36c   : > { %5863 = verf.f32 %v2121_v51  ;;  %v7812_v33 = vadd.f32 %v2094_v28, %v1162_v3  ;;  %v2096_v36 = vpop.f32.mrb[11].mxu1  ;;  %v5387_v47 = vpack.c.bf16 %v2895_v32, %v2889_v48  ;;  %v2919_v50 = vld [vmem:[%s6374_s8 + $0x1720] sm:$0xff]  ;;  %v2932_v20 = vld [vmem:[%s6374_s8 + $0x1788] sm:$0xff] }
 0x36d   : > { %5865 = verf.f32 %v2122_v26  ;;  %v5680_v27 = vadd.f32 %v2096_v36, %v1166_v4  ;;  %5368 = vmatpush1.bf16.msra.mxu1 %v5367_v23  ;;  %v2189_v4 = vld [vmem:[%s6374_s8 + $0x50] sm:$0xff]  ;;  %v2219_v7 = vld [vmem:[%s6374_s8 + $0x140] sm:$0xff] }
 0x36e   : > { %v2129_v13 = vmul.f32 0.70710677, %v7812_v33  ;;  %5370 = vmatprep.subr.bf16.mxu1 %v5369_v24  ;;  %v5407_v24 = vpack.c.bf16 %v2189_v4, %v2183_v2  ;;  %v2201_v36 = vld [vmem:[%s6374_s8 + $0xb0] sm:$0xff]  ;;  %v2113_v34 = vmul.f32 0.5, %v7812_v33  ;;  %v2931_v48 = vld [vmem:[%s6374_s8 + $0x1780] sm:$0xff] }
 0x36f   : > { %v2130_v46 = vmul.f32 0.70710677, %v5680_v27  ;;  %v2913_v4 = vld [vmem:[%s6374_s8 + $0x16f0] sm:$0xff]  ;;  %v2231_v32 = vld [vmem:[%s6374_s8 + $0x1a0] sm:$0xff] }
 0x370   : > { %5867 = verf.f32 %v2129_v13  ;;  %v2114_v13 = vmul.f32 0.5, %v5680_v27 }
 0x371   : > { %5869 = verf.f32 %v2130_v46  ;;  %5372 = vmatpush1.bf16.msra.mxu1 %v5371_v9  ;;  %v2902_v9 = vld [vmem:[%s6374_s8 + $0x1698] sm:$0xff] }
 0x372   : > { %5374 = vmatprep.subr.bf16.mxu1 %v5373_v12  ;;  %v2214_v46 = vld [vmem:[%s6374_s8 + $0x118] sm:$0xff]  ;;  %v5389_v33 = vpack.c.bf16 %v2908_v44, %v2902_v9 }
 0x373   : > { %v5413_v59 = vpack.c.bf16 %v2214_v46, %v2208_v45  ;;  %v2250_v9 = vld [vmem:[%s6374_s8 + $0x238] sm:$0xff]  ;;  %v2937_v45 = vld [vmem:[%s6374_s8 + $0x17b0] sm:$0xff]  ;;  %v2943_v46 = vld [vmem:[%s6374_s8 + $0x17e0] sm:$0xff] }
 0x375   : > { %5376 = vmatpush1.bf16.msra.mxu1 %v5375_v49  ;;  %v5411_v49 = vpack.c.bf16 %v2201_v36, %v2195_v30  ;;  %v2944_v30 = vld [vmem:[%s6374_s8 + $0x17e8] sm:$0xff] }
 0x376   : > { %v5864_v16 = vpop.eup %5863  ;;  %5378 = vmatprep.subr.bf16.mxu1 %v5377_v22  ;;  %v2901_v22 = vld [vmem:[%s6374_s8 + $0x1690] sm:$0xff]  ;;  %v2244_v36 = vld [vmem:[%s6374_s8 + $0x208] sm:$0xff] }
 0x377   : > { %v5866_v5 = vpop.eup %5865  ;;  %v2153_v3 = vadd.f32 1.0, %v5864_v16  ;;  %v2914_v16 = vld [vmem:[%s6374_s8 + $0x16f8] sm:$0xff]  ;;  %v5391_v2 = vpack.c.bf16 %v2907_v52, %v2901_v22  ;;  %v2256_v22 = vld [vmem:[%s6374_s8 + $0x268] sm:$0xff] }
 0x378   : > { %v2154_v39 = vadd.f32 1.0, %v5866_v5  ;;  %v2262_v52 = vld [vmem:[%s6374_s8 + $0x298] sm:$0xff] }
 0x379   : > { %5380 = vmatpush1.bf16.msra.mxu1 %v5379_v60  ;;  %v7835_v28 = vmul.f32 %v2153_v3, %v2105_v19  ;;  %v2213_v60 = vld [vmem:[%s6374_s8 + $0x110] sm:$0xff]  ;;  %v2232_v19 = vld [vmem:[%s6374_s8 + $0x1a8] sm:$0xff] }
 0x37a   : > { %v5868_v23 = vpop.eup %5867  ;;  %v7831_v51 = vmul.f32 %v2154_v39, %v2106_v10  ;;  %5382 = vmatprep.subr.bf16.mxu1 %v5381_v63  ;;  %v2920_v63 = vld [vmem:[%s6374_s8 + $0x1728] sm:$0xff]  ;;  %v5415_v5 = vpack.c.bf16 %v2213_v60, %v2207_v55  ;;  %v5417_v10 = vpack.c.bf16 %v2226_v54, %v2220_v1  ;;  %v2225_v39 = vld [vmem:[%s6374_s8 + $0x170] sm:$0xff]  ;;  %v5403_v55 = vpack.c.bf16 %v2943_v46, %v2937_v45  ;;  %v2255_v60 = vld [vmem:[%s6374_s8 + $0x260] sm:$0xff] }
 0x37b   : > { %v5870_v26 = vpop.eup %5869  ;;  %v2161_v29 = vadd.f32 1.0, %v5868_v23  ;;  %v5393_v3 = vpack.c.bf16 %v2920_v63, %v2914_v16  ;;  %v5419_v23 = vpack.c.bf16 %v2225_v39, %v2219_v7  ;;  %v2261_v16 = vld [vmem:[%s6374_s8 + $0x290] sm:$0xff]  ;;  %v2268_v63 = vld [vmem:[%s6374_s8 + $0x2c8] sm:$0xff]  ;;  %v2274_v1 = vld [vmem:[%s6374_s8 + $0x2f8] sm:$0xff] }
 0x37c   : > { %v2162_v12 = vadd.f32 1.0, %v5870_v26  ;;  %3242 = vmatprep.mubr.f32.mxu0 %v7831_v51  ;;  %3550 = vmatprep.mubr.f32.mxu1 %v7831_v51  ;;  %v5431_v54 = vpack.c.bf16 %v2261_v16, %v2255_v60  ;;  %v2279_v39 = vld [vmem:[%s6374_s8 + $0x320] sm:$0xff]  ;;  %v2328_v45 = vld [vmem:[%s6374_s8 + $0x4a8] sm:$0xff]  ;;  %v2334_v46 = vld [vmem:[%s6374_s8 + $0x4d8] sm:$0xff] }
 0x37d   : > { %3243 = vmatmul.mubr.f32.vlgmr.msra.gmra.mrb[8].mxu0 %v7835_v28  ;;  %5384 = vmatpush1.bf16.msra.mxu1 %v5383_v21  ;;  %v7852_v58 = vmul.f32 %v2161_v29, %v2113_v34  ;;  %v5395_v21 = vpack.c.bf16 %v2919_v50, %v2913_v4  ;;  %v2237_v29 = vld [vmem:[%s6374_s8 + $0x1d0] sm:$0xff]  ;;  %v5425_v34 = vpack.c.bf16 %v2250_v9, %v2244_v36  ;;  %v2280_v4 = vld [vmem:[%s6374_s8 + $0x328] sm:$0xff]  ;;  %v2286_v50 = vld [vmem:[%s6374_s8 + $0x358] sm:$0xff] }
 0x37e   : > { %5408 = vmatpush1.bf16.msra.mxu0 %v5407_v24  ;;  %v7847_v27 = vmul.f32 %v2162_v12, %v2114_v13  ;;  %5386 = vmatprep.subr.bf16.mxu1 %v5385_v43  ;;  %v5397_v24 = vpack.c.bf16 %v2932_v20, %v2926_v38  ;;  %v2925_v43 = vld [vmem:[%s6374_s8 + $0x1750] sm:$0xff]  ;;  %v5423_v12 = vpack.c.bf16 %v2237_v29, %v2231_v32  ;;  %v2292_v20 = vld [vmem:[%s6374_s8 + $0x388] sm:$0xff]  ;;  %v2303_v29 = vld [vmem:[%s6374_s8 + $0x3e0] sm:$0xff] }
 0x37f   : > { %5410 = vmatprep.subr.bf16.mxu0 %v5409_v17  ;;  %v2938_v17 = vld [vmem:[%s6374_s8 + $0x17b8] sm:$0xff]  ;;  %v5399_v13 = vpack.c.bf16 %v2931_v48, %v2925_v43  ;;  %v2285_v38 = vld [vmem:[%s6374_s8 + $0x350] sm:$0xff]  ;;  %v2304_v43 = vld [vmem:[%s6374_s8 + $0x3e8] sm:$0xff] }
 0x380   : > { %3248 = vmatprep.mubr.f32.mxu0 %v7847_v27  ;;  %v5401_v44 = vpack.c.bf16 %v2944_v30, %v2938_v17  ;;  %v2310_v48 = vld [vmem:[%s6374_s8 + $0x418] sm:$0xff]  ;;  %v2309_v17 = vld [vmem:[%s6374_s8 + $0x410] sm:$0xff]  ;;  %v2316_v30 = vld [vmem:[%s6374_s8 + $0x448] sm:$0xff] }
 0x381   : > { %3249 = vmatmul.mubr.f32.gmra.mrb[10].mxu0 %v7852_v58  ;;  %5388 = vmatpush1.bf16.msra.mxu1 %v5387_v47  ;;  %v2243_v47 = vld [vmem:[%s6374_s8 + $0x200] sm:$0xff]  ;;  %v2322_v36 = vld [vmem:[%s6374_s8 + $0x478] sm:$0xff]  ;;  %v5447_v9 = vpack.c.bf16 %v2309_v17, %v2303_v29  ;;  %v2345_v16 = vld [vmem:[%s6374_s8 + $0x530] sm:$0xff] }
 0x382   : > { %5412 = vmatpush1.bf16.msra.mxu0 %v5411_v49  ;;  %3627 = vmatprep.mubr.f32.mxu0 %v7147_v53  ;;  %v2238_v53 = vld [vmem:[%s6374_s8 + $0x1d8] sm:$0xff]  ;;  %v2249_v49 = vld [vmem:[%s6374_s8 + $0x230] sm:$0xff]  ;;  %v2339_v60 = vld [vmem:[%s6374_s8 + $0x500] sm:$0xff] }
 0x383   : > { %5390 = vmatprep.subr.bf16.mxu1 %v5389_v33  ;;  %5414 = vmatprep.subr.bf16.mxu0 %v5413_v59  ;;  %v5421_v26 = vpack.c.bf16 %v2238_v53, %v2232_v19  ;;  %v5427_v33 = vpack.c.bf16 %v2249_v49, %v2243_v47  ;;  %v5429_v59 = vpack.c.bf16 %v2262_v52, %v2256_v22  ;;  %v2298_v19 = vld [vmem:[%s6374_s8 + $0x3b8] sm:$0xff]  ;;  %v2327_v49 = vld [vmem:[%s6374_s8 + $0x4a0] sm:$0xff]  ;;  %v2333_v22 = vld [vmem:[%s6374_s8 + $0x4d0] sm:$0xff] }
 0x384   : > { %v5439_v53 = vpack.c.bf16 %v2285_v38, %v2279_v39  ;;  %v5453_v47 = vpack.c.bf16 %v2334_v46, %v2328_v45  ;;  %v2340_v52 = vld [vmem:[%s6374_s8 + $0x508] sm:$0xff]  ;;  %v2363_v39 = vld [vmem:[%s6374_s8 + $0x5c0] sm:$0xff]  ;;  %v2369_v38 = vld [vmem:[%s6374_s8 + $0x5f0] sm:$0xff] }
 0x385   : > { %5392 = vmatpush1.bf16.msra.mxu1 %v5391_v2  ;;  %v5433_v2 = vpack.c.bf16 %v2274_v1, %v2268_v63  ;;  %v2352_v63 = vld [vmem:[%s6374_s8 + $0x568] sm:$0xff]  ;;  %v2358_v1 = vld [vmem:[%s6374_s8 + $0x598] sm:$0xff]  ;;  %v2387_v29 = vld [vmem:[%s6374_s8 + $0x680] sm:$0xff] }
 0x386   : > { %5416 = vmatpush1.bf16.msra.mxu0 %v5415_v5  ;;  %5394 = vmatprep.subr.bf16.mxu1 %v5393_v3  ;;  %v2267_v5 = vld [vmem:[%s6374_s8 + $0x2c0] sm:$0xff]  ;;  %v2273_v3 = vld [vmem:[%s6374_s8 + $0x2f0] sm:$0xff]  ;;  %v2412_v45 = vld [vmem:[%s6374_s8 + $0x748] sm:$0xff] }
 0x387   : > { %5418 = vmatprep.subr.bf16.mxu0 %v5417_v10  ;;  %v5435_v7 = vpack.c.bf16 %v2273_v3, %v2267_v5  ;;  %v5437_v10 = vpack.c.bf16 %v2286_v50, %v2280_v4  ;;  %v2351_v5 = vld [vmem:[%s6374_s8 + $0x560] sm:$0xff]  ;;  %v2357_v3 = vld [vmem:[%s6374_s8 + $0x590] sm:$0xff]  ;;  %v2364_v4 = vld [vmem:[%s6374_s8 + $0x5c8] sm:$0xff] }
 0x388   : > { %v2370_v50 = vld [vmem:[%s6374_s8 + $0x5f8] sm:$0xff]  ;;  %v2393_v17 = vld [vmem:[%s6374_s8 + $0x6b0] sm:$0xff] }
 0x389   : > { %5396 = vmatpush1.bf16.msra.mxu1 %v5395_v21  ;;  %v5441_v21 = vpack.c.bf16 %v2298_v19, %v2292_v20  ;;  %v2376_v20 = vld [vmem:[%s6374_s8 + $0x628] sm:$0xff]  ;;  %v2382_v19 = vld [vmem:[%s6374_s8 + $0x658] sm:$0xff] }
 0x38a   : > { %5420 = vmatpush1.bf16.msra.mxu0 %v5419_v23  ;;  %5398 = vmatprep.subr.bf16.mxu1 %v5397_v24  ;;  %v2291_v23 = vld [vmem:[%s6374_s8 + $0x380] sm:$0xff]  ;;  %v2297_v24 = vld [vmem:[%s6374_s8 + $0x3b0] sm:$0xff]  ;;  %v2418_v46 = vld [vmem:[%s6374_s8 + $0x778] sm:$0xff] }
 0x38b   : > { %5422 = vmatprep.subr.bf16.mxu0 %v5421_v26  ;;  %v5443_v32 = vpack.c.bf16 %v2297_v24, %v2291_v23  ;;  %v5445_v26 = vpack.c.bf16 %v2310_v48, %v2304_v43  ;;  %v2375_v23 = vld [vmem:[%s6374_s8 + $0x620] sm:$0xff]  ;;  %v2381_v24 = vld [vmem:[%s6374_s8 + $0x650] sm:$0xff]  ;;  %v2388_v43 = vld [vmem:[%s6374_s8 + $0x688] sm:$0xff] }
 0x38c   : > { %v2394_v48 = vld [vmem:[%s6374_s8 + $0x6b8] sm:$0xff] }
 0x38d   : > { %5400 = vmatpush1.bf16.msra.mxu1 %v5399_v13  ;;  %v5449_v13 = vpack.c.bf16 %v2322_v36, %v2316_v30  ;;  %v2400_v30 = vld [vmem:[%s6374_s8 + $0x6e8] sm:$0xff]  ;;  %v2406_v36 = vld [vmem:[%s6374_s8 + $0x718] sm:$0xff] }
 0x38e   : > { %5424 = vmatpush1.bf16.msra.mxu0 %v5423_v12  ;;  %5402 = vmatprep.subr.bf16.mxu1 %v5401_v44  ;;  %v2315_v12 = vld [vmem:[%s6374_s8 + $0x440] sm:$0xff]  ;;  %v2321_v44 = vld [vmem:[%s6374_s8 + $0x470] sm:$0xff] }
 0x38f   : > { %5426 = vmatprep.subr.bf16.mxu0 %v5425_v34  ;;  %v5451_v34 = vpack.c.bf16 %v2321_v44, %v2315_v12  ;;  %v2399_v12 = vld [vmem:[%s6374_s8 + $0x6e0] sm:$0xff]  ;;  %v2405_v44 = vld [vmem:[%s6374_s8 + $0x710] sm:$0xff] }
 0x391   : > { %5404 = vmatpush1.bf16.msra.mxu1 %v5403_v55  ;;  %v2346_v55 = vld [vmem:[%s6374_s8 + $0x538] sm:$0xff] }
 0x392   : > { %5428 = vmatpush1.bf16.msra.mxu0 %v5427_v33  ;;  %v5455_v33 = vpack.c.bf16 %v2333_v22, %v2327_v49  ;;  %v2424_v49 = vld [vmem:[%s6374_s8 + $0x7a8] sm:$0xff]  ;;  %v2430_v22 = vld [vmem:[%s6374_s8 + $0x7d8] sm:$0xff] }
 0x393   : > { %5430 = vmatprep.subr.bf16.mxu0 %v5429_v59  ;;  %v5457_v59 = vpack.c.bf16 %v2346_v55, %v2340_v52  ;;  %v2423_v55 = vld [vmem:[%s6374_s8 + $0x7a0] sm:$0xff] }
 0x394   : > { %3551 = vmatmul.mubr.f32.vlgmr.msra.gmra.mrb[12].mxu1 %v7835_v28 }
 0x395   : > { %3556 = vmatprep.mubr.f32.mxu1 %v7847_v27 }
 0x396   : > { %5432 = vmatpush1.bf16.msra.mxu0 %v5431_v54  ;;  %v5459_v54 = vpack.c.bf16 %v2345_v16, %v2339_v60 }
 0x397   : > { %5434 = vmatprep.subr.bf16.mxu0 %v5433_v2  ;;  %v5461_v2 = vpack.c.bf16 %v2358_v1, %v2352_v63  ;;  %v2435_v63 = vld [vmem:[%s6374_s8 + $0x800] sm:$0xff]  ;;  %v2441_v1 = vld [vmem:[%s6374_s8 + $0x830] sm:$0xff] }
 0x398   : > { %3557 = vmatmul.mubr.f32.gmra.mrb[14].mxu1 %v7852_v58 }
 0x39a   : > { %5436 = vmatpush1.bf16.msra.mxu0 %v5435_v7  ;;  %v5463_v7 = vpack.c.bf16 %v2357_v3, %v2351_v5  ;;  %v5491_v5 = vpack.c.bf16 %v2441_v1, %v2435_v63 }
 0x39b   : > { %5438 = vmatprep.subr.bf16.mxu0 %v5437_v10  ;;  %v5465_v10 = vpack.c.bf16 %v2370_v50, %v2364_v4  ;;  %v2447_v4 = vld [vmem:[%s6374_s8 + $0x860] sm:$0xff]  ;;  %v2453_v50 = vld [vmem:[%s6374_s8 + $0x890] sm:$0xff] }
 0x39e   : > { %5440 = vmatpush1.bf16.msra.mxu0 %v5439_v53  ;;  %v5467_v53 = vpack.c.bf16 %v2369_v38, %v2363_v39  ;;  %v5495_v39 = vpack.c.bf16 %v2453_v50, %v2447_v4 }
 0x39f   : > { %5442 = vmatprep.subr.bf16.mxu0 %v5441_v21  ;;  %v5469_v21 = vpack.c.bf16 %v2382_v19, %v2376_v20  ;;  %v2459_v20 = vld [vmem:[%s6374_s8 + $0x8c0] sm:$0xff]  ;;  %v2465_v19 = vld [vmem:[%s6374_s8 + $0x8f0] sm:$0xff] }
 0x3a2   : > { %5444 = vmatpush1.bf16.msra.mxu0 %v5443_v32  ;;  %v5471_v32 = vpack.c.bf16 %v2381_v24, %v2375_v23  ;;  %v5499_v23 = vpack.c.bf16 %v2465_v19, %v2459_v20 }
 0x3a3   : > { %5446 = vmatprep.subr.bf16.mxu0 %v5445_v26  ;;  %v5473_v26 = vpack.c.bf16 %v2394_v48, %v2388_v43  ;;  %v2471_v43 = vld [vmem:[%s6374_s8 + $0x920] sm:$0xff]  ;;  %v2477_v48 = vld [vmem:[%s6374_s8 + $0x950] sm:$0xff] }
 0x3a6   : > { %5448 = vmatpush1.bf16.msra.mxu0 %v5447_v9  ;;  %v5475_v9 = vpack.c.bf16 %v2393_v17, %v2387_v29  ;;  %v5503_v29 = vpack.c.bf16 %v2477_v48, %v2471_v43 }
 0x3a7   : > { %5450 = vmatprep.subr.bf16.mxu0 %v5449_v13  ;;  %v5477_v13 = vpack.c.bf16 %v2406_v36, %v2400_v30  ;;  %v2483_v30 = vld [vmem:[%s6374_s8 + $0x980] sm:$0xff]  ;;  %v2489_v36 = vld [vmem:[%s6374_s8 + $0x9b0] sm:$0xff] }
 0x3aa   : > { %5452 = vmatpush1.bf16.msra.mxu0 %v5451_v34  ;;  %v2411_v34 = vld [vmem:[%s6374_s8 + $0x740] sm:$0xff] }
 0x3ab   : > { %5454 = vmatprep.subr.bf16.mxu0 %v5453_v47  ;;  %v2417_v47 = vld [vmem:[%s6374_s8 + $0x770] sm:$0xff] }
 0x3ac   : > { %v5483_v52 = vpack.c.bf16 %v2417_v47, %v2411_v34 }
 0x3ae   : > { %5456 = vmatpush1.bf16.msra.mxu0 %v5455_v33  ;;  %v2429_v33 = vld [vmem:[%s6374_s8 + $0x7d0] sm:$0xff] }
 0x3af   : > { %5458 = vmatprep.subr.bf16.mxu0 %v5457_v59  ;;  %v2442_v59 = vld [vmem:[%s6374_s8 + $0x838] sm:$0xff]  ;;  %v5487_v60 = vpack.c.bf16 %v2429_v33, %v2423_v55 }
 0x3b2   : > { %5460 = vmatpush1.bf16.msra.mxu0 %v5459_v54  ;;  %v2448_v54 = vld [vmem:[%s6374_s8 + $0x868] sm:$0xff] }
 0x3b3   : > { %5462 = vmatprep.subr.bf16.mxu0 %v5461_v2  ;;  %v2454_v2 = vld [vmem:[%s6374_s8 + $0x898] sm:$0xff] }
 0x3b4   : > { %v5493_v3 = vpack.c.bf16 %v2454_v2, %v2448_v54  ;;  %v2531_v54 = vld [vmem:[%s6374_s8 + $0xb00] sm:$0xff]  ;;  %v2537_v2 = vld [vmem:[%s6374_s8 + $0xb30] sm:$0xff] }
 0x3b5   : > { %v5523_v4 = vpack.c.bf16 %v2537_v2, %v2531_v54  ;;  %v2640_v54 = vld [vmem:[%s6374_s8 + $0xe68] sm:$0xff]  ;;  %v2646_v2 = vld [vmem:[%s6374_s8 + $0xe98] sm:$0xff] }
 0x3b6   : > { %5464 = vmatpush1.bf16.msra.mxu0 %v5463_v7  ;;  %v2460_v7 = vld [vmem:[%s6374_s8 + $0x8c8] sm:$0xff] }
 0x3b7   : > { %5466 = vmatprep.subr.bf16.mxu0 %v5465_v10  ;;  %v2466_v10 = vld [vmem:[%s6374_s8 + $0x8f8] sm:$0xff] }
 0x3b8   : > { %v5497_v38 = vpack.c.bf16 %v2466_v10, %v2460_v7  ;;  %v2543_v7 = vld [vmem:[%s6374_s8 + $0xb60] sm:$0xff]  ;;  %v2549_v10 = vld [vmem:[%s6374_s8 + $0xb90] sm:$0xff] }
 0x3b9   : > { %v5527_v20 = vpack.c.bf16 %v2549_v10, %v2543_v7  ;;  %v2652_v7 = vld [vmem:[%s6374_s8 + $0xec8] sm:$0xff]  ;;  %v2658_v10 = vld [vmem:[%s6374_s8 + $0xef8] sm:$0xff] }
 0x3ba   : > { %5468 = vmatpush1.bf16.msra.mxu0 %v5467_v53  ;;  %v2472_v53 = vld [vmem:[%s6374_s8 + $0x928] sm:$0xff] }
 0x3bb   : > { %5470 = vmatprep.subr.bf16.mxu0 %v5469_v21  ;;  %v2478_v21 = vld [vmem:[%s6374_s8 + $0x958] sm:$0xff] }
 0x3bc   : > { %v5501_v24 = vpack.c.bf16 %v2478_v21, %v2472_v53  ;;  %v2555_v53 = vld [vmem:[%s6374_s8 + $0xbc0] sm:$0xff]  ;;  %v2561_v21 = vld [vmem:[%s6374_s8 + $0xbf0] sm:$0xff] }
 0x3bd   : > { %3628 = vmatmul.mubr.f32.vlgmr.msra.gmra.mrb[12].mxu0 %v7149_v56  ;;  %v5479_v56 = vpack.c.bf16 %v2405_v44, %v2399_v12  ;;  %v5507_v12 = vpack.c.bf16 %v2489_v36, %v2483_v30  ;;  %v5531_v43 = vpack.c.bf16 %v2561_v21, %v2555_v53  ;;  %v2664_v53 = vld [vmem:[%s6374_s8 + $0xf28] sm:$0xff]  ;;  %v2670_v21 = vld [vmem:[%s6374_s8 + $0xf58] sm:$0xff] }
 0x3be   : > { %3633 = vmatprep.mubr.f32.mxu0 %v7162_v8  ;;  %5472 = vmatpush1.bf16.msra.mxu0 %v5471_v32  ;;  %v5481_v8 = vpack.c.bf16 %v2418_v46, %v2412_v45  ;;  %v2484_v32 = vld [vmem:[%s6374_s8 + $0x988] sm:$0xff]  ;;  %v2495_v45 = vld [vmem:[%s6374_s8 + $0x9e0] sm:$0xff]  ;;  %v2501_v46 = vld [vmem:[%s6374_s8 + $0xa10] sm:$0xff] }
 0x3bf   : > { %5474 = vmatprep.subr.bf16.mxu0 %v5473_v26  ;;  %v2490_v26 = vld [vmem:[%s6374_s8 + $0x9b8] sm:$0xff]  ;;  %v5511_v34 = vpack.c.bf16 %v2501_v46, %v2495_v45 }
 0x3c0   : > { %v5505_v17 = vpack.c.bf16 %v2490_v26, %v2484_v32  ;;  %v2567_v32 = vld [vmem:[%s6374_s8 + $0xc20] sm:$0xff]  ;;  %v2573_v26 = vld [vmem:[%s6374_s8 + $0xc50] sm:$0xff] }
 0x3c1   : > { %3634 = vmatmul.mubr.f32.gmra.mrb[14].mxu0 %v7164_v35  ;;  %v5485_v35 = vpack.c.bf16 %v2430_v22, %v2424_v49  ;;  %v2507_v49 = vld [vmem:[%s6374_s8 + $0xa40] sm:$0xff]  ;;  %v2513_v22 = vld [vmem:[%s6374_s8 + $0xa70] sm:$0xff]  ;;  %v5535_v30 = vpack.c.bf16 %v2573_v26, %v2567_v32  ;;  %v2676_v32 = vld [vmem:[%s6374_s8 + $0xf88] sm:$0xff] }
 0x3c2   : > { %5476 = vmatpush1.bf16.msra.mxu0 %v5475_v9  ;;  %3704 = vmatprep.mubr.f32.mxu0 %v7448_v40  ;;  %v2436_v40 = vld [vmem:[%s6374_s8 + $0x808] sm:$0xff]  ;;  %v5515_v55 = vpack.c.bf16 %v2513_v22, %v2507_v49  ;;  %v2603_v49 = vld [vmem:[%s6374_s8 + $0xd40] sm:$0xff]  ;;  %v2609_v22 = vld [vmem:[%s6374_s8 + $0xd70] sm:$0xff] }
 0x3c3   : > { %5478 = vmatprep.subr.bf16.mxu0 %v5477_v13  ;;  %v5489_v16 = vpack.c.bf16 %v2442_v59, %v2436_v40  ;;  %v2496_v9 = vld [vmem:[%s6374_s8 + $0x9e8] sm:$0xff]  ;;  %v2502_v13 = vld [vmem:[%s6374_s8 + $0xa18] sm:$0xff]  ;;  %v2519_v40 = vld [vmem:[%s6374_s8 + $0xaa0] sm:$0xff] }
 0x3c4   : > { %v5509_v44 = vpack.c.bf16 %v2502_v13, %v2496_v9  ;;  %v2525_v59 = vld [vmem:[%s6374_s8 + $0xad0] sm:$0xff]  ;;  %v2579_v9 = vld [vmem:[%s6374_s8 + $0xc80] sm:$0xff]  ;;  %v2682_v26 = vld [vmem:[%s6374_s8 + $0xfb8] sm:$0xff] }
 0x3c5   : > { %v5519_v63 = vpack.c.bf16 %v2525_v59, %v2519_v40  ;;  %v2585_v13 = vld [vmem:[%s6374_s8 + $0xcb0] sm:$0xff]  ;;  %v2634_v59 = vld [vmem:[%s6374_s8 + $0xe38] sm:$0xff] }
 0x3c6   : > { %5480 = vmatpush1.bf16.msra.mxu0 %v5479_v56  ;;  %v2508_v56 = vld [vmem:[%s6374_s8 + $0xa48] sm:$0xff]  ;;  %v5539_v45 = vpack.c.bf16 %v2585_v13, %v2579_v9  ;;  %v2621_v40 = vld [vmem:[%s6374_s8 + $0xdd0] sm:$0xff]  ;;  %v2694_v13 = vld [vmem:[%s6374_s8 + $0x1018] sm:$0xff] }
 0x3c7   : > { %5482 = vmatprep.subr.bf16.mxu0 %v5481_v8  ;;  %v2514_v8 = vld [vmem:[%s6374_s8 + $0xa78] sm:$0xff]  ;;  %v2688_v9 = vld [vmem:[%s6374_s8 + $0xfe8] sm:$0xff] }
 0x3c8   : > { %v5513_v47 = vpack.c.bf16 %v2514_v8, %v2508_v56  ;;  %v2591_v56 = vld [vmem:[%s6374_s8 + $0xce0] sm:$0xff]  ;;  %v2597_v8 = vld [vmem:[%s6374_s8 + $0xd10] sm:$0xff] }
 0x3ca   : > { %5484 = vmatpush1.bf16.msra.mxu0 %v5483_v52  ;;  %v2520_v52 = vld [vmem:[%s6374_s8 + $0xaa8] sm:$0xff] }
 0x3cb   : > { %5486 = vmatprep.subr.bf16.mxu0 %v5485_v35  ;;  %v2526_v35 = vld [vmem:[%s6374_s8 + $0xad8] sm:$0xff] }
 0x3cc   : > { %v5517_v33 = vpack.c.bf16 %v2526_v35, %v2520_v52  ;;  %v2616_v52 = vld [vmem:[%s6374_s8 + $0xda8] sm:$0xff]  ;;  %v2622_v35 = vld [vmem:[%s6374_s8 + $0xdd8] sm:$0xff] }
 0x3ce   : > { %5488 = vmatpush1.bf16.msra.mxu0 %v5487_v60  ;;  %v2532_v60 = vld [vmem:[%s6374_s8 + $0xb08] sm:$0xff] }
 0x3cf   : > { %5490 = vmatprep.subr.bf16.mxu0 %v5489_v16  ;;  %v2538_v16 = vld [vmem:[%s6374_s8 + $0xb38] sm:$0xff] }
 0x3d0   : > { %v5521_v1 = vpack.c.bf16 %v2538_v16, %v2532_v60 }
 0x3d2   : > { %5492 = vmatpush1.bf16.msra.mxu0 %v5491_v5  ;;  %v2544_v5 = vld [vmem:[%s6374_s8 + $0xb68] sm:$0xff] }
 0x3d3   : > { %5494 = vmatprep.subr.bf16.mxu0 %v5493_v3  ;;  %v2550_v3 = vld [vmem:[%s6374_s8 + $0xb98] sm:$0xff] }
 0x3d4   : > { %v5525_v50 = vpack.c.bf16 %v2550_v3, %v2544_v5  ;;  %v5557_v3 = vpack.c.bf16 %v2646_v2, %v2640_v54 }
 0x3d6   : > { %5496 = vmatpush1.bf16.msra.mxu0 %v5495_v39  ;;  %v2556_v39 = vld [vmem:[%s6374_s8 + $0xbc8] sm:$0xff] }
 0x3d7   : > { %5498 = vmatprep.subr.bf16.mxu0 %v5497_v38  ;;  %v2562_v38 = vld [vmem:[%s6374_s8 + $0xbf8] sm:$0xff] }
 0x3d8   : > { %v5529_v19 = vpack.c.bf16 %v2562_v38, %v2556_v39  ;;  %v5561_v38 = vpack.c.bf16 %v2658_v10, %v2652_v7 }
 0x3da   : > { %5500 = vmatpush1.bf16.msra.mxu0 %v5499_v23  ;;  %v2568_v23 = vld [vmem:[%s6374_s8 + $0xc28] sm:$0xff] }
 0x3db   : > { %5502 = vmatprep.subr.bf16.mxu0 %v5501_v24  ;;  %v2574_v24 = vld [vmem:[%s6374_s8 + $0xc58] sm:$0xff] }
 0x3dc   : > { %v5533_v48 = vpack.c.bf16 %v2574_v24, %v2568_v23  ;;  %v5565_v24 = vpack.c.bf16 %v2670_v21, %v2664_v53 }
 0x3de   : > { %5504 = vmatpush1.bf16.msra.mxu0 %v5503_v29  ;;  %v2580_v29 = vld [vmem:[%s6374_s8 + $0xc88] sm:$0xff] }
 0x3df   : > { %5506 = vmatprep.subr.bf16.mxu0 %v5505_v17  ;;  %v2586_v17 = vld [vmem:[%s6374_s8 + $0xcb8] sm:$0xff] }
 0x3e0   : > { %v5537_v36 = vpack.c.bf16 %v2586_v17, %v2580_v29  ;;  %v5569_v17 = vpack.c.bf16 %v2682_v26, %v2676_v32 }
 0x3e2   : > { %5508 = vmatpush1.bf16.msra.mxu0 %v5507_v12  ;;  %v2592_v12 = vld [vmem:[%s6374_s8 + $0xce8] sm:$0xff] }
 0x3e3   : > { %5510 = vmatprep.subr.bf16.mxu0 %v5509_v44  ;;  %v2598_v44 = vld [vmem:[%s6374_s8 + $0xd18] sm:$0xff] }
 0x3e4   : > { %v5541_v46 = vpack.c.bf16 %v2598_v44, %v2592_v12  ;;  %v5573_v44 = vpack.c.bf16 %v2694_v13, %v2688_v9 }
 0x3e6   : > { %5512 = vmatpush1.bf16.msra.mxu0 %v5511_v34  ;;  %v2604_v34 = vld [vmem:[%s6374_s8 + $0xd48] sm:$0xff] }
 0x3e7   : > { %5514 = vmatprep.subr.bf16.mxu0 %v5513_v47  ;;  %v2610_v47 = vld [vmem:[%s6374_s8 + $0xd78] sm:$0xff] }
 0x3ea   : > { %5516 = vmatpush1.bf16.msra.mxu0 %v5515_v55  ;;  %v5547_v55 = vpack.c.bf16 %v2609_v22, %v2603_v49  ;;  %v2712_v49 = vld [vmem:[%s6374_s8 + $0x10a8] sm:$0xff]  ;;  %v2718_v22 = vld [vmem:[%s6374_s8 + $0x10d8] sm:$0xff] }
 0x3eb   : > { %5518 = vmatprep.subr.bf16.mxu0 %v5517_v33  ;;  %v2615_v33 = vld [vmem:[%s6374_s8 + $0xda0] sm:$0xff] }
 0x3ec   : > { %v5551_v60 = vpack.c.bf16 %v2621_v40, %v2615_v33  ;;  %v2724_v33 = vld [vmem:[%s6374_s8 + $0x1108] sm:$0xff]  ;;  %v2730_v40 = vld [vmem:[%s6374_s8 + $0x1138] sm:$0xff] }
 0x3ee   : > { %5520 = vmatpush1.bf16.msra.mxu0 %v5519_v63  ;;  %v2627_v63 = vld [vmem:[%s6374_s8 + $0xe00] sm:$0xff] }
 0x3ef   : > { %5522 = vmatprep.subr.bf16.mxu0 %v5521_v1  ;;  %v2633_v1 = vld [vmem:[%s6374_s8 + $0xe30] sm:$0xff] }
 0x3f0   : > { %v5555_v5 = vpack.c.bf16 %v2633_v1, %v2627_v63  ;;  %v2736_v63 = vld [vmem:[%s6374_s8 + $0x1168] sm:$0xff]  ;;  %v2742_v1 = vld [vmem:[%s6374_s8 + $0x1198] sm:$0xff] }
 0x3f1   : > { %v5589_v2 = vpack.c.bf16 %v2742_v1, %v2736_v63  ;;  %v2844_v1 = vld [vmem:[%s6374_s8 + $0x14c8] sm:$0xff] }
 0x3f2   : > { %5524 = vmatpush1.bf16.msra.mxu0 %v5523_v4  ;;  %v2639_v4 = vld [vmem:[%s6374_s8 + $0xe60] sm:$0xff] }
 0x3f3   : > { %5526 = vmatprep.subr.bf16.mxu0 %v5525_v50  ;;  %v2645_v50 = vld [vmem:[%s6374_s8 + $0xe90] sm:$0xff] }
 0x3f4   : > { %v5559_v39 = vpack.c.bf16 %v2645_v50, %v2639_v4  ;;  %v2748_v4 = vld [vmem:[%s6374_s8 + $0x11c8] sm:$0xff]  ;;  %v2754_v50 = vld [vmem:[%s6374_s8 + $0x11f8] sm:$0xff] }
 0x3f5   : > { %v5593_v10 = vpack.c.bf16 %v2754_v50, %v2748_v4  ;;  %v2843_v4 = vld [vmem:[%s6374_s8 + $0x14c0] sm:$0xff]  ;;  %v2849_v50 = vld [vmem:[%s6374_s8 + $0x14f0] sm:$0xff] }
 0x3f6   : > { %5528 = vmatpush1.bf16.msra.mxu0 %v5527_v20  ;;  %v2651_v20 = vld [vmem:[%s6374_s8 + $0xec0] sm:$0xff] }
 0x3f7   : > { %5530 = vmatprep.subr.bf16.mxu0 %v5529_v19  ;;  %v2657_v19 = vld [vmem:[%s6374_s8 + $0xef0] sm:$0xff] }
 0x3f8   : > { %v5563_v23 = vpack.c.bf16 %v2657_v19, %v2651_v20  ;;  %v2760_v20 = vld [vmem:[%s6374_s8 + $0x1228] sm:$0xff]  ;;  %v2766_v19 = vld [vmem:[%s6374_s8 + $0x1258] sm:$0xff] }
 0x3f9   : > { %v5597_v21 = vpack.c.bf16 %v2766_v19, %v2760_v20  ;;  %v5627_v20 = vpack.c.bf16 %v2849_v50, %v2843_v4 }
 0x3fa   : > { %5532 = vmatpush1.bf16.msra.mxu0 %v5531_v43  ;;  %v2663_v43 = vld [vmem:[%s6374_s8 + $0xf20] sm:$0xff] }
 0x3fb   : > { %5534 = vmatprep.subr.bf16.mxu0 %v5533_v48  ;;  %v2669_v48 = vld [vmem:[%s6374_s8 + $0xf50] sm:$0xff] }
 0x3fc   : > { %v5567_v29 = vpack.c.bf16 %v2669_v48, %v2663_v43  ;;  %v2772_v43 = vld [vmem:[%s6374_s8 + $0x1288] sm:$0xff]  ;;  %v2778_v48 = vld [vmem:[%s6374_s8 + $0x12b8] sm:$0xff] }
 0x3fd   : > { %3705 = vmatmul.mubr.f32.vlgmr.msra.gmra.mrb[12].mxu0 %v7453_v0  ;;  %v5543_v0 = vpack.c.bf16 %v2597_v8, %v2591_v56  ;;  %v2700_v56 = vld [vmem:[%s6374_s8 + $0x1048] sm:$0xff]  ;;  %v2706_v8 = vld [vmem:[%s6374_s8 + $0x1078] sm:$0xff]  ;;  %v5601_v26 = vpack.c.bf16 %v2778_v48, %v2772_v43 }
 0x3fe   : > { %3710 = vmatprep.mubr.f32.mxu0 %v7464_v31  ;;  %5536 = vmatpush1.bf16.msra.mxu0 %v5535_v30  ;;  %v5545_v31 = vpack.c.bf16 %v2610_v47, %v2604_v34  ;;  %v2675_v30 = vld [vmem:[%s6374_s8 + $0xf80] sm:$0xff]  ;;  %v5577_v47 = vpack.c.bf16 %v2706_v8, %v2700_v56  ;;  %v2801_v8 = vld [vmem:[%s6374_s8 + $0x1370] sm:$0xff] }
 0x3ff   : > { %5538 = vmatprep.subr.bf16.mxu0 %v5537_v36  ;;  %v2681_v36 = vld [vmem:[%s6374_s8 + $0xfb0] sm:$0xff]  ;;  %v2795_v56 = vld [vmem:[%s6374_s8 + $0x1340] sm:$0xff] }
 0x400   : > { %v5571_v12 = vpack.c.bf16 %v2681_v36, %v2675_v30  ;;  %v2784_v30 = vld [vmem:[%s6374_s8 + $0x12e8] sm:$0xff]  ;;  %v2790_v36 = vld [vmem:[%s6374_s8 + $0x1318] sm:$0xff] }
 0x401   : > { %3711 = vmatmul.mubr.f32.gmra.mrb[14].mxu0 %v7469_v6  ;;  %v5549_v6 = vpack.c.bf16 %v2622_v35, %v2616_v52  ;;  %v5581_v35 = vpack.c.bf16 %v2718_v22, %v2712_v49  ;;  %v5605_v13 = vpack.c.bf16 %v2790_v36, %v2784_v30  ;;  %v2813_v49 = vld [vmem:[%s6374_s8 + $0x13d0] sm:$0xff]  ;;  %v2826_v22 = vld [vmem:[%s6374_s8 + $0x1438] sm:$0xff] }
 0x402   : > { %5540 = vmatpush1.bf16.msra.mxu0 %v5539_v45  ;;  %3781 = vmatprep.mubr.f32.mxu0 %v7475_v14  ;;  %v2628_v14 = vld [vmem:[%s6374_s8 + $0xe08] sm:$0xff]  ;;  %v2687_v45 = vld [vmem:[%s6374_s8 + $0xfe0] sm:$0xff] }
 0x403   : > { %5542 = vmatprep.subr.bf16.mxu0 %v5541_v46  ;;  %v5553_v16 = vpack.c.bf16 %v2634_v59, %v2628_v14  ;;  %v2693_v46 = vld [vmem:[%s6374_s8 + $0x1010] sm:$0xff]  ;;  %v5585_v59 = vpack.c.bf16 %v2730_v40, %v2724_v33  ;;  %v2832_v33 = vld [vmem:[%s6374_s8 + $0x1468] sm:$0xff]  ;;  %v2838_v40 = vld [vmem:[%s6374_s8 + $0x1498] sm:$0xff] }
 0x404   : > { %v5575_v34 = vpack.c.bf16 %v2693_v46, %v2687_v45  ;;  %v2796_v45 = vld [vmem:[%s6374_s8 + $0x1348] sm:$0xff]  ;;  %v2802_v46 = vld [vmem:[%s6374_s8 + $0x1378] sm:$0xff] }
 0x406   : > { %5544 = vmatpush1.bf16.msra.mxu0 %v5543_v0  ;;  %v2699_v0 = vld [vmem:[%s6374_s8 + $0x1040] sm:$0xff] }
 0x407   : > { %5546 = vmatprep.subr.bf16.mxu0 %v5545_v31  ;;  %v2705_v31 = vld [vmem:[%s6374_s8 + $0x1070] sm:$0xff] }
 0x408   : > { %v5579_v52 = vpack.c.bf16 %v2705_v31, %v2699_v0  ;;  %v5611_v0 = vpack.c.bf16 %v2801_v8, %v2795_v56  ;;  %v2807_v31 = vld [vmem:[%s6374_s8 + $0x13a0] sm:$0xff]  ;;  %v2904_v56 = vld [vmem:[%s6374_s8 + $0x16a8] sm:$0xff]  ;;  %v2910_v8 = vld [vmem:[%s6374_s8 + $0x16d8] sm:$0xff] }
 0x40a   : > { %5548 = vmatpush1.bf16.msra.mxu0 %v5547_v55  ;;  %v2711_v55 = vld [vmem:[%s6374_s8 + $0x10a0] sm:$0xff] }
 0x40b   : > { %5550 = vmatprep.subr.bf16.mxu0 %v5549_v6  ;;  %v2717_v6 = vld [vmem:[%s6374_s8 + $0x10d0] sm:$0xff] }
 0x40c   : > { %v5583_v14 = vpack.c.bf16 %v2717_v6, %v2711_v55  ;;  %v2819_v55 = vld [vmem:[%s6374_s8 + $0x1400] sm:$0xff]  ;;  %v2825_v6 = vld [vmem:[%s6374_s8 + $0x1430] sm:$0xff] }
 0x40e   : > { %5552 = vmatpush1.bf16.msra.mxu0 %v5551_v60  ;;  %v2723_v60 = vld [vmem:[%s6374_s8 + $0x1100] sm:$0xff] }
 0x40f   : > { %5554 = vmatprep.subr.bf16.mxu0 %v5553_v16  ;;  %v2729_v16 = vld [vmem:[%s6374_s8 + $0x1130] sm:$0xff] }
 0x410   : > { %v5587_v54 = vpack.c.bf16 %v2729_v16, %v2723_v60  ;;  %v2831_v60 = vld [vmem:[%s6374_s8 + $0x1460] sm:$0xff]  ;;  %v2837_v16 = vld [vmem:[%s6374_s8 + $0x1490] sm:$0xff] }
 0x412   : > { %5556 = vmatpush1.bf16.msra.mxu0 %v5555_v5  ;;  %v2735_v5 = vld [vmem:[%s6374_s8 + $0x1160] sm:$0xff] }
 0x413   : > { %5558 = vmatprep.subr.bf16.mxu0 %v5557_v3  ;;  %v2741_v3 = vld [vmem:[%s6374_s8 + $0x1190] sm:$0xff] }
 0x414   : > { %v5591_v7 = vpack.c.bf16 %v2741_v3, %v2735_v5  ;;  %v5623_v5 = vpack.c.bf16 %v2837_v16, %v2831_v60 }
 0x416   : > { %5560 = vmatpush1.bf16.msra.mxu0 %v5559_v39  ;;  %v2747_v39 = vld [vmem:[%s6374_s8 + $0x11c0] sm:$0xff] }
 0x417   : > { %5562 = vmatprep.subr.bf16.mxu0 %v5561_v38  ;;  %v2753_v38 = vld [vmem:[%s6374_s8 + $0x11f0] sm:$0xff] }
 0x418   : > { %v5595_v53 = vpack.c.bf16 %v2753_v38, %v2747_v39  ;;  %v2862_v39 = vld [vmem:[%s6374_s8 + $0x1558] sm:$0xff] }
 0x41a   : > { %5564 = vmatpush1.bf16.msra.mxu0 %v5563_v23  ;;  %v2759_v23 = vld [vmem:[%s6374_s8 + $0x1220] sm:$0xff] }
 0x41b   : > { %5566 = vmatprep.subr.bf16.mxu0 %v5565_v24  ;;  %v2765_v24 = vld [vmem:[%s6374_s8 + $0x1250] sm:$0xff] }
 0x41c   : > { %v5599_v32 = vpack.c.bf16 %v2765_v24, %v2759_v23  ;;  %v2868_v23 = vld [vmem:[%s6374_s8 + $0x1588] sm:$0xff]  ;;  %v2874_v24 = vld [vmem:[%s6374_s8 + $0x15b8] sm:$0xff] }
 0x41d   : > { %v5633_v48 = vpack.c.bf16 %v2874_v24, %v2868_v23  ;;  %v3875_v24 = vld [vmem:[%s8234_s4] sm:$0x3f] (!%p4117_p2) }
 0x41e   : > { %5568 = vmatpush1.bf16.msra.mxu0 %v5567_v29  ;;  %v2771_v29 = vld [vmem:[%s6374_s8 + $0x1280] sm:$0xff] }
 0x41f   : > { %5570 = vmatprep.subr.bf16.mxu0 %v5569_v17  ;;  %v2777_v17 = vld [vmem:[%s6374_s8 + $0x12b0] sm:$0xff] }
 0x420   : > { %v5603_v9 = vpack.c.bf16 %v2777_v17, %v2771_v29  ;;  %v2880_v29 = vld [vmem:[%s6374_s8 + $0x15e8] sm:$0xff]  ;;  %v2886_v17 = vld [vmem:[%s6374_s8 + $0x1618] sm:$0xff] }
 0x421   : > { %v5637_v36 = vpack.c.bf16 %v2886_v17, %v2880_v29 }
 0x422   : > { %5572 = vmatpush1.bf16.msra.mxu0 %v5571_v12  ;;  %v2783_v12 = vld [vmem:[%s6374_s8 + $0x12e0] sm:$0xff] }
 0x423   : > { %5574 = vmatprep.subr.bf16.mxu0 %v5573_v44  ;;  %v2789_v44 = vld [vmem:[%s6374_s8 + $0x1310] sm:$0xff] }
 0x426   : > { %5576 = vmatpush1.bf16.msra.mxu0 %v5575_v34  ;;  %v2808_v34 = vld [vmem:[%s6374_s8 + $0x13a8] sm:$0xff] }
 0x427   : > { %5578 = vmatprep.subr.bf16.mxu0 %v5577_v47  ;;  %v2814_v47 = vld [vmem:[%s6374_s8 + $0x13d8] sm:$0xff] }
 0x42a   : > { %5580 = vmatpush1.bf16.msra.mxu0 %v5579_v52  ;;  %v5615_v52 = vpack.c.bf16 %v2813_v49, %v2807_v31  ;;  %v2909_v31 = vld [vmem:[%s6374_s8 + $0x16d0] sm:$0xff] }
 0x42b   : > { %5582 = vmatprep.subr.bf16.mxu0 %v5581_v35 }
 0x42e   : > { %5584 = vmatpush1.bf16.msra.mxu0 %v5583_v14  ;;  %v5619_v14 = vpack.c.bf16 %v2825_v6, %v2819_v55  ;;  %v2915_v6 = vld [vmem:[%s6374_s8 + $0x1700] sm:$0xff] }
 0x42f   : > { %5586 = vmatprep.subr.bf16.mxu0 %v5585_v59  ;;  %v5621_v59 = vpack.c.bf16 %v2838_v40, %v2832_v33  ;;  %v2921_v33 = vld [vmem:[%s6374_s8 + $0x1730] sm:$0xff] }
 0x430   : > { %v5651_v60 = vpack.c.bf16 %v2921_v33, %v2915_v6 }
 0x432   : > { %5588 = vmatpush1.bf16.msra.mxu0 %v5587_v54  ;;  %v2850_v54 = vld [vmem:[%s6374_s8 + $0x14f8] sm:$0xff] }
 0x433   : > { %5590 = vmatprep.subr.bf16.mxu0 %v5589_v2  ;;  %v5625_v3 = vpack.c.bf16 %v2850_v54, %v2844_v1  ;;  %v2927_v1 = vld [vmem:[%s6374_s8 + $0x1760] sm:$0xff]  ;;  %v2933_v54 = vld [vmem:[%s6374_s8 + $0x1790] sm:$0xff] }
 0x434   : > { %v5655_v4 = vpack.c.bf16 %v2933_v54, %v2927_v1 }
 0x436   : > { %5592 = vmatpush1.bf16.msra.mxu0 %v5591_v7 }
 0x437   : > { %5594 = vmatprep.subr.bf16.mxu0 %v5593_v10  ;;  %v2856_v10 = vld [vmem:[%s6374_s8 + $0x1528] sm:$0xff] }
 0x438   : > { %v5629_v19 = vpack.c.bf16 %v2862_v39, %v2856_v10  ;;  %v2939_v10 = vld [vmem:[%s6374_s8 + $0x17c0] sm:$0xff]  ;;  %v2945_v39 = vld [vmem:[%s6374_s8 + $0x17f0] sm:$0xff] }
 0x43a   : > { %5596 = vmatpush1.bf16.msra.mxu0 %v5595_v53  ;;  %v2855_v53 = vld [vmem:[%s6374_s8 + $0x1520] sm:$0xff] }
 0x43b   : > { %5598 = vmatprep.subr.bf16.mxu0 %v5597_v21  ;;  %v2861_v21 = vld [vmem:[%s6374_s8 + $0x1550] sm:$0xff] }
 0x43c   : > { %v5631_v43 = vpack.c.bf16 %v2861_v21, %v2855_v53 }
 0x43d   : > { %3782 = vmatmul.mubr.f32.vlgmr.msra.gmra.mrb[12].mxu0 %v7618_v25  ;;  %v5607_v25 = vpack.c.bf16 %v2789_v44, %v2783_v12  ;;  %v2892_v12 = vld [vmem:[%s6374_s8 + $0x1648] sm:$0xff]  ;;  %v2898_v44 = vld [vmem:[%s6374_s8 + $0x1678] sm:$0xff] }
 0x43e   : > { %3787 = vmatprep.mubr.f32.mxu0 %v7623_v42  ;;  %5600 = vmatpush1.bf16.msra.mxu0 %v5599_v32  ;;  %v5609_v42 = vpack.c.bf16 %v2802_v46, %v2796_v45  ;;  %v2867_v32 = vld [vmem:[%s6374_s8 + $0x1580] sm:$0xff]  ;;  %v5641_v46 = vpack.c.bf16 %v2898_v44, %v2892_v12 }
 0x43f   : > { %5602 = vmatprep.subr.bf16.mxu0 %v5601_v26  ;;  %v2873_v26 = vld [vmem:[%s6374_s8 + $0x15b0] sm:$0xff] }
 0x440   : > { %v5635_v30 = vpack.c.bf16 %v2873_v26, %v2867_v32  ;;  %v3900_v32 = vrot.slane (!%p4117_p2), %v3875_v24, %v1157_v11 }
 0x441   : > { %3788 = vmatmul.mubr.f32.gmra.mrb[14].mxu0 %v7633_v62  ;;  %v5613_v62 = vpack.c.bf16 %v2814_v47, %v2808_v34 }
 0x442   : > { %5604 = vmatpush1.bf16.msra.mxu0 %v5603_v9  ;;  %3858 = vmatprep.mubr.f32.mxu0 %v7831_v51  ;;  %v2820_v51 = vld [vmem:[%s6374_s8 + $0x1408] sm:$0xff]  ;;  %v2879_v9 = vld [vmem:[%s6374_s8 + $0x15e0] sm:$0xff] }
 0x443   : > { %5606 = vmatprep.subr.bf16.mxu0 %v5605_v13  ;;  %v5617_v35 = vpack.c.bf16 %v2826_v22, %v2820_v51  ;;  %v2885_v13 = vld [vmem:[%s6374_s8 + $0x1610] sm:$0xff]  ;;  %v2916_v51 = vld [vmem:[%s6374_s8 + $0x1708] sm:$0xff]  ;;  %v2922_v22 = vld [vmem:[%s6374_s8 + $0x1738] sm:$0xff] }
 0x444   : > { %v5639_v45 = vpack.c.bf16 %v2885_v13, %v2879_v9  ;;  %v5649_v55 = vpack.c.bf16 %v2922_v22, %v2916_v51 }
 0x446   : > { %5608 = vmatpush1.bf16.msra.mxu0 %v5607_v25  ;;  %v2891_v25 = vld [vmem:[%s6374_s8 + $0x1640] sm:$0xff] }
 0x447   : > { %5610 = vmatprep.subr.bf16.mxu0 %v5609_v42  ;;  %v2897_v42 = vld [vmem:[%s6374_s8 + $0x1670] sm:$0xff] }
 0x448   : > { %v5643_v34 = vpack.c.bf16 %v2897_v42, %v2891_v25 }
 0x44a   : > { %5612 = vmatpush1.bf16.msra.mxu0 %v5611_v0  ;;  %v5645_v0 = vpack.c.bf16 %v2910_v8, %v2904_v56 }
 0x44b   : > { %5614 = vmatprep.subr.bf16.mxu0 %v5613_v62  ;;  %v2903_v62 = vld [vmem:[%s6374_s8 + $0x16a0] sm:$0xff] }
 0x44e   : > { %5616 = vmatpush1.bf16.msra.mxu0 %v5615_v52  ;;  %v5647_v52 = vpack.c.bf16 %v2909_v31, %v2903_v62 }
 0x44f   : > { %5618 = vmatprep.subr.bf16.mxu0 %v5617_v35 }
 0x450   : > { %v8093_v63 = vpop.f32.mrb[8].mxu0 }
 0x451   : > { %v8097_v2 = vpop.f32.mrb[9].mxu0 }
 0x452   : > { %5620 = vmatpush1.bf16.msra.mxu0 %v5619_v14  ;;  %v2928_v14 = vld [vmem:[%s6374_s8 + $0x1768] sm:$0xff] }
 0x453   : > { %5622 = vmatprep.subr.bf16.mxu0 %v5621_v59  ;;  %v2934_v59 = vld [vmem:[%s6374_s8 + $0x1798] sm:$0xff] }
 0x454   : > { %v8101_v7 = vpop.f32.mrb[10].mxu0  ;;  %v5653_v16 = vpack.c.bf16 %v2934_v59, %v2928_v14 }
 0x455   : > { %v8105_v38 = vpop.f32.mrb[11].mxu0 }
 0x456   : > { %5624 = vmatpush1.bf16.msra.mxu0 %v5623_v5  ;;  %v2940_v5 = vld [vmem:[%s6374_s8 + $0x17c8] sm:$0xff] }
 0x457   : > { %5626 = vmatprep.subr.bf16.mxu0 %v5625_v3  ;;  %v2946_v3 = vld [vmem:[%s6374_s8 + $0x17f8] sm:$0xff] }
 0x458   : > { %v5657_v50 = vpack.c.bf16 %v2946_v3, %v2940_v5 }
 0x45a   : > { %5628 = vmatpush1.bf16.msra.mxu0 %v5627_v20  ;;  %v5659_v20 = vpack.c.bf16 %v2945_v39, %v2939_v10 }
 0x45b   : > { %5630 = vmatprep.subr.bf16.mxu0 %v5629_v19 }
 0x45e   : > { %5632 = vmatpush1.bf16.msra.mxu0 %v5631_v43  ;;  %v3892_v43 = vrot.slane (!%p4117_p2), %v3875_v24, %v1149_v18 }
 0x45f   : > { %5634 = vmatprep.subr.bf16.mxu0 %v5633_v48  ;;  %v3896_v48 = vrot.slane (!%p4117_p2), %v3875_v24, %v1153_v61 }
 0x462   : > { %5636 = vmatpush1.bf16.msra.mxu0 %v5635_v30 }
 0x463   : > { %5638 = vmatprep.subr.bf16.mxu0 %v5637_v36 }
 0x466   : > { %5640 = vmatpush1.bf16.msra.mxu0 %v5639_v45 }
 0x467   : > { %v8123_v47 = vpop.f32.mrb[12].mxu1  ;;  %5642 = vmatprep.subr.bf16.mxu0 %v5641_v46 }
 0x468   : > { %v8127_v49 = vpop.f32.mrb[13].mxu1 }
 0x46a   : > { %5644 = vmatpush1.bf16.msra.mxu0 %v5643_v34 }
 0x46b   : > { %v8131_v35 = vpop.f32.mrb[14].mxu1  ;;  %5646 = vmatprep.subr.bf16.mxu0 %v5645_v0 }
 0x46c   : > { %v8135_v40 = vpop.f32.mrb[15].mxu1 }
 0x46d   : > { %v3916_v11 = vadd.f32 (!%p4117_p2), %v3892_v43, %v8135_v40 }
 0x46e   : > { %5648 = vmatpush1.bf16.msra.mxu0 %v5647_v52 }
 0x46f   : > { %5650 = vmatprep.subr.bf16.mxu0 %v5649_v55  ;;  %3928 = vst [vmem:[#allocation10 + $0x48] sm:$0xff] (!%p4117_p2), %v3916_v11 }
 0x472   : > { %5652 = vmatpush1.bf16.msra.mxu0 %v5651_v60 }
 0x473   : > { %5654 = vmatprep.subr.bf16.mxu0 %v5653_v16 }
 0x476   : > { %5656 = vmatpush1.bf16.msra.mxu0 %v5655_v4 }
 0x477   : > { %5658 = vmatprep.subr.bf16.mxu0 %v5657_v50 }
 0x47a   : > { %5660 = vmatpush1.bf16.msra.mxu0 %v5659_v20 }
 0x47d   : > { %3859 = vmatmul.mubr.f32.vlgmr.msra.gmra.mrb[12].mxu0 %v7835_v28  ;;  %v3880_v28 = vrot.slane (!%p4117_p2), %v3875_v24, %v1137_v37 }
 0x47e   : > { %3864 = vmatprep.mubr.f32.mxu0 %v7847_v27  ;;  %v3884_v27 = vrot.slane (!%p4117_p2), %v3875_v24, %v1141_v41  ;;  %v3910_v41 = vadd.f32 (!%p4117_p2), %v3892_v43, %v8127_v49 }
 0x47f   : > { %v3907_v26 = vadd.f32 (!%p4117_p2), %v3880_v28, %v8093_v63 }
 0x480   : > { %v3908_v29 = vadd.f32 (!%p4117_p2), %v3884_v27, %v8097_v2  ;;  %v3914_v18 = vadd.f32 (!%p4117_p2), %v3884_v27, %v8105_v38  ;;  %3922 = vst [vmem:[#allocation10 + $0x18] sm:$0xff] (!%p4117_p2), %v3910_v41 }
 0x481   : > { %3865 = vmatmul.mubr.f32.gmra.mrb[14].mxu0 %v7852_v58  ;;  %v3888_v58 = vrot.slane (!%p4117_p2), %v3875_v24, %v1145_v15  ;;  %v3913_v15 = vadd.f32 (!%p4117_p2), %v3880_v28, %v8101_v7  ;;  %3919 = vst [vmem:[#allocation10] sm:$0xff] (!%p4117_p2), %v3907_v26 }
 0x482   : > { %3920 = vst [vmem:[#allocation10 + $0x8] sm:$0xff] (!%p4117_p2), %v3908_v29  ;;  %3926 = vst [vmem:[#allocation10 + $0x38] sm:$0xff] (!%p4117_p2), %v3914_v18 }
 0x483   : > { %v3909_v37 = vadd.f32 (!%p4117_p2), %v3888_v58, %v8123_v47  ;;  %v3915_v57 = vadd.f32 (!%p4117_p2), %v3888_v58, %v8131_v35  ;;  %3925 = vst [vmem:[#allocation10 + $0x30] sm:$0xff] (!%p4117_p2), %v3913_v15 }
 0x485   : > { %3921 = vst [vmem:[#allocation10 + $0x10] sm:$0xff] (!%p4117_p2), %v3909_v37  ;;  %3927 = vst [vmem:[#allocation10 + $0x40] sm:$0xff] (!%p4117_p2), %v3915_v57 }
 0x54f   : > { %3874 = sbr.rel (%p4117_p2) target bundleno = 1369 (0x559), region = 60 }
 0x550   : > { %v3860_v19 = vpop.f32.mrb[12].mxu0 }
 0x551   : > { %v3862_v53 = vpop.f32.mrb[13].mxu0  ;;  %v3911_v17 = vadd.f32 (!%p4117_p2), %v3896_v48, %v3860_v19 }
 0x552   : > { %v3912_v30 = vadd.f32 (!%p4117_p2), %v3900_v32, %v3862_v53 }
 0x553   : > { %3923 = vst [vmem:[#allocation10 + $0x20] sm:$0xff] (!%p4117_p2), %v3911_v17 }
 0x554   : > { %v8148_v21 = vpop.f32.mrb[14].mxu0  ;;  %3924 = vst [vmem:[#allocation10 + $0x28] sm:$0xff] (!%p4117_p2), %v3912_v30 }
 0x555   : > { %v8150_v23 = vpop.f32.mrb[15].mxu0  ;;  %v3917_v61 = vadd.f32 (!%p4117_p2), %v3896_v48, %v8148_v21 }
 0x556   : > { %v3918_v36 = vadd.f32 %v3900_v32, %v8150_v23 }
 0x557   : > { %3929 = vst [vmem:[#allocation10 + $0x50] sm:$0xff] %v3917_v61 }
 0x558   : > { %3930 = vst [vmem:[#allocation10 + $0x58] sm:$0xff] %v3918_v36 }
 0x559 PF: > { %p4118_p1 = scmp.le.s32.totalorder %s6094_s21, 0 }
 0x55a   : > { %v3935_v9 = vld [vmem:[#allocation10] sm:$0xff] (!%p4118_p1)  ;;  %v3936_v13 = vld [vmem:[#allocation10 + $0x8] sm:$0xff] (!%p4118_p1)  ;;  %v3937_v12 = vld [vmem:[#allocation10 + $0x10] sm:$0xff] (!%p4118_p1) }
 0x55b   : > { %3934 = sbr.rel (%p4118_p1) target bundleno = 1379 (0x563), region = 64  ;;  %v3947_v44 = vadd.f32 (!%p4118_p1), %v3935_v9, %v8093_v63  ;;  %v3948_v45 = vadd.f32 (!%p4118_p1), %v3936_v13, %v8097_v2  ;;  %v3949_v46 = vadd.f32 (!%p4118_p1), %v3937_v12, %v8123_v47  ;;  %v3938_v25 = vld [vmem:[#allocation10 + $0x18] sm:$0xff] (!%p4118_p1)  ;;  %v3941_v62 = vld [vmem:[#allocation10 + $0x30] sm:$0xff] (!%p4118_p1)  ;;  %v3943_v51 = vld [vmem:[#allocation10 + $0x40] sm:$0xff] (!%p4118_p1) }
 0x55c   : > { %v3950_v8 = vadd.f32 (!%p4118_p1), %v3938_v25, %v8127_v49  ;;  %v3942_v31 = vld [vmem:[#allocation10 + $0x38] sm:$0xff] (!%p4118_p1)  ;;  %v3953_v22 = vadd.f32 (!%p4118_p1), %v3941_v62, %v8101_v7  ;;  %v3955_v2 = vadd.f32 (!%p4118_p1), %v3943_v51, %v8131_v35  ;;  %v3944_v47 = vld [vmem:[#allocation10 + $0x48] sm:$0xff] (!%p4118_p1) }
 0x55d   : > { %v3939_v42 = vld [vmem:[#allocation10 + $0x20] sm:$0xff] (!%p4118_p1)  ;;  %3959 = vst [vmem:[#allocation10] sm:$0xff] (!%p4118_p1), %v3947_v44  ;;  %3960 = vst [vmem:[#allocation10 + $0x8] sm:$0xff] (!%p4118_p1), %v3948_v45  ;;  %v3954_v63 = vadd.f32 (!%p4118_p1), %v3942_v31, %v8105_v38  ;;  %v3956_v49 = vadd.f32 (!%p4118_p1), %v3944_v47, %v8135_v40 }
 0x55e   : > { %v3940_v56 = vld [vmem:[#allocation10 + $0x28] sm:$0xff] (!%p4118_p1)  ;;  %v3951_v34 = vadd.f32 (!%p4118_p1), %v3939_v42, %v3860_v19  ;;  %3961 = vst [vmem:[#allocation10 + $0x10] sm:$0xff] (!%p4118_p1), %v3949_v46  ;;  %v3945_v52 = vld [vmem:[#allocation10 + $0x50] sm:$0xff] (!%p4118_p1)  ;;  %3962 = vst [vmem:[#allocation10 + $0x18] sm:$0xff] (!%p4118_p1), %v3950_v8 }
 0x55f   : > { %v3952_v0 = vadd.f32 (!%p4118_p1), %v3940_v56, %v3862_v53  ;;  %v3946_v55 = vld [vmem:[#allocation10 + $0x58] sm:$0xff] (!%p4118_p1)  ;;  %v3957_v6 = vadd.f32 (!%p4118_p1), %v3945_v52, %v8148_v21  ;;  %3965 = vst [vmem:[#allocation10 + $0x30] sm:$0xff] (!%p4118_p1), %v3953_v22  ;;  %3966 = vst [vmem:[#allocation10 + $0x38] sm:$0xff] (!%p4118_p1), %v3954_v63 }
 0x560   : > { %3963 = vst [vmem:[#allocation10 + $0x20] sm:$0xff] (!%p4118_p1), %v3951_v34  ;;  %v3958_v33 = vadd.f32 (!%p4118_p1), %v3946_v55, %v8150_v23  ;;  %3967 = vst [vmem:[#allocation10 + $0x40] sm:$0xff] (!%p4118_p1), %v3955_v2 }
 0x561   : > { %3964 = vst [vmem:[#allocation10 + $0x28] sm:$0xff] (!%p4118_p1), %v3952_v0  ;;  %3968 = vst [vmem:[#allocation10 + $0x48] sm:$0xff] (!%p4118_p1), %v3956_v49 }
 0x562   : > { %3969 = vst [vmem:[#allocation10 + $0x50] sm:$0xff] %v3957_v6  ;;  %3970 = vst [vmem:[#allocation10 + $0x58] sm:$0xff] %v3958_v33 }
 0x563 PF: > { %p5780_p4 = scmp.eq.s32.totalorder %s6239_s25, 2  ;;  %s6113_s21 = smov [#allocation10]  }
 0x564   : > { %s3981_s7 = sshll.u32 %s6113_s21, 4  ;;  %s3982_s7 = int_to_ptr.vmem [resolvable:$true] %s3981_s7 }
 0x565   : > { %s6014_s14 = scalar_lea.vmem %s3982_s7, 1536  ;;  %p6021_p7 = scmp.lt.s32.totalorder %s3982_s7, %s3982_s7 }
 0x566   : > { %p6015_p6 = scmp.ne.s32.totalorder %s3982_s7, %s6014_s14  ;;  %p6022_p9 = scmp.lt.s32.totalorder %s6014_s14, %s6014_s14 }
 0x568   : > { %p6016_p13 = pnand %p6015_p6, %p5780_p4  ;;  %p6023_p12 = por %p6022_p9, %p6021_p7 }
 0x56a   : > { %p6017_p3 = pneg %p6016_p13 }
 0x56c   : > { %p6024_p10 = pnand %p6023_p12, %p6017_p3 }
 0x56e   : > { %6027 = shalt.err (!%p6024_p10)
}
 0x56f   : > { %s6028_s16 = scalar_lea.hbm %s8235_s5, 1536 }
 0x570   : > { %p6029_p8 = scmp.ne.s32.totalorder %s8235_s5, %s6028_s16  ;;  %p6034_p0 = scmp.lt.u32.totalorder %s6028_s16, %s8235_s5 }
 0x572   : > { %p6030_p11 = pnand %p6029_p8, %p5780_p4 }
 0x574   : > { %p6031_p5 = pneg %p6030_p11 }
 0x576   : > { %p6036_p2 = pnand %p6034_p0, %p6031_p5 }
 0x578   : > { %6039 = shalt.err (!%p6036_p2)
}
 0x579   : > { %s6114_s10 = smov 768   ;;  %s6115_s15 = smov 48  }
 0x57a   : > { %5760 = dma.vmem_to_hbm [thread:$0]  (%p5780_p4), %s3982_s7, 1536, %s8235_s5, [#allocation4], %s6114_s10, %s6114_s10, %s6115_s15  }
 0x57b   : > { %6077 = dma.done.wait (%p5780_p4), [#allocation4], 1536  }
 0x57c   : > { %6079 = vsyncadd (%p5780_p4), [#allocation4], 4294965760 }
 0x57d PF: > { %s23_s23 = sadd.s32 1, %s6102_s23   ;;  %s8261_s28 = sld [smem:[#allocation16_spill]] }
 0x57e   : > { %p20_p1 = scmp.ge.s32.totalorder %s23_s23, 5   ;;  %s8262_s29 = sld [smem:[#allocation15_spill]] }
 0x57f   : > { %s8263_s18 = smov %s6086_s19  ;;  %s8264_s19 = smov %s6090_s20 }
 0x580   : > { %s8266_s21 = smov %s6098_s22  ;;  %22 = sbr.rel (!%p20_p1) target bundleno = 10 (0xa), region = 116 }
 0x583   : > { %s8265_s20 = smov %s8261_s28 }
 0x584   : > { %s8267_s22 = smov %s8262_s29 }
 0x587   :  { %3997 = vsyncpa [#allocation3], 1 }
 0x588   :  { %3999 = vsyncpa [#allocation3 + $0x1], 1 }
 0x589   :  { %4000 = vsyncpa [#allocation6], 1 }
 0x58a   :  { %4002 = vsyncpa [#allocation6 + $0x1], 1 }
 0x58b   :  { %4003 = vsyncpa [#allocation9], 1 }
 0x58c   :  { %4005 = vsyncpa [#allocation9 + $0x1], 1 }
 0x58d   :  { %4006 = vsyncpa [#allocation4], 1 }
 0x58e   :  { %4008 = vsyncpa [#allocation4 + $0x1], 1 }

</bundles_post_ra>
